<compile_context>
chip_gen: v7x
topology: tpu7x:2x2x1
jax: 0.10.0
libtpu: 0.0.40
codegen_flags: <defaults>
</compile_context>

<pallas_src>
import functools

import numpy as np

import jax
import jax.numpy as jnp
from jax.experimental import pallas as pl
from jax.experimental.pallas import tpu as pltpu

_EPS = 1e-5
_HI = jax.lax.Precision.HIGHEST


def _bn_lane(t, gamma, beta, g_red, g_exp, n):
    """Training-mode BatchNorm on a lane-dense (rows, groups*C) slab.

    gamma/beta: (1, C).  g_red: (groups*C, C) 0/1 lane->channel map, g_exp = g_red.T.
    One-pass stats (sum / sum-of-squares); the lane<->channel reductions and
    broadcasts ride the MXU via tiny 0/1-map dots (kept at HIGHEST: trivial
    FLOPs, exact batch statistics).
    """
    stats = jnp.concatenate(
        [jnp.sum(t, axis=0, keepdims=True),
         jnp.sum(t * t, axis=0, keepdims=True)], axis=0)                # (2, G*C)
    ch = jnp.dot(stats, g_red, precision=_HI,
                 preferred_element_type=jnp.float32)                    # (2, C)
    mean = ch[0:1] / n
    var = ch[1:2] / n - mean * mean
    scale = gamma * jax.lax.rsqrt(var + _EPS)                           # (1, C)
    shift = beta - mean * scale
    lanes = jnp.dot(jnp.concatenate([scale, shift], axis=0), g_exp,
                    precision=_HI, preferred_element_type=jnp.float32)  # (2, G*C)
    return t * lanes[0:1] + lanes[1:2]


def _bottleneck_kernel(x_ref, w1_ref, w2_ref, w3_ref, ws_ref,
                       g1_ref, b1_ref, g2_ref, b2_ref, g3_ref, b3_ref,
                       gs_ref, bs_ref,
                       gr_mi_ref, ge_mi_ref, gr_mo_ref, ge_mo_ref,
                       gr_o_ref, ge_o_ref,
                       out_ref, pad_ref, *, dims):
    N, H, W, Ho, Wo, Cin, Cmid, stride = dims
    WC = W * Cmid
    bf16 = jnp.bfloat16
    n_in = float(N * H * W)
    n_out = float(N * Ho * Wo)

    def h_rows(ref, start):
        # Ho rows along the (sublane) H axis; H stride folded into the read.
        if stride == 1:
            return ref[:, pl.ds(start, Ho), :]
        return ref[:, pl.ds(start, Ho, stride=stride), :]

    # ---- conv1 (1x1): lane-dense block-diagonal bf16 matmul -> BN -> ReLU ----
    x2d = x_ref[...].reshape(N * H, W * Cin).astype(bf16)               # (N*H, W*Cin)
    t1 = jnp.dot(x2d, w1_ref[...],
                 preferred_element_type=jnp.float32)                    # (N*H, W*Cmid)
    t1 = jnp.maximum(
        _bn_lane(t1, g1_ref[...], b1_ref[...], gr_mi_ref[...], ge_mi_ref[...], n_in),
        0.0)

    # ---- conv2 (3x3, stride, pad=1) ------------------------------------------
    # Only the H halo is materialized (interior written once + two zero rows);
    # W taps / W padding / W stride live in the per-kh block-banded weight, the
    # H stride lives in the tap reads, and the 3 taps accumulate into one f32
    # result (no im2col concat).
    pad_ref[:, 1:H + 1, :] = t1.reshape(N, H, WC)
    zrow = jnp.zeros((N, 1, WC), jnp.float32)
    pad_ref[:, 0:1, :] = zrow
    pad_ref[:, H + 1:H + 2, :] = zrow

    t2 = None
    for kh in range(3):
        tap = h_rows(pad_ref, kh).reshape(N * Ho, WC).astype(bf16)      # (N*Ho, WC)
        part = jnp.dot(tap, w2_ref[kh],
                       preferred_element_type=jnp.float32)              # (N*Ho, Wo*Cmid)
        t2 = part if t2 is None else t2 + part
    t2 = jnp.maximum(
        _bn_lane(t2, g2_ref[...], b2_ref[...], gr_mo_ref[...], ge_mo_ref[...], n_out),
        0.0)

    # ---- conv3 (1x1) -> BN ----------------------------------------------------
    t3 = jnp.dot(t2.astype(bf16), w3_ref[...],
                 preferred_element_type=jnp.float32)                    # (N*Ho, Wo*Cout)
    t3 = _bn_lane(t3, g3_ref[...], b3_ref[...], gr_o_ref[...], ge_o_ref[...], n_out)

    # ---- shortcut: 1x1 strided conv -> BN (reuses the resident x block) ------
    if stride == 1:
        xs = x2d                                                        # no extra read
    else:
        xs = h_rows(x_ref, 0).reshape(N * Ho, W * Cin).astype(bf16)
    sc = jnp.dot(xs, ws_ref[...],
                 preferred_element_type=jnp.float32)                    # (N*Ho, Wo*Cout)
    sc = _bn_lane(sc, gs_ref[...], bs_ref[...], gr_o_ref[...], ge_o_ref[...], n_out)

    # ---- residual add + ReLU: lane-dense (Wo*Cout-wide) unmasked store -------
    out_ref[...] = jnp.maximum(t3 + sc, 0.0).astype(out_ref.dtype)


def build_bottleneck_operands(p, N, H, W, stride):
    """Host-side (numpy) construction of the lane-dense blocked weights and BN
    lane<->channel 0/1 maps.  Build ONCE per (shape, stride) config and reuse
    across forward calls -- none of this runs per step, and no kron temporaries
    are materialized."""
    Cin, Cmid = p["w1"].shape
    Cout = p["w3"].shape[1]
    Ho = (H + 2 - 3) // stride + 1
    Wo = (W + 2 - 3) // stride + 1
    f32 = np.float32

    w1 = np.asarray(p["w1"], f32)
    w2 = np.asarray(p["w2"], f32)
    w3 = np.asarray(p["w3"], f32)
    ws = np.asarray(p["ws"], f32)

    # conv1 / conv3: block-diagonal kron(I, w), filled in place
    w1_blk = np.zeros((W * Cin, W * Cmid), f32)
    for w in range(W):
        w1_blk[w * Cin:(w + 1) * Cin, w * Cmid:(w + 1) * Cmid] = w1
    w3_blk = np.zeros((Wo * Cmid, Wo * Cout), f32)
    for w in range(Wo):
        w3_blk[w * Cmid:(w + 1) * Cmid, w * Cout:(w + 1) * Cout] = w3

    # conv2: per-H-tap block-banded weight folding W taps, W padding and W stride
    w2_blk = np.zeros((3, W * Cmid, Wo * Cmid), f32)
    for kh in range(3):
        for kw in range(3):
            for wo in range(Wo):
                wi = stride * wo + kw - 1
                if 0 <= wi < W:
                    w2_blk[kh, wi * Cmid:(wi + 1) * Cmid,
                           wo * Cmid:(wo + 1) * Cmid] += w2[kh, kw]

    # shortcut 1x1 strided conv: W stride folded into the block weight
    ws_blk = np.zeros((W * Cin, Wo * Cout), f32)
    for wo in range(Wo):
        wi = stride * wo
        ws_blk[wi * Cin:(wi + 1) * Cin, wo * Cout:(wo + 1) * Cout] = ws

    def g_maps(groups, c):
        g_red = np.zeros((groups * c, c), f32)
        eye = np.eye(c, dtype=f32)
        for g in range(groups):
            g_red[g * c:(g + 1) * c, :] = eye
        return jnp.asarray(g_red), jnp.asarray(np.ascontiguousarray(g_red.T))

    gr_mi, ge_mi = g_maps(W, Cmid)       # BN1 (W groups)
    gr_mo, ge_mo = g_maps(Wo, Cmid)      # BN2 (Wo groups)
    gr_o, ge_o = g_maps(Wo, Cout)        # BN3 / shortcut BN

    bf16 = jnp.bfloat16
    return {
        "w1": jnp.asarray(w1_blk).astype(bf16),
        "w2": jnp.asarray(w2_blk).astype(bf16),
        "w3": jnp.asarray(w3_blk).astype(bf16),
        "ws": jnp.asarray(ws_blk).astype(bf16),
        "g1": p["g1"], "b1": p["b1"], "g2": p["g2"], "b2": p["b2"],
        "g3": p["g3"], "b3": p["b3"], "gs": p["gs"], "bs": p["bs"],
        "gr_mi": gr_mi, "ge_mi": ge_mi, "gr_mo": gr_mo, "ge_mo": ge_mo,
        "gr_o": gr_o, "ge_o": ge_o,
        "dims": (N, H, W, Ho, Wo, Cin, Cmid, stride),
        "cout": Cout,
    }


def bottleneck_forward(x, ops, out_dtype=jnp.bfloat16):
    """x: (N, H, W, Cin) f32 NHWC.  ops: output of build_bottleneck_operands."""
    N, H, W, Ho, Wo, Cin, Cmid, stride = ops["dims"]
    Cout = ops["cout"]
    assert x.shape == (N, H, W, Cin)

    # x stays f32 so the stride>1 shortcut read is a plain 32-bit strided
    # sublane slice (bf16 cast happens at the MXU operands inside the kernel).
    x_in = x.reshape(N, H, W * Cin).astype(jnp.float32)

    args = (x_in, ops["w1"], ops["w2"], ops["w3"], ops["ws"],
            ops["g1"], ops["b1"], ops["g2"], ops["b2"], ops["g3"], ops["b3"],
            ops["gs"], ops["bs"],
            ops["gr_mi"], ops["ge_mi"], ops["gr_mo"], ops["ge_mo"],
            ops["gr_o"], ops["ge_o"])

    def full_spec(a):
        return pl.BlockSpec(a.shape, lambda i, nd=a.ndim: (0,) * nd)

    grid_spec = pltpu.PrefetchScalarGridSpec(
        num_scalar_prefetch=0,
        grid=(1,),
        in_specs=[full_spec(a) for a in args],
        out_specs=pl.BlockSpec((N * Ho, Wo * Cout), lambda i: (0, 0)),
        scratch_shapes=[pltpu.VMEM((N, H + 2, W * Cmid), jnp.float32)],
    )

    out_slab = pl.pallas_call(
        functools.partial(_bottleneck_kernel, dims=ops["dims"]),
        out_shape=jax.ShapeDtypeStruct((N * Ho, Wo * Cout), out_dtype),
        grid_spec=grid_spec,
        compiler_params=pltpu.CompilerParams(
            dimension_semantics=("arbitrary",),
            vmem_limit_bytes=32 * 1024 * 1024),
    )(*args)

    # lane-dense slab -> NHWC (layout plumbing outside the kernel)
    return out_slab.reshape(N, Ho, Wo, Cout)


# ---------------- pure-JAX references (for correctness checks) ----------------
def _bn_ref(t, g, b):
    mean = jnp.mean(t, axis=(0, 1, 2), keepdims=True)
    var = jnp.mean(jnp.square(t - mean), axis=(0, 1, 2), keepdims=True)
    return (t - mean) * jax.lax.rsqrt(var + _EPS) * g.reshape(1, 1, 1, -1) \
        + b.reshape(1, 1, 1, -1)


def bottleneck_reference(x, p, stride=1, match_bf16=False):
    """f32 reference; with match_bf16=True the conv operands are bf16-rounded
    exactly like the kernel's MXU operands (f32 accumulation everywhere)."""
    dn = ("NHWC", "HWIO", "NHWC")
    prec = None if match_bf16 else jax.lax.Precision.HIGHEST
    cast = (lambda a: a.astype(jnp.bfloat16)) if match_bf16 else (lambda a: a)

    def conv(a, w, strides, padding):
        return jax.lax.conv_general_dilated(
            cast(a), cast(w), strides, padding, dimension_numbers=dn,
            precision=prec, preferred_element_type=jnp.float32)

    t = conv(x, p["w1"][None, None], (1, 1), "VALID")
    t = jnp.maximum(_bn_ref(t, p["g1"], p["b1"]), 0.0)
    t = conv(t, p["w2"], (stride, stride), ((1, 1), (1, 1)))
    t = jnp.maximum(_bn_ref(t, p["g2"], p["b2"]), 0.0)
    t = conv(t, p["w3"][None, None], (1, 1), "VALID")
    t = _bn_ref(t, p["g3"], p["b3"])

    sc = conv(x, p["ws"][None, None], (stride, stride), "VALID")
    sc = _bn_ref(sc, p["gs"], p["bs"])
    return jnp.maximum(t + sc, 0.0)


if __name__ == "__main__":
    N, H, W = 2, 16, 16
    in_channels, out_channels = 16, 8        # expansion = 4 -> Cout = 32
    Cout = out_channels * 4

    ks = jax.random.split(jax.random.PRNGKey(0), 14)
    f32 = jnp.float32
    x = jax.random.normal(ks[0], (N, H, W, in_channels), f32)

    params = {
        # conv weights (HWIO-style; 1x1 convs keep only the IO dims)
        "w1": 0.2 * jax.random.normal(ks[1], (in_channels, out_channels), f32),
        "w2": 0.2 * jax.random.normal(ks[2], (3, 3, out_channels, out_channels), f32),
        "w3": 0.2 * jax.random.normal(ks[3], (out_channels, Cout), f32),
        "ws": 0.2 * jax.random.normal(ks[4], (in_channels, Cout), f32),
        # BatchNorm affine params
        "g1": 1.0 + 0.1 * jax.random.normal(ks[5], (1, out_channels), f32),
        "b1": 0.1 * jax.random.normal(ks[6], (1, out_channels), f32),
        "g2": 1.0 + 0.1 * jax.random.normal(ks[7], (1, out_channels), f32),
        "b2": 0.1 * jax.random.normal(ks[8], (1, out_channels), f32),
        "g3": 1.0 + 0.1 * jax.random.normal(ks[9], (1, Cout), f32),
        "b3": 0.1 * jax.random.normal(ks[10], (1, Cout), f32),
        "gs": 1.0 + 0.1 * jax.random.normal(ks[11], (1, Cout), f32),
        "bs": 0.1 * jax.random.normal(ks[12], (1, Cout), f32),
    }

    # validate both the stride=1 and stride=2 paths on device
    for stride in (1, 2):
        Ho = (H + 2 - 3) // stride + 1
        # blocked weights / BN maps: built once per config, reused every call
        ops = build_bottleneck_operands(params, N, H, W, stride)

        # tight check: f32 output vs a reference whose matmul operands are
        # bf16-rounded like the kernel's MXU operands (isolates layout/tiling)
        out32 = jax.block_until_ready(
            bottleneck_forward(x, ops, out_dtype=jnp.float32))
        assert out32.shape == (N, Ho, Ho, Cout), out32.shape
        ref_m = bottleneck_reference(x, params, stride=stride, match_bf16=True)
        err_m = float(jnp.max(jnp.abs(out32 - ref_m)))
        assert err_m < 1e-2, f"stride={stride}: bf16-matched mismatch {err_m}"

        # loose check vs the full-f32 reference (budget for bf16 operand rounding)
        ref_f = bottleneck_reference(x, params, stride=stride, match_bf16=False)
        err_f = float(jnp.max(jnp.abs(out32 - ref_f)))
        assert err_f < 1e-1, f"stride={stride}: f32 reference mismatch {err_f}"

        # production path: bf16 output (halves vst count / HBM writeback)
        out16 = jax.block_until_ready(bottleneck_forward(x, ops))
        err_b = float(jnp.max(jnp.abs(out16.astype(f32) - ref_m)))
        assert err_b < 6e-2, f"stride={stride}: bf16-output mismatch {err_b}"

    print("KERNEL_OK")
</pallas_src>

<mosaic_0001>
module attributes {stable_mosaic.version = 11 : i64} {
  func.func @_bottleneck_kernel(%arg0: i32, %arg1: memref<2x16x256xf32, #tpu.memory_space<vmem>>, %arg2: memref<256x128xbf16, #tpu.memory_space<vmem>>, %arg3: memref<3x128x128xbf16, #tpu.memory_space<vmem>>, %arg4: memref<128x512xbf16, #tpu.memory_space<vmem>>, %arg5: memref<256x512xbf16, #tpu.memory_space<vmem>>, %arg6: memref<1x8xf32, #tpu.memory_space<vmem>>, %arg7: memref<1x8xf32, #tpu.memory_space<vmem>>, %arg8: memref<1x8xf32, #tpu.memory_space<vmem>>, %arg9: memref<1x8xf32, #tpu.memory_space<vmem>>, %arg10: memref<1x32xf32, #tpu.memory_space<vmem>>, %arg11: memref<1x32xf32, #tpu.memory_space<vmem>>, %arg12: memref<1x32xf32, #tpu.memory_space<vmem>>, %arg13: memref<1x32xf32, #tpu.memory_space<vmem>>, %arg14: memref<128x8xf32, #tpu.memory_space<vmem>>, %arg15: memref<8x128xf32, #tpu.memory_space<vmem>>, %arg16: memref<128x8xf32, #tpu.memory_space<vmem>>, %arg17: memref<8x128xf32, #tpu.memory_space<vmem>>, %arg18: memref<512x32xf32, #tpu.memory_space<vmem>>, %arg19: memref<32x512xf32, #tpu.memory_space<vmem>>, %arg20: memref<32x512xf32, #tpu.memory_space<vmem>>, %arg21: memref<2x18x128xf32, #tpu.memory_space<vmem>>) attributes {dimension_semantics = [#tpu.dimension_semantics<arbitrary>], iteration_bounds = array<i64: 1>, scalar_prefetch = 0 : i64, scratch_operands = 1 : i64, tpu.core_type = #tpu.core_type<tc>, window_params = [{pipeline_mode = #tpu.pipeline_mode<synchronous>, transform_indices = @transform_0, window_bounds = array<i64: 2, 16, 256>}, {pipeline_mode = #tpu.pipeline_mode<synchronous>, transform_indices = @transform_1, window_bounds = array<i64: 256, 128>}, {pipeline_mode = #tpu.pipeline_mode<synchronous>, transform_indices = @transform_2, window_bounds = array<i64: 3, 128, 128>}, {pipeline_mode = #tpu.pipeline_mode<synchronous>, transform_indices = @transform_3, window_bounds = array<i64: 128, 512>}, {pipeline_mode = #tpu.pipeline_mode<synchronous>, transform_indices = @transform_4, window_bounds = array<i64: 256, 512>}, {pipeline_mode = #tpu.pipeline_mode<synchronous>, transform_indices = @transform_5, window_bounds = array<i64: 1, 8>}, {pipeline_mode = #tpu.pipeline_mode<synchronous>, transform_indices = @transform_6, window_bounds = array<i64: 1, 8>}, {pipeline_mode = #tpu.pipeline_mode<synchronous>, transform_indices = @transform_7, window_bounds = array<i64: 1, 8>}, {pipeline_mode = #tpu.pipeline_mode<synchronous>, transform_indices = @transform_8, window_bounds = array<i64: 1, 8>}, {pipeline_mode = #tpu.pipeline_mode<synchronous>, transform_indices = @transform_9, window_bounds = array<i64: 1, 32>}, {pipeline_mode = #tpu.pipeline_mode<synchronous>, transform_indices = @transform_10, window_bounds = array<i64: 1, 32>}, {pipeline_mode = #tpu.pipeline_mode<synchronous>, transform_indices = @transform_11, window_bounds = array<i64: 1, 32>}, {pipeline_mode = #tpu.pipeline_mode<synchronous>, transform_indices = @transform_12, window_bounds = array<i64: 1, 32>}, {pipeline_mode = #tpu.pipeline_mode<synchronous>, transform_indices = @transform_13, window_bounds = array<i64: 128, 8>}, {pipeline_mode = #tpu.pipeline_mode<synchronous>, transform_indices = @transform_14, window_bounds = array<i64: 8, 128>}, {pipeline_mode = #tpu.pipeline_mode<synchronous>, transform_indices = @transform_15, window_bounds = array<i64: 128, 8>}, {pipeline_mode = #tpu.pipeline_mode<synchronous>, transform_indices = @transform_16, window_bounds = array<i64: 8, 128>}, {pipeline_mode = #tpu.pipeline_mode<synchronous>, transform_indices = @transform_17, window_bounds = array<i64: 512, 32>}, {pipeline_mode = #tpu.pipeline_mode<synchronous>, transform_indices = @transform_18, window_bounds = array<i64: 32, 512>}, {pipeline_mode = #tpu.pipeline_mode<synchronous>, transform_indices = @transform_19, window_bounds = array<i64: 32, 512>}]} {
    %c0 = arith.constant 0 : index
    %c0_0 = arith.constant 0 : index
    %c0_1 = arith.constant 0 : index
    %0 = vector.load %arg1[%c0, %c0_0, %c0_1] : memref<2x16x256xf32, #tpu.memory_space<vmem>>, vector<2x16x256xf32>
    %1 = vector.shape_cast %0 : vector<2x16x256xf32> to vector<32x256xf32>
    %2 = arith.truncf %1 : vector<32x256xf32> to vector<32x256xbf16>
    %c0_2 = arith.constant 0 : index
    %c0_3 = arith.constant 0 : index
    %3 = vector.load %arg2[%c0_2, %c0_3] : memref<256x128xbf16, #tpu.memory_space<vmem>>, vector<256x128xbf16>
    %cst = arith.constant dense<0.000000e+00> : vector<32x128xf32>
    %4 = tpu.matmul %2, %3, %cst {dimension_numbers = #tpu.dot_dimension_numbers<[1], [0], [0], [1], [0, 0, 1, 1], [], []>} : vector<32x256xbf16>, vector<256x128xbf16>, vector<32x128xf32> -> vector<32x128xf32>
    %c0_4 = arith.constant 0 : index
    %c0_5 = arith.constant 0 : index
    %5 = vector.load %arg6[%c0_4, %c0_5] : memref<1x8xf32, #tpu.memory_space<vmem>>, vector<1x8xf32>
    %c0_6 = arith.constant 0 : index
    %c0_7 = arith.constant 0 : index
    %6 = vector.load %arg7[%c0_6, %c0_7] : memref<1x8xf32, #tpu.memory_space<vmem>>, vector<1x8xf32>
    %c0_8 = arith.constant 0 : index
    %c0_9 = arith.constant 0 : index
    %7 = vector.load %arg14[%c0_8, %c0_9] : memref<128x8xf32, #tpu.memory_space<vmem>>, vector<128x8xf32>
    %c0_10 = arith.constant 0 : index
    %c0_11 = arith.constant 0 : index
    %8 = vector.load %arg15[%c0_10, %c0_11] : memref<8x128xf32, #tpu.memory_space<vmem>>, vector<8x128xf32>
    %cst_12 = arith.constant dense<0.000000e+00> : vector<128xf32>
    %9 = vector.multi_reduction <add>, %4, %cst_12 [0] : vector<32x128xf32> to vector<128xf32>
    %10 = vector.shape_cast %9 : vector<128xf32> to vector<1x128xf32>
    %11 = arith.mulf %4, %4 : vector<32x128xf32>
    %cst_13 = arith.constant dense<0.000000e+00> : vector<128xf32>
    %12 = vector.multi_reduction <add>, %11, %cst_13 [0] : vector<32x128xf32> to vector<128xf32>
    %13 = vector.shape_cast %12 : vector<128xf32> to vector<1x128xf32>
    %14 = tpu.concatenate %10, %13 in 0 : vector<1x128xf32>, vector<1x128xf32> -> vector<2x128xf32>
    %cst_14 = arith.constant dense<0.000000e+00> : vector<2x8xf32>
    %15 = tpu.matmul %14, %7, %cst_14 {dimension_numbers = #tpu.dot_dimension_numbers<[1], [0], [0], [1], [0, 0, 1, 1], [], []>, precision = #tpu.contract_precision<fp32>} : vector<2x128xf32>, vector<128x8xf32>, vector<2x8xf32> -> vector<2x8xf32>
    %16 = vector.extract_strided_slice %15 {offsets = [0, 0], sizes = [1, 8], strides = [1, 1]} : vector<2x8xf32> to vector<1x8xf32>
    %cst_15 = arith.constant 5.120000e+02 : f32
    %17 = vector.broadcast %cst_15 : f32 to vector<1x8xf32>
    %18 = arith.divf %16, %17 : vector<1x8xf32>
    %19 = vector.extract_strided_slice %15 {offsets = [1, 0], sizes = [1, 8], strides = [1, 1]} : vector<2x8xf32> to vector<1x8xf32>
    %cst_16 = arith.constant 5.120000e+02 : f32
    %20 = vector.broadcast %cst_16 : f32 to vector<1x8xf32>
    %21 = arith.divf %19, %20 : vector<1x8xf32>
    %22 = arith.mulf %18, %18 : vector<1x8xf32>
    %23 = arith.subf %21, %22 : vector<1x8xf32>
    %cst_17 = arith.constant 9.99999974E-6 : f32
    %24 = vector.broadcast %cst_17 : f32 to vector<1x8xf32>
    %25 = arith.addf %23, %24 : vector<1x8xf32>
    %26 = math.rsqrt %25 : vector<1x8xf32>
    %27 = arith.mulf %5, %26 : vector<1x8xf32>
    %28 = arith.mulf %18, %27 : vector<1x8xf32>
    %29 = arith.subf %6, %28 : vector<1x8xf32>
    %30 = tpu.concatenate %27, %29 in 0 : vector<1x8xf32>, vector<1x8xf32> -> vector<2x8xf32>
    %cst_18 = arith.constant dense<0.000000e+00> : vector<2x128xf32>
    %31 = tpu.matmul %30, %8, %cst_18 {dimension_numbers = #tpu.dot_dimension_numbers<[1], [0], [0], [1], [0, 0, 1, 1], [], []>, precision = #tpu.contract_precision<fp32>} : vector<2x8xf32>, vector<8x128xf32>, vector<2x128xf32> -> vector<2x128xf32>
    %32 = vector.extract_strided_slice %31 {offsets = [0, 0], sizes = [1, 128], strides = [1, 1]} : vector<2x128xf32> to vector<1x128xf32>
    %33 = vector.broadcast %32 : vector<1x128xf32> to vector<32x128xf32>
    %34 = arith.mulf %4, %33 : vector<32x128xf32>
    %35 = vector.extract_strided_slice %31 {offsets = [1, 0], sizes = [1, 128], strides = [1, 1]} : vector<2x128xf32> to vector<1x128xf32>
    %36 = vector.broadcast %35 : vector<1x128xf32> to vector<32x128xf32>
    %37 = arith.addf %34, %36 : vector<32x128xf32>
    %cst_19 = arith.constant 0.000000e+00 : f32
    %38 = vector.broadcast %cst_19 : f32 to vector<32x128xf32>
    %39 = arith.maximumf %37, %38 : vector<32x128xf32>
    %40 = vector.shape_cast %39 : vector<32x128xf32> to vector<2x16x128xf32>
    %c0_20 = arith.constant 0 : index
    %c1 = arith.constant 1 : index
    %c0_21 = arith.constant 0 : index
    %41 = vector.load %arg21[%c0_20, %c1, %c0_21] : memref<2x18x128xf32, #tpu.memory_space<vmem>>, vector<2x16x128xf32>
    tpu.vector_store %arg21[%c0_20, %c1, %c0_21], %40 {strides = array<i32>} : memref<2x18x128xf32, #tpu.memory_space<vmem>>, vector<2x16x128xf32>,
    %cst_22 = arith.constant 0.000000e+00 : f32
    %42 = vector.broadcast %cst_22 : f32 to vector<2x1x128xf32>
    %c0_23 = arith.constant 0 : index
    %c0_24 = arith.constant 0 : index
    %c0_25 = arith.constant 0 : index
    %43 = vector.load %arg21[%c0_23, %c0_24, %c0_25] : memref<2x18x128xf32, #tpu.memory_space<vmem>>, vector<2x1x128xf32>
    tpu.vector_store %arg21[%c0_23, %c0_24, %c0_25], %42 {strides = array<i32>} : memref<2x18x128xf32, #tpu.memory_space<vmem>>, vector<2x1x128xf32>,
    %c0_26 = arith.constant 0 : index
    %c17 = arith.constant 17 : index
    %c0_27 = arith.constant 0 : index
    %44 = vector.load %arg21[%c0_26, %c17, %c0_27] : memref<2x18x128xf32, #tpu.memory_space<vmem>>, vector<2x1x128xf32>
    tpu.vector_store %arg21[%c0_26, %c17, %c0_27], %42 {strides = array<i32>} : memref<2x18x128xf32, #tpu.memory_space<vmem>>, vector<2x1x128xf32>,
    %c0_28 = arith.constant 0 : index
    %c0_29 = arith.constant 0 : index
    %c0_30 = arith.constant 0 : index
    %45 = vector.load %arg21[%c0_28, %c0_29, %c0_30] : memref<2x18x128xf32, #tpu.memory_space<vmem>>, vector<2x16x128xf32>
    %46 = vector.shape_cast %45 : vector<2x16x128xf32> to vector<32x128xf32>
    %47 = arith.truncf %46 : vector<32x128xf32> to vector<32x128xbf16>
    %c0_31 = arith.constant 0 : index
    %c0_32 = arith.constant 0 : index
    %c0_33 = arith.constant 0 : index
    %48 = vector.load %arg3[%c0_31, %c0_32, %c0_33] : memref<3x128x128xbf16, #tpu.memory_space<vmem>>, vector<1x128x128xbf16>
    %49 = vector.shape_cast %48 : vector<1x128x128xbf16> to vector<128x128xbf16>
    %cst_34 = arith.constant dense<0.000000e+00> : vector<32x128xf32>
    %50 = tpu.matmul %47, %49, %cst_34 {dimension_numbers = #tpu.dot_dimension_numbers<[1], [0], [0], [1], [0, 0, 1, 1], [], []>} : vector<32x128xbf16>, vector<128x128xbf16>, vector<32x128xf32> -> vector<32x128xf32>
    %c0_35 = arith.constant 0 : index
    %c1_36 = arith.constant 1 : index
    %c0_37 = arith.constant 0 : index
    %51 = vector.load %arg21[%c0_35, %c1_36, %c0_37] : memref<2x18x128xf32, #tpu.memory_space<vmem>>, vector<2x16x128xf32>
    %52 = vector.shape_cast %51 : vector<2x16x128xf32> to vector<32x128xf32>
    %53 = arith.truncf %52 : vector<32x128xf32> to vector<32x128xbf16>
    %c1_38 = arith.constant 1 : index
    %c0_39 = arith.constant 0 : index
    %c0_40 = arith.constant 0 : index
    %54 = vector.load %arg3[%c1_38, %c0_39, %c0_40] : memref<3x128x128xbf16, #tpu.memory_space<vmem>>, vector<1x128x128xbf16>
    %55 = vector.shape_cast %54 : vector<1x128x128xbf16> to vector<128x128xbf16>
    %cst_41 = arith.constant dense<0.000000e+00> : vector<32x128xf32>
    %56 = tpu.matmul %53, %55, %cst_41 {dimension_numbers = #tpu.dot_dimension_numbers<[1], [0], [0], [1], [0, 0, 1, 1], [], []>} : vector<32x128xbf16>, vector<128x128xbf16>, vector<32x128xf32> -> vector<32x128xf32>
    %57 = arith.addf %50, %56 : vector<32x128xf32>
    %c0_42 = arith.constant 0 : index
    %c2 = arith.constant 2 : index
    %c0_43 = arith.constant 0 : index
    %58 = vector.load %arg21[%c0_42, %c2, %c0_43] : memref<2x18x128xf32, #tpu.memory_space<vmem>>, vector<2x16x128xf32>
    %59 = vector.shape_cast %58 : vector<2x16x128xf32> to vector<32x128xf32>
    %60 = arith.truncf %59 : vector<32x128xf32> to vector<32x128xbf16>
    %c2_44 = arith.constant 2 : index
    %c0_45 = arith.constant 0 : index
    %c0_46 = arith.constant 0 : index
    %61 = vector.load %arg3[%c2_44, %c0_45, %c0_46] : memref<3x128x128xbf16, #tpu.memory_space<vmem>>, vector<1x128x128xbf16>
    %62 = vector.shape_cast %61 : vector<1x128x128xbf16> to vector<128x128xbf16>
    %cst_47 = arith.constant dense<0.000000e+00> : vector<32x128xf32>
    %63 = tpu.matmul %60, %62, %cst_47 {dimension_numbers = #tpu.dot_dimension_numbers<[1], [0], [0], [1], [0, 0, 1, 1], [], []>} : vector<32x128xbf16>, vector<128x128xbf16>, vector<32x128xf32> -> vector<32x128xf32>
    %64 = arith.addf %57, %63 : vector<32x128xf32>
    %c0_48 = arith.constant 0 : index
    %c0_49 = arith.constant 0 : index
    %65 = vector.load %arg8[%c0_48, %c0_49] : memref<1x8xf32, #tpu.memory_space<vmem>>, vector<1x8xf32>
    %c0_50 = arith.constant 0 : index
    %c0_51 = arith.constant 0 : index
    %66 = vector.load %arg9[%c0_50, %c0_51] : memref<1x8xf32, #tpu.memory_space<vmem>>, vector<1x8xf32>
    %c0_52 = arith.constant 0 : index
    %c0_53 = arith.constant 0 : index
    %67 = vector.load %arg16[%c0_52, %c0_53] : memref<128x8xf32, #tpu.memory_space<vmem>>, vector<128x8xf32>
    %c0_54 = arith.constant 0 : index
    %c0_55 = arith.constant 0 : index
    %68 = vector.load %arg17[%c0_54, %c0_55] : memref<8x128xf32, #tpu.memory_space<vmem>>, vector<8x128xf32>
    %cst_56 = arith.constant dense<0.000000e+00> : vector<128xf32>
    %69 = vector.multi_reduction <add>, %64, %cst_56 [0] : vector<32x128xf32> to vector<128xf32>
    %70 = vector.shape_cast %69 : vector<128xf32> to vector<1x128xf32>
    %71 = arith.mulf %64, %64 : vector<32x128xf32>
    %cst_57 = arith.constant dense<0.000000e+00> : vector<128xf32>
    %72 = vector.multi_reduction <add>, %71, %cst_57 [0] : vector<32x128xf32> to vector<128xf32>
    %73 = vector.shape_cast %72 : vector<128xf32> to vector<1x128xf32>
    %74 = tpu.concatenate %70, %73 in 0 : vector<1x128xf32>, vector<1x128xf32> -> vector<2x128xf32>
    %cst_58 = arith.constant dense<0.000000e+00> : vector<2x8xf32>
    %75 = tpu.matmul %74, %67, %cst_58 {dimension_numbers = #tpu.dot_dimension_numbers<[1], [0], [0], [1], [0, 0, 1, 1], [], []>, precision = #tpu.contract_precision<fp32>} : vector<2x128xf32>, vector<128x8xf32>, vector<2x8xf32> -> vector<2x8xf32>
    %76 = vector.extract_strided_slice %75 {offsets = [0, 0], sizes = [1, 8], strides = [1, 1]} : vector<2x8xf32> to vector<1x8xf32>
    %cst_59 = arith.constant 5.120000e+02 : f32
    %77 = vector.broadcast %cst_59 : f32 to vector<1x8xf32>
    %78 = arith.divf %76, %77 : vector<1x8xf32>
    %79 = vector.extract_strided_slice %75 {offsets = [1, 0], sizes = [1, 8], strides = [1, 1]} : vector<2x8xf32> to vector<1x8xf32>
    %cst_60 = arith.constant 5.120000e+02 : f32
    %80 = vector.broadcast %cst_60 : f32 to vector<1x8xf32>
    %81 = arith.divf %79, %80 : vector<1x8xf32>
    %82 = arith.mulf %78, %78 : vector<1x8xf32>
    %83 = arith.subf %81, %82 : vector<1x8xf32>
    %cst_61 = arith.constant 9.99999974E-6 : f32
    %84 = vector.broadcast %cst_61 : f32 to vector<1x8xf32>
    %85 = arith.addf %83, %84 : vector<1x8xf32>
    %86 = math.rsqrt %85 : vector<1x8xf32>
    %87 = arith.mulf %65, %86 : vector<1x8xf32>
    %88 = arith.mulf %78, %87 : vector<1x8xf32>
    %89 = arith.subf %66, %88 : vector<1x8xf32>
    %90 = tpu.concatenate %87, %89 in 0 : vector<1x8xf32>, vector<1x8xf32> -> vector<2x8xf32>
    %cst_62 = arith.constant dense<0.000000e+00> : vector<2x128xf32>
    %91 = tpu.matmul %90, %68, %cst_62 {dimension_numbers = #tpu.dot_dimension_numbers<[1], [0], [0], [1], [0, 0, 1, 1], [], []>, precision = #tpu.contract_precision<fp32>} : vector<2x8xf32>, vector<8x128xf32>, vector<2x128xf32> -> vector<2x128xf32>
    %92 = vector.extract_strided_slice %91 {offsets = [0, 0], sizes = [1, 128], strides = [1, 1]} : vector<2x128xf32> to vector<1x128xf32>
    %93 = vector.broadcast %92 : vector<1x128xf32> to vector<32x128xf32>
    %94 = arith.mulf %64, %93 : vector<32x128xf32>
    %95 = vector.extract_strided_slice %91 {offsets = [1, 0], sizes = [1, 128], strides = [1, 1]} : vector<2x128xf32> to vector<1x128xf32>
    %96 = vector.broadcast %95 : vector<1x128xf32> to vector<32x128xf32>
    %97 = arith.addf %94, %96 : vector<32x128xf32>
    %cst_63 = arith.constant 0.000000e+00 : f32
    %98 = vector.broadcast %cst_63 : f32 to vector<32x128xf32>
    %99 = arith.maximumf %97, %98 : vector<32x128xf32>
    %100 = arith.truncf %99 : vector<32x128xf32> to vector<32x128xbf16>
    %c0_64 = arith.constant 0 : index
    %c0_65 = arith.constant 0 : index
    %101 = vector.load %arg4[%c0_64, %c0_65] : memref<128x512xbf16, #tpu.memory_space<vmem>>, vector<128x512xbf16>
    %cst_66 = arith.constant dense<0.000000e+00> : vector<32x512xf32>
    %102 = tpu.matmul %100, %101, %cst_66 {dimension_numbers = #tpu.dot_dimension_numbers<[1], [0], [0], [1], [0, 0, 1, 1], [], []>} : vector<32x128xbf16>, vector<128x512xbf16>, vector<32x512xf32> -> vector<32x512xf32>
    %c0_67 = arith.constant 0 : index
    %c0_68 = arith.constant 0 : index
    %103 = vector.load %arg10[%c0_67, %c0_68] : memref<1x32xf32, #tpu.memory_space<vmem>>, vector<1x32xf32>
    %c0_69 = arith.constant 0 : index
    %c0_70 = arith.constant 0 : index
    %104 = vector.load %arg11[%c0_69, %c0_70] : memref<1x32xf32, #tpu.memory_space<vmem>>, vector<1x32xf32>
    %c0_71 = arith.constant 0 : index
    %c0_72 = arith.constant 0 : index
    %105 = vector.load %arg18[%c0_71, %c0_72] : memref<512x32xf32, #tpu.memory_space<vmem>>, vector<512x32xf32>
    %c0_73 = arith.constant 0 : index
    %c0_74 = arith.constant 0 : index
    %106 = vector.load %arg19[%c0_73, %c0_74] : memref<32x512xf32, #tpu.memory_space<vmem>>, vector<32x512xf32>
    %cst_75 = arith.constant dense<0.000000e+00> : vector<512xf32>
    %107 = vector.multi_reduction <add>, %102, %cst_75 [0] : vector<32x512xf32> to vector<512xf32>
    %108 = vector.shape_cast %107 : vector<512xf32> to vector<1x512xf32>
    %109 = arith.mulf %102, %102 : vector<32x512xf32>
    %cst_76 = arith.constant dense<0.000000e+00> : vector<512xf32>
    %110 = vector.multi_reduction <add>, %109, %cst_76 [0] : vector<32x512xf32> to vector<512xf32>
    %111 = vector.shape_cast %110 : vector<512xf32> to vector<1x512xf32>
    %112 = tpu.concatenate %108, %111 in 0 : vector<1x512xf32>, vector<1x512xf32> -> vector<2x512xf32>
    %cst_77 = arith.constant dense<0.000000e+00> : vector<2x32xf32>
    %113 = tpu.matmul %112, %105, %cst_77 {dimension_numbers = #tpu.dot_dimension_numbers<[1], [0], [0], [1], [0, 0, 1, 1], [], []>, precision = #tpu.contract_precision<fp32>} : vector<2x512xf32>, vector<512x32xf32>, vector<2x32xf32> -> vector<2x32xf32>
    %114 = vector.extract_strided_slice %113 {offsets = [0, 0], sizes = [1, 32], strides = [1, 1]} : vector<2x32xf32> to vector<1x32xf32>
    %cst_78 = arith.constant 5.120000e+02 : f32
    %115 = vector.broadcast %cst_78 : f32 to vector<1x32xf32>
    %116 = arith.divf %114, %115 : vector<1x32xf32>
    %117 = vector.extract_strided_slice %113 {offsets = [1, 0], sizes = [1, 32], strides = [1, 1]} : vector<2x32xf32> to vector<1x32xf32>
    %cst_79 = arith.constant 5.120000e+02 : f32
    %118 = vector.broadcast %cst_79 : f32 to vector<1x32xf32>
    %119 = arith.divf %117, %118 : vector<1x32xf32>
    %120 = arith.mulf %116, %116 : vector<1x32xf32>
    %121 = arith.subf %119, %120 : vector<1x32xf32>
    %cst_80 = arith.constant 9.99999974E-6 : f32
    %122 = vector.broadcast %cst_80 : f32 to vector<1x32xf32>
    %123 = arith.addf %121, %122 : vector<1x32xf32>
    %124 = math.rsqrt %123 : vector<1x32xf32>
    %125 = arith.mulf %103, %124 : vector<1x32xf32>
    %126 = arith.mulf %116, %125 : vector<1x32xf32>
    %127 = arith.subf %104, %126 : vector<1x32xf32>
    %128 = tpu.concatenate %125, %127 in 0 : vector<1x32xf32>, vector<1x32xf32> -> vector<2x32xf32>
    %cst_81 = arith.constant dense<0.000000e+00> : vector<2x512xf32>
    %129 = tpu.matmul %128, %106, %cst_81 {dimension_numbers = #tpu.dot_dimension_numbers<[1], [0], [0], [1], [0, 0, 1, 1], [], []>, precision = #tpu.contract_precision<fp32>} : vector<2x32xf32>, vector<32x512xf32>, vector<2x512xf32> -> vector<2x512xf32>
    %130 = vector.extract_strided_slice %129 {offsets = [0, 0], sizes = [1, 512], strides = [1, 1]} : vector<2x512xf32> to vector<1x512xf32>
    %131 = vector.broadcast %130 : vector<1x512xf32> to vector<32x512xf32>
    %132 = arith.mulf %102, %131 : vector<32x512xf32>
    %133 = vector.extract_strided_slice %129 {offsets = [1, 0], sizes = [1, 512], strides = [1, 1]} : vector<2x512xf32> to vector<1x512xf32>
    %134 = vector.broadcast %133 : vector<1x512xf32> to vector<32x512xf32>
    %135 = arith.addf %132, %134 : vector<32x512xf32>
    %c0_82 = arith.constant 0 : index
    %c0_83 = arith.constant 0 : index
    %136 = vector.load %arg5[%c0_82, %c0_83] : memref<256x512xbf16, #tpu.memory_space<vmem>>, vector<256x512xbf16>
    %cst_84 = arith.constant dense<0.000000e+00> : vector<32x512xf32>
    %137 = tpu.matmul %2, %136, %cst_84 {dimension_numbers = #tpu.dot_dimension_numbers<[1], [0], [0], [1], [0, 0, 1, 1], [], []>} : vector<32x256xbf16>, vector<256x512xbf16>, vector<32x512xf32> -> vector<32x512xf32>
    %c0_85 = arith.constant 0 : index
    %c0_86 = arith.constant 0 : index
    %138 = vector.load %arg12[%c0_85, %c0_86] : memref<1x32xf32, #tpu.memory_space<vmem>>, vector<1x32xf32>
    %c0_87 = arith.constant 0 : index
    %c0_88 = arith.constant 0 : index
    %139 = vector.load %arg13[%c0_87, %c0_88] : memref<1x32xf32, #tpu.memory_space<vmem>>, vector<1x32xf32>
    %c0_89 = arith.constant 0 : index
    %c0_90 = arith.constant 0 : index
    %140 = vector.load %arg18[%c0_89, %c0_90] : memref<512x32xf32, #tpu.memory_space<vmem>>, vector<512x32xf32>
    %c0_91 = arith.constant 0 : index
    %c0_92 = arith.constant 0 : index
    %141 = vector.load %arg19[%c0_91, %c0_92] : memref<32x512xf32, #tpu.memory_space<vmem>>, vector<32x512xf32>
    %cst_93 = arith.constant dense<0.000000e+00> : vector<512xf32>
    %142 = vector.multi_reduction <add>, %137, %cst_93 [0] : vector<32x512xf32> to vector<512xf32>
    %143 = vector.shape_cast %142 : vector<512xf32> to vector<1x512xf32>
    %144 = arith.mulf %137, %137 : vector<32x512xf32>
    %cst_94 = arith.constant dense<0.000000e+00> : vector<512xf32>
    %145 = vector.multi_reduction <add>, %144, %cst_94 [0] : vector<32x512xf32> to vector<512xf32>
    %146 = vector.shape_cast %145 : vector<512xf32> to vector<1x512xf32>
    %147 = tpu.concatenate %143, %146 in 0 : vector<1x512xf32>, vector<1x512xf32> -> vector<2x512xf32>
    %cst_95 = arith.constant dense<0.000000e+00> : vector<2x32xf32>
    %148 = tpu.matmul %147, %140, %cst_95 {dimension_numbers = #tpu.dot_dimension_numbers<[1], [0], [0], [1], [0, 0, 1, 1], [], []>, precision = #tpu.contract_precision<fp32>} : vector<2x512xf32>, vector<512x32xf32>, vector<2x32xf32> -> vector<2x32xf32>
    %149 = vector.extract_strided_slice %148 {offsets = [0, 0], sizes = [1, 32], strides = [1, 1]} : vector<2x32xf32> to vector<1x32xf32>
    %cst_96 = arith.constant 5.120000e+02 : f32
    %150 = vector.broadcast %cst_96 : f32 to vector<1x32xf32>
    %151 = arith.divf %149, %150 : vector<1x32xf32>
    %152 = vector.extract_strided_slice %148 {offsets = [1, 0], sizes = [1, 32], strides = [1, 1]} : vector<2x32xf32> to vector<1x32xf32>
    %cst_97 = arith.constant 5.120000e+02 : f32
    %153 = vector.broadcast %cst_97 : f32 to vector<1x32xf32>
    %154 = arith.divf %152, %153 : vector<1x32xf32>
    %155 = arith.mulf %151, %151 : vector<1x32xf32>
    %156 = arith.subf %154, %155 : vector<1x32xf32>
    %cst_98 = arith.constant 9.99999974E-6 : f32
    %157 = vector.broadcast %cst_98 : f32 to vector<1x32xf32>
    %158 = arith.addf %156, %157 : vector<1x32xf32>
    %159 = math.rsqrt %158 : vector<1x32xf32>
    %160 = arith.mulf %138, %159 : vector<1x32xf32>
    %161 = arith.mulf %151, %160 : vector<1x32xf32>
    %162 = arith.subf %139, %161 : vector<1x32xf32>
    %163 = tpu.concatenate %160, %162 in 0 : vector<1x32xf32>, vector<1x32xf32> -> vector<2x32xf32>
    %cst_99 = arith.constant dense<0.000000e+00> : vector<2x512xf32>
    %164 = tpu.matmul %163, %141, %cst_99 {dimension_numbers = #tpu.dot_dimension_numbers<[1], [0], [0], [1], [0, 0, 1, 1], [], []>, precision = #tpu.contract_precision<fp32>} : vector<2x32xf32>, vector<32x512xf32>, vector<2x512xf32> -> vector<2x512xf32>
    %165 = vector.extract_strided_slice %164 {offsets = [0, 0], sizes = [1, 512], strides = [1, 1]} : vector<2x512xf32> to vector<1x512xf32>
    %166 = vector.broadcast %165 : vector<1x512xf32> to vector<32x512xf32>
    %167 = arith.mulf %137, %166 : vector<32x512xf32>
    %168 = vector.extract_strided_slice %164 {offsets = [1, 0], sizes = [1, 512], strides = [1, 1]} : vector<2x512xf32> to vector<1x512xf32>
    %169 = vector.broadcast %168 : vector<1x512xf32> to vector<32x512xf32>
    %170 = arith.addf %167, %169 : vector<32x512xf32>
    %171 = arith.addf %135, %170 : vector<32x512xf32>
    %cst_100 = arith.constant 0.000000e+00 : f32
    %172 = vector.broadcast %cst_100 : f32 to vector<32x512xf32>
    %173 = arith.maximumf %171, %172 : vector<32x512xf32>
    %c0_101 = arith.constant 0 : index
    %c0_102 = arith.constant 0 : index
    %174 = vector.load %arg20[%c0_101, %c0_102] : memref<32x512xf32, #tpu.memory_space<vmem>>, vector<32x512xf32>
    tpu.vector_store %arg20[%c0_101, %c0_102], %173 {strides = array<i32>} : memref<32x512xf32, #tpu.memory_space<vmem>>, vector<32x512xf32>,
    return
  }
  func.func @transform_0(%arg0: i32) -> (i32, i32, i32) {
    %c0_i32 = arith.constant 0 : i32
    %c0_i32_0 = arith.constant 0 : i32
    %c0_i32_1 = arith.constant 0 : i32
    %c0_i32_2 = arith.constant 0 : i32
    return %c0_i32, %c0_i32_0, %c0_i32_1 : i32, i32, i32
  }
  func.func @transform_1(%arg0: i32) -> (i32, i32) {
    %c0_i32 = arith.constant 0 : i32
    %c0_i32_0 = arith.constant 0 : i32
    %c0_i32_1 = arith.constant 0 : i32
    return %c0_i32, %c0_i32_0 : i32, i32
  }
  func.func @transform_2(%arg0: i32) -> (i32, i32, i32) {
    %c0_i32 = arith.constant 0 : i32
    %c0_i32_0 = arith.constant 0 : i32
    %c0_i32_1 = arith.constant 0 : i32
    %c0_i32_2 = arith.constant 0 : i32
    return %c0_i32, %c0_i32_0, %c0_i32_1 : i32, i32, i32
  }
  func.func @transform_3(%arg0: i32) -> (i32, i32) {
    %c0_i32 = arith.constant 0 : i32
    %c0_i32_0 = arith.constant 0 : i32
    %c0_i32_1 = arith.constant 0 : i32
    return %c0_i32, %c0_i32_0 : i32, i32
  }
  func.func @transform_4(%arg0: i32) -> (i32, i32) {
    %c0_i32 = arith.constant 0 : i32
    %c0_i32_0 = arith.constant 0 : i32
    %c0_i32_1 = arith.constant 0 : i32
    return %c0_i32, %c0_i32_0 : i32, i32
  }
  func.func @transform_5(%arg0: i32) -> (i32, i32) {
    %c0_i32 = arith.constant 0 : i32
    %c0_i32_0 = arith.constant 0 : i32
    %c0_i32_1 = arith.constant 0 : i32
    return %c0_i32, %c0_i32_0 : i32, i32
  }
  func.func @transform_6(%arg0: i32) -> (i32, i32) {
    %c0_i32 = arith.constant 0 : i32
    %c0_i32_0 = arith.constant 0 : i32
    %c0_i32_1 = arith.constant 0 : i32
    return %c0_i32, %c0_i32_0 : i32, i32
  }
  func.func @transform_7(%arg0: i32) -> (i32, i32) {
    %c0_i32 = arith.constant 0 : i32
    %c0_i32_0 = arith.constant 0 : i32
    %c0_i32_1 = arith.constant 0 : i32
    return %c0_i32, %c0_i32_0 : i32, i32
  }
  func.func @transform_8(%arg0: i32) -> (i32, i32) {
    %c0_i32 = arith.constant 0 : i32
    %c0_i32_0 = arith.constant 0 : i32
    %c0_i32_1 = arith.constant 0 : i32
    return %c0_i32, %c0_i32_0 : i32, i32
  }
  func.func @transform_9(%arg0: i32) -> (i32, i32) {
    %c0_i32 = arith.constant 0 : i32
    %c0_i32_0 = arith.constant 0 : i32
    %c0_i32_1 = arith.constant 0 : i32
    return %c0_i32, %c0_i32_0 : i32, i32
  }
  func.func @transform_10(%arg0: i32) -> (i32, i32) {
    %c0_i32 = arith.constant 0 : i32
    %c0_i32_0 = arith.constant 0 : i32
    %c0_i32_1 = arith.constant 0 : i32
    return %c0_i32, %c0_i32_0 : i32, i32
  }
  func.func @transform_11(%arg0: i32) -> (i32, i32) {
    %c0_i32 = arith.constant 0 : i32
    %c0_i32_0 = arith.constant 0 : i32
    %c0_i32_1 = arith.constant 0 : i32
    return %c0_i32, %c0_i32_0 : i32, i32
  }
  func.func @transform_12(%arg0: i32) -> (i32, i32) {
    %c0_i32 = arith.constant 0 : i32
    %c0_i32_0 = arith.constant 0 : i32
    %c0_i32_1 = arith.constant 0 : i32
    return %c0_i32, %c0_i32_0 : i32, i32
  }
  func.func @transform_13(%arg0: i32) -> (i32, i32) {
    %c0_i32 = arith.constant 0 : i32
    %c0_i32_0 = arith.constant 0 : i32
    %c0_i32_1 = arith.constant 0 : i32
    return %c0_i32, %c0_i32_0 : i32, i32
  }
  func.func @transform_14(%arg0: i32) -> (i32, i32) {
    %c0_i32 = arith.constant 0 : i32
    %c0_i32_0 = arith.constant 0 : i32
    %c0_i32_1 = arith.constant 0 : i32
    return %c0_i32, %c0_i32_0 : i32, i32
  }
  func.func @transform_15(%arg0: i32) -> (i32, i32) {
    %c0_i32 = arith.constant 0 : i32
    %c0_i32_0 = arith.constant 0 : i32
    %c0_i32_1 = arith.constant 0 : i32
    return %c0_i32, %c0_i32_0 : i32, i32
  }
  func.func @transform_16(%arg0: i32) -> (i32, i32) {
    %c0_i32 = arith.constant 0 : i32
    %c0_i32_0 = arith.constant 0 : i32
    %c0_i32_1 = arith.constant 0 : i32
    return %c0_i32, %c0_i32_0 : i32, i32
  }
  func.func @transform_17(%arg0: i32) -> (i32, i32) {
    %c0_i32 = arith.constant 0 : i32
    %c0_i32_0 = arith.constant 0 : i32
    %c0_i32_1 = arith.constant 0 : i32
    return %c0_i32, %c0_i32_0 : i32, i32
  }
  func.func @transform_18(%arg0: i32) -> (i32, i32) {
    %c0_i32 = arith.constant 0 : i32
    %c0_i32_0 = arith.constant 0 : i32
    %c0_i32_1 = arith.constant 0 : i32
    return %c0_i32, %c0_i32_0 : i32, i32
  }
  func.func @transform_19(%arg0: i32) -> (i32, i32) {
    %c0_i32 = arith.constant 0 : i32
    %c0_i32_0 = arith.constant 0 : i32
    %c0_i32_1 = arith.constant 0 : i32
    return %c0_i32, %c0_i32_0 : i32, i32
  }
}

</mosaic_0001>

<bundles_post_ra>
// kernel: tpu_custom_call.1
= control target key start
LH: loop header
LB: loop body
LE: loop exit
PB: predicated region body
PF: predicated region fallthrough
CT: control target
= control target key end

     0   :  { %s17414_s0 = inlined_call_operand.hbm [shape: f32[2,16,256], index: 0, kind: input, shape index: {}]   ;;  %s17415_s1 = inlined_call_operand.hbm [shape: bf16[256,128], index: 1, kind: input, shape index: {}]   ;;  %s17416_s2 = inlined_call_operand.hbm [shape: bf16[3,128,128], index: 2, kind: input, shape index: {}]   ;;  %s17417_s3 = inlined_call_operand.vmem [shape: bf16[128,512], index: 3, kind: input, shape index: {}]   ;;  %s17418_s4 = inlined_call_operand.vmem [shape: bf16[256,512], index: 4, kind: input, shape index: {}]   ;;  %s17419_s5 = inlined_call_operand.vmem [shape: f32[1,8], index: 5, kind: input, shape index: {}]   ;;  %s17420_s6 = inlined_call_operand.vmem [shape: f32[1,8], index: 6, kind: input, shape index: {}]   ;;  %s17421_s7 = inlined_call_operand.vmem [shape: f32[1,8], index: 7, kind: input, shape index: {}]   ;;  %s17422_s8 = inlined_call_operand.vmem [shape: f32[1,8], index: 8, kind: input, shape index: {}]   ;;  %s17423_s9 = inlined_call_operand.vmem [shape: f32[1,32], index: 9, kind: input, shape index: {}]   ;;  %s17424_s10 = inlined_call_operand.vmem [shape: f32[1,32], index: 10, kind: input, shape index: {}]   ;;  %s17425_s11 = inlined_call_operand.vmem [shape: f32[1,32], index: 11, kind: input, shape index: {}]   ;;  %s17426_s12 = inlined_call_operand.vmem [shape: f32[1,32], index: 12, kind: input, shape index: {}]   ;;  %s17427_s13 = inlined_call_operand.vmem [shape: f32[128,8], index: 13, kind: input, shape index: {}]   ;;  %s17428_s14 = inlined_call_operand.vmem [shape: f32[8,128], index: 14, kind: input, shape index: {}]   ;;  %s17429_s15 = inlined_call_operand.vmem [shape: f32[128,8], index: 15, kind: input, shape index: {}]   ;;  %s17430_s16 = inlined_call_operand.vmem [shape: f32[8,128], index: 16, kind: input, shape index: {}]   ;;  %s17431_s17 = inlined_call_operand.vmem [shape: f32[512,32], index: 17, kind: input, shape index: {}]   ;;  %s17432_s18 = inlined_call_operand.hbm [shape: f32[32,512], index: 18, kind: input, shape index: {}]   ;;  %s17433_s19 = inlined_call_operand.hbm [shape: f32[32,512], index: 19, kind: output, shape index: {}]  }
   0x1   :  { %17866 = sst [smem:[#allocation187_spill]] %s17414_s0 }
   0x2   :  { %17867 = sst [smem:[#allocation188_spill]] %s17415_s1 }
   0x3   :  { %17868 = sst [smem:[#allocation189_spill]] %s17416_s2 }
   0x4   :  { %17869 = sst [smem:[#allocation190_spill]] %s17417_s3 }
   0x5   :  { %17870 = sst [smem:[#allocation191_spill]] %s17425_s11 }
   0x6   :  { %17871 = sst [smem:[#allocation192_spill]] %s17426_s12 }
   0x7   :  { %17872 = sst [smem:[#allocation193_spill]] %s17433_s19 }
   0x8   :  { %24 = vsyncpa [#allocation4], 0 }
   0x9   :  { %25 = vsyncpa [#allocation7], 0 }
   0xa   :  { %26 = vsyncpa [#allocation10], 0 }
   0xb   :  { %27 = vsyncpa [#allocation5], 0  ;;  %s13469_s0 = smov [#allocation6]   ;;  %s17873_s1 = sld [smem:[#allocation188_spill]] }
   0xc   :  { %s45_s30 = sshll.u32 %s13469_s0, 4  ;;  %s46_s30 = int_to_ptr.vmem [resolvable:$true] %s45_s30 }
  0x11   :  { %s13351_s22 = scalar_lea.hbm %s17873_s1, 2048 }
  0x12   :  { %p13352_p0 = scmp.ne.s32.totalorder %s17873_s1, %s13351_s22  ;;  %p13355_p1 = scmp.lt.u32.totalorder %s13351_s22, %s17873_s1 }
  0x14   :  { %p13357_p2 = pnand %p13355_p1, %p13352_p0 }
  0x16   :  { %13360 = shalt.err (!%p13357_p2)
}
  0x17   :  { %s13361_s3 = scalar_lea.vmem %s46_s30, 2048  ;;  %p13366_p4 = scmp.lt.s32.totalorder %s46_s30, %s46_s30 }
  0x18   :  { %p13362_p3 = scmp.ne.s32.totalorder %s46_s30, %s13361_s3  ;;  %p13367_p5 = scmp.lt.s32.totalorder %s13361_s3, %s13361_s3 }
  0x1a   :  { %p13368_p6 = por %p13367_p5, %p13366_p4 }
  0x1c   :  { %p13369_p7 = pnand %p13368_p6, %p13362_p3 }
  0x1e   :  { %13372 = shalt.err (!%p13369_p7)
}
  0x1f   :  { %s17439_s26 = smov 64   ;;  %s17440_s27 = smov 4  }
  0x20   :  { %51 = dma.hbm_to_vmem [thread:$0]  %s17873_s1, 2048, %s46_s30, [#allocation7], %s17439_s26, %s17439_s26, %s17440_s27  }
  0x21   :  { %s13472_s0 = smov [#allocation3]   ;;  %s17874_s2 = sld [smem:[#allocation187_spill]] }
  0x22   :  { %s33_s20 = sshll.u32 %s13472_s0, 4  ;;  %s34_s20 = int_to_ptr.vmem [resolvable:$true] %s33_s20 }
  0x27   :  { %s13373_s23 = scalar_lea.hbm %s17874_s2, 1024 }
  0x28   :  { %p13374_p8 = scmp.ne.s32.totalorder %s17874_s2, %s13373_s23  ;;  %p13377_p9 = scmp.lt.u32.totalorder %s13373_s23, %s17874_s2 }
  0x2a   :  { %p13379_p10 = pnand %p13377_p9, %p13374_p8 }
  0x2c   :  { %13382 = shalt.err (!%p13379_p10)
}
  0x2d   :  { %s13383_s12 = scalar_lea.vmem %s34_s20, 1024  ;;  %p13388_p12 = scmp.lt.s32.totalorder %s34_s20, %s34_s20 }
  0x2e   :  { %p13384_p11 = scmp.ne.s32.totalorder %s34_s20, %s13383_s12  ;;  %p13389_p13 = scmp.lt.s32.totalorder %s13383_s12, %s13383_s12 }
  0x30   :  { %p13390_p0 = por %p13389_p13, %p13388_p12 }
  0x32   :  { %p13391_p1 = pnand %p13390_p0, %p13384_p11 }
  0x34   :  { %13394 = shalt.err (!%p13391_p1)
}
  0x35   :  { %s13473_s30 = smov 256   ;;  %s13474_s1 = smov 16  }
  0x36   :  { %39 = dma.hbm_to_vmem [thread:$0]  %s17874_s2, 1024, %s34_s20, [#allocation4], %s13473_s30, %s13473_s30, %s13474_s1  }
  0x37   :  { %s13475_s0 = smov [#allocation8]   ;;  %s13476_s22 = smov [#allocation9]  }
  0x38   :  { %s57_s21 = sshll.u32 %s13475_s0, 4  ;;  %s99_s19 = sshll.u32 %s13476_s22, 4  ;;  %s58_s21 = int_to_ptr.vmem [resolvable:$true] %s57_s21  ;;  %s13612_s19 = int_to_ptr.vmem [resolvable:$true] %s99_s19 }
  0x39   :  { %s17875_s25 = sld [smem:[#allocation189_spill]] }
  0x3f   :  { %s13395_s12 = scalar_lea.hbm %s17875_s25, 3072 }
  0x40   :  { %p13396_p2 = scmp.ne.s32.totalorder %s17875_s25, %s13395_s12  ;;  %p13399_p3 = scmp.lt.u32.totalorder %s13395_s12, %s17875_s25 }
  0x42   :  { %p13401_p4 = pnand %p13399_p3, %p13396_p2 }
  0x44   :  { %13404 = shalt.err (!%p13401_p4)
}
  0x45   :  { %s13405_s20 = scalar_lea.vmem %s58_s21, 3072  ;;  %p13410_p6 = scmp.lt.s32.totalorder %s58_s21, %s58_s21 }
  0x46   :  { %p13406_p5 = scmp.ne.s32.totalorder %s58_s21, %s13405_s20  ;;  %p13411_p7 = scmp.lt.s32.totalorder %s13405_s20, %s13405_s20 }
  0x48   :  { %p13412_p8 = por %p13411_p7, %p13410_p6 }
  0x4a   :  { %p13413_p9 = pnand %p13412_p8, %p13406_p5 }
  0x4c   :  { %13416 = shalt.err (!%p13413_p9)
}
  0x4d   :  { %s17876_s2 = smov 4   ;;  %s17877_s30 = smov 64  }
  0x4e   :  { %63 = dma.hbm_to_vmem [thread:$0]  %s17875_s25, 3072, %s58_s21, [#allocation7], %s17877_s30, %s17877_s30, %s17876_s2  }
  0x4f   :  { %s13417_s11 = scalar_lea.hbm %s17432_s18, 2048 }
  0x50   :  { %p13418_p10 = scmp.ne.s32.totalorder %s17432_s18, %s13417_s11  ;;  %p13421_p11 = scmp.lt.u32.totalorder %s13417_s11, %s17432_s18 }
  0x52   :  { %p13423_p12 = pnand %p13421_p11, %p13418_p10 }
  0x54   :  { %13426 = shalt.err (!%p13423_p12)
}
  0x55   :  { %s13427_s24 = scalar_lea.vmem %s13612_s19, 2048  ;;  %p13432_p0 = scmp.lt.s32.totalorder %s13612_s19, %s13612_s19 }
  0x56   :  { %p13428_p13 = scmp.ne.s32.totalorder %s13612_s19, %s13427_s24  ;;  %p13433_p1 = scmp.lt.s32.totalorder %s13427_s24, %s13427_s24 }
  0x58   :  { %p13434_p2 = por %p13433_p1, %p13432_p0 }
  0x5a   :  { %p13435_p3 = pnand %p13434_p2, %p13428_p13 }
  0x5c   :  { %13438 = shalt.err (!%p13435_p3)
}
  0x5d   :  { %s13477_s21 = smov 512   ;;  %s13478_s25 = smov 32  }
  0x5e   :  { %105 = dma.hbm_to_vmem [thread:$0]  %s17432_s18, 2048, %s13612_s19, [#allocation10], %s13477_s21, %s13477_s21, %s13478_s25  }
  0x5f   :  { %13461 = dma.done.wait [#allocation4], 1024  }
  0x60   :  { %13462 = vsyncadd [#allocation4], 4294966272 }
  0x61   :  { %13463 = dma.done.wait [#allocation7], 5120  }
  0x62   :  { %13464 = vsyncadd [#allocation7], 4294962176 }
  0x63   :  { %13465 = dma.done.wait [#allocation10], 2048  }
  0x64   :  { %13466 = vsyncadd [#allocation10], 4294965248  ;;  %v13159_v0 = vld [vmem:[#allocation6 + $0x40] sm:$0xff]   ;;  %v13161_v2 = vld [vmem:[#allocation6 + $0x48] sm:$0xff]   ;;  %v17473_v33 = vmov 0.0|0.0   ;;  %vm13480_vm0 = vmmov 0  }
  0x65   :  { %v13160_v1 = vld [vmem:[#allocation6] sm:$0xff]   ;;  %10142 = vmatprep.subr.bf16.mxu0 %v13159_v0  ;;  %v13162_v3 = vld [vmem:[#allocation6 + $0x8] sm:$0xff]   ;;  %v13163_v4 = vld [vmem:[#allocation6 + $0x50] sm:$0xff]   ;;  %11808 = vmatprep.subr.bf16.mxu1 %v17473_v33  ;;  %vm349_vm1 = vcmask 1040384   ;;  %vm1028_vm2 = vcmask 64512   ;;  %vm5289_vm3 = vcmask 261120  }
  0x66   :  { %10143 = vmatpush3.bf16.msra.mxu0 %v13160_v1  ;;  %v13164_v5 = vld [vmem:[#allocation6 + $0x10] sm:$0xff]   ;;  %v13165_v6 = vld [vmem:[#allocation6 + $0x58] sm:$0xff]   ;;  %v13167_v8 = vld [vmem:[#allocation6 + $0x60] sm:$0xff]   ;;  %s18623_s1 = sld [smem:[#allocation191_spill]]  ;;  %s18624_s29 = sld [smem:[#allocation192_spill]] }
  0x67   :  { %10144 = vmatprep.subr.bf16.mxu0 %v13161_v2  ;;  %v13166_v7 = vld [vmem:[#allocation6 + $0x18] sm:$0xff]   ;;  %v13168_v9 = vld [vmem:[#allocation6 + $0x20] sm:$0xff]   ;;  %v13169_v10 = vld [vmem:[#allocation6 + $0x68] sm:$0xff]   ;;  %s13484_s11 = smov [#allocation11]  }
  0x68   :  { %v120_v11 = vld [vmem:[#allocation3 + $0x8] sm:$0xff]  ;;  %v122_v12 = vld [vmem:[#allocation3 + $0x18] sm:$0xff]  ;;  %v13171_v15 = vld [vmem:[#allocation6 + $0x70] sm:$0xff]   ;;  %s9992_s27 = sshll.u32 %s13484_s11, 4  ;;  %s9993_s27 = int_to_ptr.vmem [resolvable:$true] %s9992_s27 }
  0x69   :  { %v13649_v13 = vpack.c.bf16 %v122_v12, %v120_v11  ;;  %v13170_v14 = vld [vmem:[#allocation6 + $0x28] sm:$0xff]   ;;  %v13172_v16 = vld [vmem:[#allocation6 + $0x30] sm:$0xff]   ;;  %v13173_v17 = vld [vmem:[#allocation6 + $0x78] sm:$0xff]   ;;  %p13444_p5 = scmp.lt.s32.totalorder %s9993_s27, %s9993_s27 }
  0x6a   :  { %10145 = vmatpush3.bf16.msra.mxu0 %v13162_v3  ;;  %v13174_v18 = vld [vmem:[#allocation6 + $0x38] sm:$0xff]   ;;  %v119_v19 = vld [vmem:[#allocation3] sm:$0xff]  ;;  %v121_v20 = vld [vmem:[#allocation3 + $0x10] sm:$0xff] }
  0x6b   :  { %10146 = vmatprep.subr.bf16.mxu0 %v13163_v4  ;;  %17878 = vst [vmem:[#allocation16_spill] sm:$0xff] %v13649_v13  ;;  %291 = vmatprep.mubr.bf16.mxu0 %v13649_v13  ;;  %v124_v21 = vld [vmem:[#allocation3 + $0x28] sm:$0xff]  ;;  %v126_v22 = vld [vmem:[#allocation3 + $0x38] sm:$0xff]  ;;  %v13652_v23 = vpack.c.bf16 %v121_v20, %v119_v19  ;;  %v123_v25 = vld [vmem:[#allocation3 + $0x20] sm:$0xff]  ;;  %v17475_v19 = vmov 0.0  }
  0x6c   :  { %v13654_v24 = vpack.c.bf16 %v126_v22, %v124_v21  ;;  %v125_v26 = vld [vmem:[#allocation3 + $0x30] sm:$0xff]  ;;  %v311_v29 = vld [vmem:[%s17427_s13 + $0x8] sm:$0xff]  ;;  %v312_v34 = vld [vmem:[%s17427_s13 + $0x10] sm:$0xff]  ;;  %11300 = vmatprep.mubr.msk.f32.mxu1 %vm13480_vm0, %v17475_v19  ;;  %1502 = vst [vmem:[#allocation2] sm:$0x1] %v17475_v19 }
  0x6d   :  { %17879 = vst [vmem:[#allocation17_spill] sm:$0xff] %v13652_v23  ;;  %v13658_v27 = vpack.c.bf16 %v125_v26, %v123_v25  ;;  %v310_v28 = vld [vmem:[%s17427_s13] sm:$0xff]  ;;  %v355_v31 = vand.u32 4294901760, %v311_v29  ;;  %v313_v35 = vld [vmem:[%s17427_s13 + $0x18] sm:$0xff]  ;;  %v358_v36 = vand.u32 4294901760, %v312_v34  ;;  %v315_v40 = vld [vmem:[%s17427_s13 + $0x28] sm:$0xff] }
  0x6e   :  { %10147 = vmatpush3.bf16.msra.mxu0 %v13164_v5  ;;  %17880 = vst [vmem:[#allocation18_spill] sm:$0xff] %v13654_v24  ;;  %v352_v30 = vand.u32 4294901760, %v310_v28  ;;  %v361_v37 = vand.u32 4294901760, %v313_v35  ;;  %v314_v39 = vld [vmem:[%s17427_s13 + $0x20] sm:$0xff]  ;;  %v367_v42 = vand.u32 4294901760, %v315_v40  ;;  %v316_v46 = vld [vmem:[%s17427_s13 + $0x30] sm:$0xff] }
  0x6f   :  { %10148 = vmatprep.subr.bf16.mxu0 %v13165_v6  ;;  %17881 = vst [vmem:[#allocation19_spill] sm:$0xff] %v13658_v27  ;;  %v364_v41 = vand.u32 4294901760, %v314_v39  ;;  %v13689_v44 = vsub.f32 %v311_v29, %v355_v31  ;;  %v317_v47 = vld [vmem:[%s17427_s13 + $0x38] sm:$0xff]  ;;  %v370_v48 = vand.u32 4294901760, %v316_v46  ;;  %v318_v51 = vld [vmem:[%s17427_s13 + $0x40] sm:$0xff]  ;;  %v319_v52 = vld [vmem:[%s17427_s13 + $0x48] sm:$0xff]  ;;  %v13724_v61 = vsub.f32 %v312_v34, %v358_v36 }
  0x70   :  { %v13667_v32 = vpack.c.bf16 %v355_v31, %v352_v30  ;;  %v13678_v38 = vpack.c.bf16 %v361_v37, %v358_v36  ;;  %v13687_v43 = vsub.f32 %v310_v28, %v352_v30  ;;  %v373_v49 = vand.u32 4294901760, %v317_v47  ;;  %v320_v56 = vld [vmem:[%s17427_s13 + $0x50] sm:$0xff]  ;;  %v321_v57 = vld [vmem:[%s17427_s13 + $0x58] sm:$0xff]  ;;  %v322_v1 = vld [vmem:[%s17427_s13 + $0x60] sm:$0xff]  ;;  %1503 = vst [vmem:[#allocation2 + $0x18] sm:$0x1] %v17475_v19 }
  0x71   :  { %v13692_v45 = vpack.c.bf16 %v367_v42, %v364_v41  ;;  %v376_v53 = vand.u32 4294901760, %v318_v51  ;;  %v379_v54 = vand.u32 4294901760, %v319_v52  ;;  %v382_v58 = vand.u32 4294901760, %v320_v56  ;;  %v323_v2 = vld [vmem:[%s17427_s13 + $0x68] sm:$0xff]  ;;  %v324_v3 = vld [vmem:[%s17427_s13 + $0x70] sm:$0xff] }
  0x72   :  { %10149 = vmatpush3.bf16.msra.mxu0 %v13166_v7  ;;  %11810 = vmatpush3.bf16.msra.mxu1 %v13667_v32  ;;  %v13702_v50 = vpack.c.bf16 %v373_v49, %v370_v48  ;;  %v385_v59 = vand.u32 4294901760, %v321_v57  ;;  %v13726_v62 = vsub.f32 %v313_v35, %v361_v37  ;;  %v13728_v63 = vsub.f32 %v314_v39, %v364_v41 }
  0x73   :  { %10150 = vmatprep.subr.bf16.mxu0 %v13167_v8  ;;  %11811 = vmatprep.subr.bf16.mxu1 %v17473_v33  ;;  %v13712_v55 = vpack.c.bf16 %v379_v54, %v376_v53  ;;  %v13730_v0 = vsub.f32 %v315_v40, %v367_v42  ;;  %v13741_v4 = vsub.f32 %v316_v46, %v370_v48  ;;  %v325_v8 = vld [vmem:[%s17427_s13 + $0x78] sm:$0xff]  ;;  %v388_v11 = vand.u32 4294901760, %v322_v1  ;;  %s17929_s13 = sld [smem:[#allocation190_spill]] }
  0x74   :  { %v13722_v60 = vpack.c.bf16 %v385_v59, %v382_v58  ;;  %v13743_v5 = vsub.f32 %v317_v47, %v373_v49  ;;  %v13745_v6 = vsub.f32 %v318_v51, %v376_v53  ;;  %v13747_v7 = vsub.f32 %v319_v52, %v379_v54  ;;  %1504 = vst [vmem:[#allocation2 + $0x11] sm:$0x1] %v17475_v19 }
  0x75   :  { %v391_v12 = vand.u32 4294901760, %v323_v2  ;;  %1505 = vst [vmem:[#allocation2 + $0x29] sm:$0x1] %v17475_v19  ;;  %v17456_v22 = vand.u32 4294901760, %v13687_v43  ;;  %v17455_v26 = vand.u32 4294901760, %v13689_v44  ;;  %v17454_v34 = vand.u32 4294901760, %v13724_v61 }
  0x76   :  { %10151 = vmatpush3.bf16.msra.mxu0 %v13168_v9  ;;  %11813 = vmatpush3.bf16.msra.mxu1 %v13678_v38  ;;  %v13753_v9 = vsub.f32 %v320_v56, %v382_v58  ;;  %v17453_v35 = vand.u32 4294901760, %v13726_v62  ;;  %v17452_v42 = vand.u32 4294901760, %v13728_v63  ;;  %v17451_v46 = vand.u32 4294901760, %v13730_v0 }
  0x77   :  { %10152 = vmatprep.subr.bf16.mxu0 %v13169_v10  ;;  %11814 = vmatprep.subr.bf16.mxu1 %v17473_v33  ;;  %v13755_v10 = vsub.f32 %v321_v57, %v385_v59  ;;  %v446_v28 = vsub.f32 %v13687_v43, %v17456_v22  ;;  %v453_v29 = vsub.f32 %v13689_v44, %v17455_v26  ;;  %v17450_v53 = vand.u32 4294901760, %v13741_v4 }
  0x78   :  { %v460_v37 = vsub.f32 %v13724_v61, %v17454_v34  ;;  %v467_v39 = vsub.f32 %v13726_v62, %v17453_v35  ;;  %v474_v48 = vsub.f32 %v13728_v63, %v17452_v42  ;;  %v481_v49 = vsub.f32 %v13730_v0, %v17451_v46 }
  0x79   :  { %v447_v30 = vand.u32 4294901760, %v446_v28  ;;  %v454_v31 = vand.u32 4294901760, %v453_v29  ;;  %v17449_v54 = vand.u32 4294901760, %v13743_v5  ;;  %v488_v57 = vsub.f32 %v13741_v4, %v17450_v53 }
  0x7a   :  { %10153 = vmatpush3.bf16.msra.mxu0 %v13170_v14  ;;  %11816 = vmatpush3.bf16.msra.mxu1 %v13692_v45  ;;  %v394_v14 = vand.u32 4294901760, %v324_v3  ;;  %v461_v40 = vand.u32 4294901760, %v460_v37  ;;  %v468_v41 = vand.u32 4294901760, %v467_v39  ;;  %v475_v51 = vand.u32 4294901760, %v474_v48 }
  0x7b   :  { %10154 = vmatprep.subr.bf16.mxu0 %v13171_v15  ;;  %11817 = vmatprep.subr.bf16.mxu1 %v17473_v33  ;;  %v397_v15 = vand.u32 4294901760, %v325_v8  ;;  %v13793_v36 = vpack.c.bf16 %v454_v31, %v447_v30  ;;  %v482_v52 = vand.u32 4294901760, %v481_v49  ;;  %v495_v58 = vsub.f32 %v13743_v5, %v17449_v54 }
  0x7c   :  { %v13771_v20 = vsub.f32 %v324_v3, %v394_v14  ;;  %v13803_v47 = vpack.c.bf16 %v468_v41, %v461_v40  ;;  %v489_v59 = vand.u32 4294901760, %v488_v57  ;;  %v17447_v3 = vand.u32 4294901760, %v13747_v7 }
  0x7d   :  { %v13773_v21 = vsub.f32 %v325_v8, %v397_v15  ;;  %v13779_v25 = vpack.c.bf16 %v397_v15, %v394_v14  ;;  %v13813_v56 = vpack.c.bf16 %v482_v52, %v475_v51  ;;  %v17446_v28 = vand.u32 4294901760, %v13753_v9 }
  0x7e   :  { %10155 = vmatpush3.bf16.msra.mxu0 %v13172_v16  ;;  %11819 = vmatpush3.bf16.msra.mxu1 %v13702_v50  ;;  %v13758_v16 = vpack.c.bf16 %v391_v12, %v388_v11  ;;  %v17445_v29 = vand.u32 4294901760, %v13755_v10 }
  0x7f   :  { %10156 = vmatprep.subr.bf16.mxu0 %v13173_v17  ;;  %11820 = vmatprep.subr.bf16.mxu1 %v17473_v33  ;;  %v13760_v17 = vsub.f32 %v322_v1, %v388_v11  ;;  %v496_v1 = vand.u32 4294901760, %v495_v58  ;;  %v516_v31 = vsub.f32 %v13753_v9, %v17446_v28 }
  0x80   :  { %v523_v37 = vsub.f32 %v13755_v10, %v17445_v29 }
  0x81   :  { %v13823_v8 = vpack.c.bf16 %v496_v1, %v489_v59  ;;  %v517_v39 = vand.u32 4294901760, %v516_v31  ;;  %v17444_v41 = vand.u32 4294901760, %v13760_v17  ;;  %v17442_v59 = vand.u32 4294901760, %v13771_v20 }
  0x82   :  { %10157 = vmatpush3.bf16.msra.mxu0 %v13174_v18  ;;  %11822 = vmatpush3.bf16.msra.mxu1 %v13712_v55  ;;  %v13762_v18 = vsub.f32 %v323_v2, %v391_v12  ;;  %v17448_v2 = vand.u32 4294901760, %v13745_v6  ;;  %v509_v12 = vsub.f32 %v13747_v7, %v17447_v3  ;;  %v524_v40 = vand.u32 4294901760, %v523_v37 }
  0x83   :  { %11823 = vmatprep.subr.bf16.mxu1 %v17473_v33  ;;  %11483 = vmatprep.subr.mxu0 %v17475_v19  ;;  %v530_v51 = vsub.f32 %v13760_v17, %v17444_v41  ;;  %v17441_v1 = vand.u32 4294901760, %v13773_v21 }
  0x84   :  { %v502_v11 = vsub.f32 %v13745_v6, %v17448_v2  ;;  %v510_v15 = vand.u32 4294901760, %v509_v12  ;;  %v17443_v48 = vand.u32 4294901760, %v13762_v18  ;;  %v13843_v49 = vpack.c.bf16 %v524_v40, %v517_v39 }
  0x85   :  { %292 = vmatmul.mubr.bf16.vlgmr.msra.gmra.mrb[0].mxu0 %v13652_v23  ;;  %v531_v57 = vand.u32 4294901760, %v530_v51  ;;  %v544_v12 = vsub.f32 %v13771_v20, %v17442_v59  ;;  %v11857_v39 = vpack.c.bf16 %v13689_v44, %v13687_v43  ;;  %v11860_v40 = vpack.c.bf16 %v13726_v62, %v13724_v61 }
  0x86   :  { %299 = vmatprep.mubr.bf16.mxu0 %v13654_v24  ;;  %11825 = vmatpush3.bf16.msra.mxu1 %v13722_v60  ;;  %v503_v14 = vand.u32 4294901760, %v502_v11  ;;  %v537_v52 = vsub.f32 %v13762_v18, %v17443_v48 }
  0x87   :  { %11826 = vmatprep.subr.bf16.mxu1 %v17473_v33 }
  0x88   :  { %v13833_v30 = vpack.c.bf16 %v510_v15, %v503_v14  ;;  %v538_v58 = vand.u32 4294901760, %v537_v52  ;;  %v551_v14 = vsub.f32 %v13773_v21, %v17441_v1  ;;  %v545_v15 = vand.u32 4294901760, %v544_v12 }
  0x8a   :  { %11828 = vmatpush3.bf16.msra.mxu1 %v13758_v16  ;;  %v13853_v11 = vpack.c.bf16 %v538_v58, %v531_v57  ;;  %v552_v31 = vand.u32 4294901760, %v551_v14 }
  0x8b   :  { %11829 = vmatprep.subr.bf16.mxu1 %v17473_v33 }
  0x8c   :  { %v13861_v37 = vpack.c.bf16 %v552_v31, %v545_v15 }
  0x8d   :  { %300 = vmatmul.mubr.bf16.gmra.mrb[4].mxu0 %v13658_v27 }
  0x8e   :  { %11485 = vmatprep.mubr.msk.f32.mxu0 %vm13480_vm0, %v17475_v19  ;;  %11831 = vmatpush3.bf16.msra.mxu1 %v13779_v25 }
  0x8f   :  { %11832 = vmatprep.subr.bf16.mxu1 %v17473_v33 }
 0x158   :  { %v10158_v15 = vpop.f32.mrb[0].mxu0 }
 0x159   :  { %v10159_v31 = vpop.f32.mrb[1].mxu0 }
 0x15a   :  { %v13879_v1 = vadd.f32 %v10159_v31, %v10158_v15  ;;  %v10161_v59 = vpop.f32.mrb[2].mxu0 }
 0x15b   :  { %v10162_v48 = vpop.f32.mrb[3].mxu0 }
 0x15c   :  { %v13881_v41 = vadd.f32 %v10162_v48, %v10161_v59  ;;  %v336_v2 = vmul.f32 %v13879_v1, %v13879_v1 }
 0x15e   :  { %v337_v29 = vmul.f32 %v13881_v41, %v13881_v41  ;;  %v327_v54 = vadd.f32 %v13881_v41, %v13879_v1 }
 0x160   :  { %v10164_v28 = vpop.f32.mrb[4].mxu0  ;;  %v340_v31 = vadd.f32 %v337_v29, %v336_v2 }
 0x161   :  { %v10165_v3 = vpop.f32.mrb[5].mxu0 }
 0x162   :  { %v13889_v53 = vadd.f32 %v10165_v3, %v10164_v28  ;;  %v10167_v46 = vpop.f32.mrb[6].mxu0 }
 0x163   :  { %v10168_v15 = vpop.f32.mrb[7].mxu0 }
 0x164   :  { %v328_v42 = vadd.f32 %v13889_v53, %v327_v54  ;;  %v338_v48 = vmul.f32 %v13889_v53, %v13889_v53  ;;  %v13894_v59 = vadd.f32 %v10168_v15, %v10167_v46 }
 0x166   :  { %v341_v35 = vadd.f32 %v340_v31, %v338_v48  ;;  %v329_v34 = vadd.f32 %v13894_v59, %v328_v42  ;;  %v339_v26 = vmul.f32 %v13894_v59, %v13894_v59 }
 0x168   :  { %v330_v22 = vrot.slane %v329_v34, 4  ;;  %v342_v14 = vadd.f32 %v341_v35, %v339_v26  ;;  %v17883_v35 = vpack.c.bf16 %v13743_v5, %v13741_v4 }
 0x16a   :  { %v331_v3 = vadd.f32 %v330_v22, %v329_v34  ;;  %v343_v28 = vrot.slane %v342_v14, 4  ;;  %v17882_v34 = vpack.c.bf16 %v13730_v0, %v13728_v63 }
 0x16c   :  { %v332_v12 = vrot.slane %v331_v3, 2  ;;  %v344_v58 = vadd.f32 %v343_v28, %v342_v14 }
 0x16e   :  { %v333_v2 = vadd.f32 %v332_v12, %v331_v3  ;;  %v345_v29 = vrot.slane %v344_v58, 2 }
 0x170   :  { %v334_v54 = vrot.slane %v333_v2, 1  ;;  %v346_v57 = vadd.f32 %v345_v29, %v344_v58  ;;  %v17897_v58 = vand.u32 4294901760, %v13747_v7  ;;  %v1005_v29 = vlaneseq }
 0x172   :  { %v347_v52 = vrot.slane %v346_v57, 1  ;;  %v335_v46 = vadd.f32 %v334_v54, %v333_v2 }
 0x174   :  { %v348_v15 = vadd.f32 %v347_v52, %v346_v57  ;;  %v17896_v57 = vand.u32 4294901760, %v13745_v6 }
 0x176   :  { %v350_v31 = vsel %vm349_vm1, %v335_v46, %v348_v15  ;;  %v11917_v12 = vpack.c.bf16 %v17897_v58, %v17896_v57  ;;  %v14043_v46 = vshrl.u32 %v1005_v29, 7  ;;  %v13180_v57 = vld [vmem:[#allocation8 + $0x68] sm:$0xff]   ;;  %v13181_v58 = vld [vmem:[#allocation8 + $0x70] sm:$0xff]   ;;  %v13186_v29 = vld [vmem:[#allocation8 + $0x18] sm:$0xff]  }
 0x177   :  { %v13900_v42 = vand.u32 4294901760, %v350_v31 }
 0x179   :  { %v433_v48 = vsub.f32 %v350_v31, %v13900_v42 }
 0x17b   :  { %v434_v51 = vand.u32 4294901760, %v433_v48 }
 0x17d   :  { %v435_v26 = vsub.f32 %v433_v48, %v434_v51 }
 0x17f   :  { %v436_v22 = vand.u32 4294901760, %v435_v26  ;;  %v308_v26 = vld [vmem:[%s17419_s5] sm:$0x1] }
 0x181   :  { %11301 = vmatmul.mubr.f32.vlgmr.msra.gmra.mrb[0].mxu1 %v436_v22 }
 0x182   :  { %11834 = vmatpush3.bf16.msra.mxu1 %v13793_v36  ;;  %11335 = vmatprep.mubr.msk.f32.mxu1 %vm13480_vm0, %v17475_v19  ;;  %v17884_v36 = vpack.c.bf16 %v13747_v7, %v13745_v6  ;;  %v17902_v6 = vand.u32 4294901760, %v13771_v20  ;;  %v17903_v7 = vand.u32 4294901760, %v13773_v21 }
 0x183   :  { %11835 = vmatprep.subr.bf16.mxu1 %v17473_v33 }
 0x184   :  { %v11926_v28 = vpack.c.bf16 %v17903_v7, %v17902_v6 }
 0x186   :  { %11837 = vmatpush3.bf16.msra.mxu1 %v13803_v47  ;;  %v17885_v47 = vpack.c.bf16 %v13755_v10, %v13753_v9 }
 0x187   :  { %11838 = vmatprep.subr.bf16.mxu1 %v17473_v33 }
 0x18a   :  { %11840 = vmatpush3.bf16.msra.mxu1 %v13813_v56  ;;  %v17886_v56 = vpack.c.bf16 %v13762_v18, %v13760_v17 }
 0x18b   :  { %11841 = vmatprep.subr.bf16.mxu1 %v17473_v33 }
 0x18e   :  { %11843 = vmatpush3.bf16.msra.mxu1 %v13823_v8  ;;  %v17887_v8 = vpack.c.bf16 %v13773_v21, %v13771_v20 }
 0x18f   :  { %11844 = vmatprep.subr.bf16.mxu1 %v17473_v33 }
 0x192   :  { %11846 = vmatpush3.bf16.msra.mxu1 %v13833_v30  ;;  %v17888_v30 = vand.u32 4294901760, %v13687_v43  ;;  %v17892_v43 = vand.u32 4294901760, %v13728_v63  ;;  %v17898_v63 = vand.u32 4294901760, %v13753_v9 }
 0x193   :  { %11847 = vmatprep.subr.bf16.mxu1 %v17473_v33 }
 0x196   :  { %11849 = vmatpush3.bf16.msra.mxu1 %v13843_v49  ;;  %v17889_v49 = vand.u32 4294901760, %v13689_v44  ;;  %v17893_v44 = vand.u32 4294901760, %v13730_v0  ;;  %v17899_v0 = vand.u32 4294901760, %v13755_v10 }
 0x197   :  { %11850 = vmatprep.subr.bf16.mxu1 %v17473_v33 }
 0x198   :  { %v11911_v52 = vpack.c.bf16 %v17893_v44, %v17892_v43  ;;  %v11920_v14 = vpack.c.bf16 %v17899_v0, %v17898_v63  ;;  %v13175_v44 = vld [vmem:[#allocation8 + $0x40] sm:$0xff]  }
 0x199   :  { %v13183_v63 = vld [vmem:[#allocation8] sm:$0xff]  }
 0x19a   :  { %11852 = vmatpush3.bf16.msra.mxu1 %v13853_v11  ;;  %v11905_v11 = vpack.c.bf16 %v17889_v49, %v17888_v30 }
 0x19b   :  { %11853 = vmatprep.subr.bf16.mxu1 %v17473_v33 }
 0x19e   :  { %11855 = vmatpush3.bf16.msra.mxu1 %v13861_v37  ;;  %v17890_v37 = vand.u32 4294901760, %v13724_v61  ;;  %v17895_v61 = vand.u32 4294901760, %v13743_v5  ;;  %v17901_v5 = vand.u32 4294901760, %v13762_v18 }
 0x19f   :  { %11856 = vmatprep.subr.bf16.mxu1 %v17473_v33 }
 0x1a1   :  { %11336 = vmatmul.mubr.f32.vlgmr.msra.gmra.mrb[0].mxu1 %v13900_v42 }
 0x1a2   :  { %11858 = vmatpush3.bf16.msra.mxu1 %v11857_v39  ;;  %11370 = vmatprep.mubr.msk.f32.mxu1 %vm13480_vm0, %v17475_v19  ;;  %v17891_v39 = vand.u32 4294901760, %v13726_v62 }
 0x1a3   :  { %11859 = vmatprep.subr.bf16.mxu1 %v17473_v33 }
 0x1a6   :  { %11861 = vmatpush3.bf16.msra.mxu1 %v11860_v40  ;;  %v11908_v40 = vpack.c.bf16 %v17891_v39, %v17890_v37 }
 0x1a7   :  { %11862 = vmatprep.subr.bf16.mxu1 %v17473_v33 }
 0x1aa   :  { %11864 = vmatpush3.bf16.msra.mxu1 %v17882_v34 }
 0x1ab   :  { %11865 = vmatprep.subr.bf16.mxu1 %v17473_v33 }
 0x1ae   :  { %11867 = vmatpush3.bf16.msra.mxu1 %v17883_v35  ;;  %v309_v35 = vld [vmem:[%s17420_s6] sm:$0x1] }
 0x1af   :  { %11868 = vmatprep.subr.bf16.mxu1 %v17473_v33 }
 0x1b2   :  { %11870 = vmatpush3.bf16.msra.mxu1 %v17884_v36 }
 0x1b3   :  { %11871 = vmatprep.subr.bf16.mxu1 %v17473_v33 }
 0x1b6   :  { %11873 = vmatpush3.bf16.msra.mxu1 %v17885_v47  ;;  %v14057_v47 = vsub.s32 0, %v14043_v46 }
 0x1b7   :  { %11874 = vmatprep.subr.bf16.mxu1 %v17473_v33 }
 0x1b8   :  { %17905 = vst [vmem:[#allocation21_spill] sm:$0xff] %v14057_v47 }
 0x1ba   :  { %11876 = vmatpush3.bf16.msra.mxu1 %v17886_v56 }
 0x1bb   :  { %11877 = vmatprep.subr.bf16.mxu1 %v17473_v33 }
 0x1be   :  { %11879 = vmatpush3.bf16.msra.mxu1 %v17887_v8 }
 0x1bf   :  { %11880 = vmatprep.subr.bf16.mxu1 %v17473_v33 }
 0x1c1   :  { %11371 = vmatmul.mubr.f32.vlgmr.msra.gmra.mrb[0].mxu1 %v433_v48 }
 0x1c2   :  { %11882 = vmatpush3.bf16.msra.mxu1 %v13667_v32  ;;  %11405 = vmatprep.mubr.msk.f32.mxu1 %vm13480_vm0, %v17475_v19 }
 0x1c3   :  { %11883 = vmatprep.subr.bf16.mxu1 %v17473_v33 }
 0x1c6   :  { %11885 = vmatpush3.bf16.msra.mxu1 %v13678_v38 }
 0x1c7   :  { %11886 = vmatprep.subr.bf16.mxu1 %v17473_v33 }
 0x1ca   :  { %11888 = vmatpush3.bf16.msra.mxu1 %v13692_v45 }
 0x1cb   :  { %11889 = vmatprep.subr.bf16.mxu1 %v17473_v33 }
 0x1ce   :  { %11891 = vmatpush3.bf16.msra.mxu1 %v13702_v50 }
 0x1cf   :  { %11892 = vmatprep.subr.bf16.mxu1 %v17473_v33 }
 0x1d2   :  { %11894 = vmatpush3.bf16.msra.mxu1 %v13712_v55 }
 0x1d3   :  { %11895 = vmatprep.subr.bf16.mxu1 %v17473_v33 }
 0x1d6   :  { %11897 = vmatpush3.bf16.msra.mxu1 %v13722_v60 }
 0x1d7   :  { %11898 = vmatprep.subr.bf16.mxu1 %v17473_v33 }
 0x1da   :  { %11900 = vmatpush3.bf16.msra.mxu1 %v13758_v16 }
 0x1db   :  { %11901 = vmatprep.subr.bf16.mxu1 %v17473_v33 }
 0x1de   :  { %11903 = vmatpush3.bf16.msra.mxu1 %v13779_v25 }
 0x1df   :  { %11904 = vmatprep.subr.bf16.mxu1 %v17473_v33 }
 0x1e1   :  { %11406 = vmatmul.mubr.f32.vlgmr.msra.gmra.mrb[0].mxu1 %v434_v51  ;;  %v17894_v51 = vand.u32 4294901760, %v13741_v4  ;;  %v17900_v4 = vand.u32 4294901760, %v13760_v17 }
 0x1e2   :  { %11906 = vmatpush3.bf16.msra.mxu1 %v11905_v11  ;;  %11440 = vmatprep.mubr.msk.f32.mxu1 %vm13480_vm0, %v17475_v19 }
 0x1e3   :  { %11907 = vmatprep.subr.bf16.mxu1 %v17473_v33  ;;  %v11914_v62 = vpack.c.bf16 %v17895_v61, %v17894_v51  ;;  %v11923_v3 = vpack.c.bf16 %v17901_v5, %v17900_v4  ;;  %v13177_v51 = vld [vmem:[#allocation8 + $0x50] sm:$0xff]   ;;  %v13178_v61 = vld [vmem:[#allocation8 + $0x58] sm:$0xff]   ;;  %v14076_v4 = vsub.s32 1, %v14043_v46 }
 0x1e5   :  { %17906 = vst [vmem:[#allocation22_spill] sm:$0xff] %v14076_v4 }
 0x1e6   :  { %11909 = vmatpush3.bf16.msra.mxu1 %v11908_v40 }
 0x1e7   :  { %11910 = vmatprep.subr.bf16.mxu1 %v17473_v33 }
 0x1ea   :  { %11912 = vmatpush3.bf16.msra.mxu1 %v11911_v52  ;;  %v13176_v52 = vld [vmem:[#allocation8 + $0x48] sm:$0xff]  }
 0x1eb   :  { %11913 = vmatprep.subr.bf16.mxu1 %v17473_v33 }
 0x1ee   :  { %11915 = vmatpush3.bf16.msra.mxu1 %v11914_v62  ;;  %v13179_v62 = vld [vmem:[#allocation8 + $0x60] sm:$0xff]  }
 0x1ef   :  { %11916 = vmatprep.subr.bf16.mxu1 %v17473_v33 }
 0x1f2   :  { %11918 = vmatpush3.bf16.msra.mxu1 %v11917_v12  ;;  %v13182_v12 = vld [vmem:[#allocation8 + $0x78] sm:$0xff]  }
 0x1f3   :  { %11919 = vmatprep.subr.bf16.mxu1 %v17473_v33 }
 0x1f6   :  { %11921 = vmatpush3.bf16.msra.mxu1 %v11920_v14 }
 0x1f7   :  { %11922 = vmatprep.subr.bf16.mxu1 %v17473_v33 }
 0x1fa   :  { %11924 = vmatpush3.bf16.msra.mxu1 %v11923_v3 }
 0x1fb   :  { %11925 = vmatprep.subr.bf16.mxu1 %v17473_v33 }
 0x1fe   :  { %11927 = vmatpush3.bf16.msra.mxu1 %v11926_v28 }
 0x1ff   :  { %11928 = vmatprep.subr.bf16.mxu1 %v17473_v33 }
 0x201   :  { %11441 = vmatmul.mubr.f32.vlgmr.msra.gmra.mrb[0].mxu1 %v13900_v42 }
 0x202   :  { %11930 = vmatpush3.bf16.msra.mxu1 %v13667_v32  ;;  %11475 = vmatprep.mubr.msk.f32.mxu1 %vm13480_vm0, %v17475_v19  ;;  %v326_v32 = vld [vmem:[%s17428_s14] sm:$0xff] }
 0x203   :  { %11931 = vmatprep.subr.bf16.mxu1 %v17473_v33 }
 0x206   :  { %11933 = vmatpush3.bf16.msra.mxu1 %v13678_v38  ;;  %v1033_v38 = vand.u32 4294901760, %v326_v32 }
 0x207   :  { %11934 = vmatprep.subr.bf16.mxu1 %v17473_v33 }
 0x20a   :  { %11936 = vmatpush3.bf16.msra.mxu1 %v13692_v45  ;;  %v1110_v45 = vsub.f32 %v326_v32, %v1033_v38 }
 0x20b   :  { %11937 = vmatprep.subr.bf16.mxu1 %v17473_v33 }
 0x20e   :  { %11939 = vmatpush3.bf16.msra.mxu1 %v13702_v50  ;;  %v1111_v50 = vand.u32 4294901760, %v1110_v45 }
 0x20f   :  { %11940 = vmatprep.subr.bf16.mxu1 %v17473_v33 }
 0x212   :  { %11942 = vmatpush3.bf16.msra.mxu1 %v13712_v55  ;;  %v1112_v55 = vsub.f32 %v1110_v45, %v1111_v50 }
 0x213   :  { %11943 = vmatprep.subr.bf16.mxu1 %v17473_v33 }
 0x216   :  { %11945 = vmatpush3.bf16.msra.mxu1 %v13722_v60  ;;  %v1113_v60 = vand.u32 4294901760, %v1112_v55 }
 0x217   :  { %11946 = vmatprep.subr.bf16.mxu1 %v17473_v33 }
 0x218   :  { %11484 = vmatpush3.msra.mxu0 %v1113_v60 }
 0x219   :  { %11488 = vmatprep.subr.mxu0 %v17475_v19 }
 0x21a   :  { %11948 = vmatpush3.bf16.msra.mxu1 %v13758_v16 }
 0x21b   :  { %11949 = vmatprep.subr.bf16.mxu1 %v17473_v33 }
 0x21e   :  { %11951 = vmatpush3.bf16.msra.mxu1 %v13779_v25  ;;  %v13482_v25 = vmov 1966171168  }
 0x21f   :  { %11478 = vmatprep.subr.mxu1 %v17475_v19  ;;  %v1003_v2 = vunpack.c.l.s4 %v13482_v25  ;;  %v13184_v25 = vld [vmem:[#allocation8 + $0x8] sm:$0xff]  }
 0x221   :  { %11476 = vmatmul.mubr.f32.vlgmr.msra.gmra.mrb[0].mxu1 %v13900_v42  ;;  %v1004_v54 = vunpack.c.0.s8 %v1003_v2 }
 0x222   :  { %11480 = vmatprep.mubr.msk.f32.mxu1 %vm13480_vm0, %v17475_v19  ;;  %11479 = vmatpush3.msra.mxu1 %v1033_v38 }
 0x223   :  { %11778 = vmatprep.subr.mxu1 %v17475_v19  ;;  %v14046_v15 = vsub.s32 %v1004_v54, %v14043_v46  ;;  %v13187_v54 = vld [vmem:[#allocation8 + $0x20] sm:$0xff]   ;;  %v13188_v46 = vld [vmem:[#allocation8 + $0x28] sm:$0xff]  }
 0x225   :  { %17904 = vst [vmem:[#allocation20_spill] sm:$0xff] %v14046_v15 }
 0x2f4   :  { %v988_v9 = vpop.f32.mrb[0].mxu1 }
 0x2f5   :  { %v993_v10 = vmul.f32 0.001953125, %v988_v9  ;;  %v11477_v16 = vpop.f32.mrb[1].mxu1 }
 0x2f7   :  { %v994_v17 = vmul.f32 %v993_v10, %v993_v10 }
 0x2f9   :  { %v996_v18 = vrot.slane %v994_v17, 7 }
 0x2fb   :  { %v998_v20 = vsub.f32 %v993_v10, %v996_v18 }
 0x2fd   :  { %v999_v21 = vadd.f32 1e-05, %v998_v20 }
 0x2ff   :  { %13343 = vrsqrt.f32 %v999_v21 }
 0x309   :  { %v13344_v31 = vpop.eup %13343 }
 0x30a   :  { %v1008_v42 = vrot.slane %v13344_v31, %v14046_v15  ;;  %v13189_v31 = vld [vmem:[#allocation8 + $0x30] sm:$0xff]  }
 0x30c   :  { %v1009_v48 = vcombine.high %v1008_v42, %v1008_v42  ;;  %v13190_v42 = vld [vmem:[#allocation8 + $0x38] sm:$0xff]  }
 0x30e   :  { %v1016_v22 = vrot.slane %v1009_v48, %v14046_v15  ;;  %v13191_v48 = vld [vmem:[#allocation8 + $0x80] sm:$0xff]  }
 0x310   :  { %v1018_v34 = vmul.f32 %v1016_v22, %v308_v26 }
 0x312   :  { %v1019_v36 = vmul.f32 %v1018_v34, %v993_v10 }
 0x314   :  { %v1020_v56 = vsub.f32 %v309_v35, %v1019_v36 }
 0x316   :  { %v1025_v8 = vrot.slane %v1020_v56, %v14057_v47  ;;  %v13192_v56 = vld [vmem:[#allocation8 + $0x88] sm:$0xff]  }
 0x318   :  { %v1027_v30 = vsel %vm349_vm1, %v1018_v34, %v1025_v8 }
 0x319   :  { %v1030_v49 = vsel %vm1028_vm2, %v1027_v30, 0  ;;  %v13193_v30 = vld [vmem:[#allocation8 + $0x90] sm:$0xff]  }
 0x31a   :  { %v1098_v11 = vand.u32 4294901760, %v1030_v49 }
 0x31c   :  { %11486 = vmatmul.mubr.f32.vlgmr.msra.gmra.mrb[8].mxu0 %v1098_v11  ;;  %v1099_v37 = vsub.f32 %v1030_v49, %v1098_v11  ;;  %v13194_v49 = vld [vmem:[#allocation8 + $0x98] sm:$0xff]  }
 0x31d   :  { %11489 = vmatpush3.msra.mxu0 %v1110_v45  ;;  %11490 = vmatprep.mubr.msk.f32.mxu0 %vm13480_vm0, %v17475_v19 }
 0x31e   :  { %11493 = vmatprep.subr.mxu0 %v17475_v19  ;;  %v1100_v39 = vand.u32 4294901760, %v1099_v37 }
 0x320   :  { %v1101_v40 = vsub.f32 %v1099_v37, %v1100_v39 }
 0x322   :  { %v1102_v43 = vand.u32 4294901760, %v1101_v40  ;;  %v13198_v40 = vld [vmem:[#allocation8 + $0xb8] sm:$0xff]  }
 0x324   :  { %11481 = vmatmul.mubr.f32.vlgmr.msra.gmra.mrb[2].mxu1 %v1102_v43  ;;  %11491 = vmatmul.mubr.f32.vlgmr.msra.gmra.mrb[8].mxu0 %v1099_v37  ;;  %v13196_v37 = vld [vmem:[#allocation8 + $0xa8] sm:$0xff]  }
 0x325   :  { %11494 = vmatpush3.msra.mxu0 %v1033_v38  ;;  %11495 = vmatprep.mubr.msk.f32.mxu0 %vm13480_vm0, %v17475_v19 }
 0x326   :  { %11498 = vmatprep.subr.mxu0 %v17475_v19  ;;  %11780 = vmatprep.mubr.msk.f32.mxu1 %vm13480_vm0, %v17475_v19 }
 0x32c   :  { %11496 = vmatmul.mubr.f32.vlgmr.msra.gmra.mrb[8].mxu0 %v1100_v39  ;;  %v13197_v39 = vld [vmem:[#allocation8 + $0xb0] sm:$0xff]  }
 0x32d   :  { %11499 = vmatpush3.msra.mxu0 %v1111_v50  ;;  %11500 = vmatprep.mubr.msk.f32.mxu0 %vm13480_vm0, %v17475_v19 }
 0x32e   :  { %11503 = vmatprep.subr.mxu0 %v17475_v19 }
 0x334   :  { %11501 = vmatmul.mubr.f32.vlgmr.msra.gmra.mrb[8].mxu0 %v1098_v11 }
 0x335   :  { %11504 = vmatpush3.msra.mxu0 %v1033_v38  ;;  %11505 = vmatprep.mubr.msk.f32.mxu0 %vm13480_vm0, %v17475_v19 }
 0x336   :  { %11508 = vmatprep.subr.bf16.mxu0 %v13175_v44 }
 0x33c   :  { %11506 = vmatmul.mubr.f32.vlgmr.msra.gmra.mrb[8].mxu0 %v1098_v11  ;;  %v13195_v11 = vld [vmem:[#allocation8 + $0xa0] sm:$0xff]  }
 0x33d   :  { %11509 = vmatpush3.bf16.msra.mxu0 %v13175_v44 }
 0x33e   :  { %11510 = vmatprep.subr.bf16.mxu0 %v13176_v52 }
 0x341   :  { %11511 = vmatpush3.bf16.msra.mxu0 %v13176_v52 }
 0x342   :  { %11512 = vmatprep.subr.bf16.mxu0 %v13177_v51 }
 0x345   :  { %11513 = vmatpush3.bf16.msra.mxu0 %v13177_v51  ;;  %v1871_v51 = vld [vmem:[%s17429_s15] sm:$0xff] }
 0x346   :  { %11514 = vmatprep.subr.bf16.mxu0 %v13178_v61 }
 0x349   :  { %11515 = vmatpush3.bf16.msra.mxu0 %v13178_v61  ;;  %v1872_v61 = vld [vmem:[%s17429_s15 + $0x8] sm:$0xff] }
 0x34a   :  { %11516 = vmatprep.subr.bf16.mxu0 %v13179_v62 }
 0x34d   :  { %11517 = vmatpush3.bf16.msra.mxu0 %v13179_v62  ;;  %v1912_v62 = vand.u32 4294901760, %v1871_v51 }
 0x34e   :  { %11518 = vmatprep.subr.bf16.mxu0 %v13180_v57 }
 0x351   :  { %11519 = vmatpush3.bf16.msra.mxu0 %v13180_v57  ;;  %v1915_v57 = vand.u32 4294901760, %v1872_v61 }
 0x352   :  { %11520 = vmatprep.subr.bf16.mxu0 %v13181_v58 }
 0x355   :  { %11521 = vmatpush3.bf16.msra.mxu0 %v13181_v58  ;;  %v14093_v58 = vpack.c.bf16 %v1915_v57, %v1912_v62 }
 0x356   :  { %11522 = vmatprep.subr.bf16.mxu0 %v13182_v12 }
 0x359   :  { %11523 = vmatpush3.bf16.msra.mxu0 %v13182_v12  ;;  %v1873_v12 = vld [vmem:[%s17429_s15 + $0x10] sm:$0xff] }
 0x35a   :  { %11528 = vmatprep.subr.bf16.mxu0 %v13183_v63 }
 0x3f7   :  { %v1104_v0 = vpop.f32.mrb[2].mxu1 }
 0x3f8   :  { %v11482_v14 = vpop.f32.mrb[3].mxu1 }
 0x40f   :  { %v1474_v5 = vpop.f32.mrb[8].mxu0 }
 0x410   :  { %v13056_v3 = vadd.f32 %v1474_v5, %v1104_v0  ;;  %v11507_v6 = vpop.f32.mrb[9].mxu0  ;;  %v1918_v0 = vand.u32 4294901760, %v1873_v12 }
 0x411   :  { %v1876_v6 = vld [vmem:[%s17429_s15 + $0x28] sm:$0xff] }
 0x412   :  { %v1481_v7 = vrot.slane %v13056_v3, %v14057_v47  ;;  %v1489_v28 = vrot.slane %v13056_v3, %v14076_v4  ;;  %v1875_v3 = vld [vmem:[%s17429_s15 + $0x20] sm:$0xff] }
 0x414   :  { %v1482_v32 = vmul.f32 %v13879_v1, %v1481_v7  ;;  %v1483_v38 = vmul.f32 %v13881_v41, %v1481_v7  ;;  %v1484_v45 = vmul.f32 %v13889_v53, %v1481_v7  ;;  %v1485_v50 = vmul.f32 %v13894_v59, %v1481_v7  ;;  %v13185_v53 = vld [vmem:[#allocation8 + $0x10] sm:$0xff]  }
 0x415   :  { %v1924_v7 = vand.u32 4294901760, %v1875_v3 }
 0x416   :  { %v1490_v55 = vadd.f32 %v1489_v28, %v1482_v32  ;;  %v1491_v60 = vadd.f32 %v1489_v28, %v1483_v38  ;;  %v1492_v9 = vadd.f32 %v1489_v28, %v1484_v45  ;;  %v1493_v10 = vadd.f32 %v1489_v28, %v1485_v50  ;;  %v1877_v38 = vld [vmem:[%s17429_s15 + $0x30] sm:$0xff]  ;;  %v1878_v45 = vld [vmem:[%s17429_s15 + $0x38] sm:$0xff] }
 0x417   :  { %v1927_v28 = vand.u32 4294901760, %v1876_v6  ;;  %v1930_v50 = vand.u32 4294901760, %v1877_v38 }
 0x418   :  { %v1494_v16 = vmax.f32 %v1490_v55, 0.0  ;;  %v1495_v17 = vmax.f32 %v1491_v60, 0.0  ;;  %v1496_v18 = vmax.f32 %v1492_v9, 0.0  ;;  %v1497_v20 = vmax.f32 %v1493_v10, 0.0  ;;  %v1879_v9 = vld [vmem:[%s17429_s15 + $0x40] sm:$0xff]  ;;  %v1880_v10 = vld [vmem:[%s17429_s15 + $0x48] sm:$0xff] }
 0x419   :  { %v14113_v32 = vpack.c.bf16 %v1927_v28, %v1924_v7  ;;  %v1933_v55 = vand.u32 4294901760, %v1878_v45 }
 0x41a   :  { %1498 = vst [vmem:[#allocation2 + $0x1] sm:$0xff] %v1494_v16  ;;  %1499 = vst [vmem:[#allocation2 + $0x9] sm:$0xff] %v1495_v17  ;;  %v1532_v21 = vpack.c.bf16 %v1495_v17, %v1494_v16  ;;  %v1533_v1 = vpack.c.bf16 %v1497_v20, %v1496_v18  ;;  %v1936_v16 = vand.u32 4294901760, %v1879_v9  ;;  %v1939_v17 = vand.u32 4294901760, %v1880_v10 }
 0x41b   :  { %1500 = vst [vmem:[#allocation2 + $0x19] sm:$0xff] %v1496_v18  ;;  %1501 = vst [vmem:[#allocation2 + $0x21] sm:$0xff] %v1497_v20  ;;  %v14123_v60 = vpack.c.bf16 %v1933_v55, %v1930_v50  ;;  %v1881_v20 = vld [vmem:[%s17429_s15 + $0x50] sm:$0xff] }
 0x41c   :  { %11524 = vmatprep.mubr.bf16.mxu0 %v1532_v21  ;;  %v14133_v18 = vpack.c.bf16 %v1939_v17, %v1936_v16  ;;  %v1882_v21 = vld [vmem:[%s17429_s15 + $0x58] sm:$0xff] }
 0x41d   :  { %11525 = vmatmul.mubr.bf16.vlgmr.msra.gmra.mrb[12].mxu0 %v1533_v1  ;;  %v1942_v1 = vand.u32 4294901760, %v1881_v20 }
 0x41e   :  { %11529 = vmatpush3.bf16.msra.mxu0 %v13183_v63  ;;  %v1874_v63 = vld [vmem:[%s17429_s15 + $0x18] sm:$0xff] }
 0x41f   :  { %11530 = vmatprep.subr.bf16.mxu0 %v13184_v25  ;;  %v1921_v14 = vand.u32 4294901760, %v1874_v63 }
 0x421   :  { %v1506_v41 = vld [vmem:[#allocation2] sm:$0xff]  ;;  %v1507_v59 = vld [vmem:[#allocation2 + $0x8] sm:$0xff]  ;;  %v14103_v5 = vpack.c.bf16 %v1921_v14, %v1918_v0 }
 0x422   :  { %v1510_v2 = vpack.c.bf16 %v1507_v59, %v1506_v41  ;;  %11531 = vmatpush3.bf16.msra.mxu0 %v13184_v25  ;;  %v1508_v26 = vld [vmem:[#allocation2 + $0x18] sm:$0xff]  ;;  %v1509_v22 = vld [vmem:[#allocation2 + $0x20] sm:$0xff]  ;;  %v1746_v35 = vld [vmem:[#allocation2 + $0xa] sm:$0xff]  ;;  %v1945_v25 = vand.u32 4294901760, %v1882_v21  ;;  %v14145_v41 = vsub.f32 %v1872_v61, %v1915_v57  ;;  %v14147_v59 = vsub.f32 %v1873_v12, %v1918_v0 }
 0x423   :  { %11532 = vmatprep.subr.bf16.mxu0 %v13185_v53  ;;  %v1745_v34 = vld [vmem:[#allocation2 + $0x2] sm:$0xff]  ;;  %v1511_v36 = vpack.c.bf16 %v1509_v22, %v1508_v26  ;;  %v1747_v43 = vld [vmem:[#allocation2 + $0x1a] sm:$0xff]  ;;  %v14166_v26 = vsub.f32 %v1878_v45, %v1933_v55 }
 0x424   :  { %11544 = vmatprep.mubr.bf16.mxu0 %v1510_v2  ;;  %v1749_v8 = vpack.c.bf16 %v1746_v35, %v1745_v34  ;;  %v1748_v44 = vld [vmem:[#allocation2 + $0x22] sm:$0xff]  ;;  %v14149_v2 = vsub.f32 %v1874_v63, %v1921_v14  ;;  %v1886_v22 = vld [vmem:[%s17429_s15 + $0x78] sm:$0xff]  ;;  %v14171_v34 = vsub.f32 %v1879_v9, %v1936_v16  ;;  %v14173_v35 = vsub.f32 %v1880_v10, %v1939_v17 }
 0x425   :  { %v1750_v52 = vpack.c.bf16 %v1748_v44, %v1747_v43  ;;  %v17471_v61 = vand.u32 4294901760, %v14145_v41  ;;  %v17470_v14 = vand.u32 4294901760, %v14147_v59 }
 0x426   :  { %11533 = vmatpush3.bf16.msra.mxu0 %v13185_v53  ;;  %v14143_v53 = vsub.f32 %v1871_v51, %v1912_v62 }
 0x427   :  { %11534 = vmatprep.subr.bf16.mxu0 %v13186_v29  ;;  %v2013_v12 = vsub.f32 %v14145_v41, %v17471_v61 }
 0x428   :  { %v17472_v51 = vand.u32 4294901760, %v14143_v53 }
 0x429   :  { %v2014_v0 = vand.u32 4294901760, %v2013_v12 }
 0x42a   :  { %11535 = vmatpush3.bf16.msra.mxu0 %v13186_v29  ;;  %v1883_v29 = vld [vmem:[%s17429_s15 + $0x60] sm:$0xff]  ;;  %v2006_v57 = vsub.f32 %v14143_v53, %v17472_v51 }
 0x42b   :  { %11536 = vmatprep.subr.bf16.mxu0 %v13187_v54 }
 0x42c   :  { %v2007_v63 = vand.u32 4294901760, %v2006_v57 }
 0x42e   :  { %11537 = vmatpush3.bf16.msra.mxu0 %v13187_v54  ;;  %v1884_v54 = vld [vmem:[%s17429_s15 + $0x68] sm:$0xff] }
 0x42f   :  { %11538 = vmatprep.subr.bf16.mxu0 %v13188_v46 }
 0x432   :  { %11539 = vmatpush3.bf16.msra.mxu0 %v13188_v46  ;;  %v1885_v46 = vld [vmem:[%s17429_s15 + $0x70] sm:$0xff]  ;;  %s13439_s15 = scalar_lea.vmem %s9993_s27, 2048 }
 0x433   :  { %11540 = vmatprep.subr.bf16.mxu0 %v13189_v31  ;;  %p13440_p4 = scmp.ne.s32.totalorder %s9993_s27, %s13439_s15  ;;  %p13445_p6 = scmp.lt.s32.totalorder %s13439_s15, %s13439_s15 }
 0x435   :  { %p13446_p7 = por %p13445_p6, %p13444_p5 }
 0x436   :  { %11541 = vmatpush3.bf16.msra.mxu0 %v13189_v31  ;;  %v14160_v31 = vsub.f32 %v1875_v3, %v1924_v7  ;;  %v17469_v3 = vand.u32 4294901760, %v14149_v2  ;;  %v2020_v7 = vsub.f32 %v14147_v59, %v17470_v14 }
 0x437   :  { %11542 = vmatprep.subr.bf16.mxu0 %v13190_v42  ;;  %p13447_p8 = pnand %p13446_p7, %p13440_p4 }
 0x43a   :  { %11543 = vmatpush3.bf16.msra.mxu0 %v13190_v42  ;;  %v14162_v42 = vsub.f32 %v1876_v6, %v1927_v28  ;;  %v14208_v6 = vpack.c.bf16 %v2014_v0, %v2007_v63  ;;  %v2027_v28 = vsub.f32 %v14149_v2, %v17469_v3 }
 0x43b   :  { %11548 = vmatprep.subr.bf16.mxu0 %v13191_v48 }
 0x43c   :  { %v2028_v45 = vand.u32 4294901760, %v2027_v28  ;;  %v17467_v55 = vand.u32 4294901760, %v14162_v42 }
 0x43d   :  { %11545 = vmatmul.mubr.bf16.vlgmr.msra.gmra.mrb[12].mxu0 %v1511_v36  ;;  %v14175_v36 = vpack.c.bf16 %v1945_v25, %v1942_v1 }
 0x43e   :  { %11549 = vmatpush3.bf16.msra.mxu0 %v13191_v48  ;;  %11564 = vmatprep.mubr.bf16.mxu0 %v1749_v8  ;;  %v14164_v48 = vsub.f32 %v1877_v38, %v1930_v50  ;;  %v14179_v8 = vsub.f32 %v1882_v21, %v1945_v25  ;;  %v2021_v38 = vand.u32 4294901760, %v2020_v7  ;;  %v17468_v50 = vand.u32 4294901760, %v14160_v31 }
 0x43f   :  { %11550 = vmatprep.subr.bf16.mxu0 %v13192_v56  ;;  %v2041_v16 = vsub.f32 %v14162_v42, %v17467_v55 }
 0x440   :  { %v14219_v9 = vpack.c.bf16 %v2028_v45, %v2021_v38  ;;  %v2034_v10 = vsub.f32 %v14160_v31, %v17468_v50  ;;  %v17466_v21 = vand.u32 4294901760, %v14164_v48  ;;  %v17461_v7 = vand.u32 4294901760, %v14179_v8 }
 0x442   :  { %11551 = vmatpush3.bf16.msra.mxu0 %v13192_v56  ;;  %v14177_v56 = vsub.f32 %v1881_v20, %v1942_v1  ;;  %v2035_v17 = vand.u32 4294901760, %v2034_v10  ;;  %v2042_v20 = vand.u32 4294901760, %v2041_v16  ;;  %v17465_v1 = vand.u32 4294901760, %v14166_v26 }
 0x443   :  { %11552 = vmatprep.subr.bf16.mxu0 %v13193_v30  ;;  %v2083_v45 = vsub.f32 %v14179_v8, %v17461_v7 }
 0x444   :  { %v14229_v25 = vpack.c.bf16 %v2042_v20, %v2035_v17  ;;  %v17462_v0 = vand.u32 4294901760, %v14177_v56 }
 0x445   :  { %v2084_v16 = vand.u32 4294901760, %v2083_v45 }
 0x446   :  { %11553 = vmatpush3.bf16.msra.mxu0 %v13193_v30  ;;  %v1948_v30 = vand.u32 4294901760, %v1883_v29  ;;  %v2076_v38 = vsub.f32 %v14177_v56, %v17462_v0 }
 0x447   :  { %11554 = vmatprep.subr.bf16.mxu0 %v13194_v49 }
 0x448   :  { %v2077_v10 = vand.u32 4294901760, %v2076_v38 }
 0x44a   :  { %11555 = vmatpush3.bf16.msra.mxu0 %v13194_v49  ;;  %v1951_v49 = vand.u32 4294901760, %v1884_v54 }
 0x44b   :  { %11556 = vmatprep.subr.bf16.mxu0 %v13195_v11 }
 0x44c   :  { %v14187_v43 = vsub.f32 %v1884_v54, %v1951_v49  ;;  %v2055_v54 = vsub.f32 %v14166_v26, %v17465_v1 }
 0x44e   :  { %11557 = vmatpush3.bf16.msra.mxu0 %v13195_v11  ;;  %v1954_v11 = vand.u32 4294901760, %v1885_v46  ;;  %v17460_v20 = vand.u32 4294901760, %v14187_v43 }
 0x44f   :  { %11558 = vmatprep.subr.bf16.mxu0 %v13196_v37 }
 0x450   :  { %v14189_v44 = vsub.f32 %v1885_v46, %v1954_v11 }
 0x452   :  { %11559 = vmatpush3.bf16.msra.mxu0 %v13196_v37  ;;  %v1957_v37 = vand.u32 4294901760, %v1886_v22 }
 0x453   :  { %11560 = vmatprep.subr.bf16.mxu0 %v13197_v39 }
 0x454   :  { %v14196_v62 = vpack.c.bf16 %v1957_v37, %v1954_v11 }
 0x456   :  { %11561 = vmatpush3.bf16.msra.mxu0 %v13197_v39  ;;  %v14183_v39 = vpack.c.bf16 %v1951_v49, %v1948_v30  ;;  %v17463_v49 = vand.u32 4294901760, %v14173_v35 }
 0x457   :  { %11562 = vmatprep.subr.bf16.mxu0 %v13198_v40 }
 0x458   :  { %v2069_v57 = vsub.f32 %v14173_v35, %v17463_v49 }
 0x45a   :  { %11563 = vmatpush3.bf16.msra.mxu0 %v13198_v40  ;;  %v14185_v40 = vsub.f32 %v1883_v29, %v1948_v30  ;;  %v2048_v29 = vsub.f32 %v14164_v48, %v17466_v21  ;;  %v17464_v30 = vand.u32 4294901760, %v14171_v34  ;;  %v2070_v63 = vand.u32 4294901760, %v2069_v57 }
 0x45b   :  { %11952 = vmatprep.subr.bf16.mxu0 %v17473_v33  ;;  %v17458_v57 = vand.u32 4294901760, %v14189_v44 }
 0x45c   :  { %v2049_v46 = vand.u32 4294901760, %v2048_v29  ;;  %v17457_v17 = vand.u32 4294901760, %v14185_v40  ;;  %v14259_v29 = vpack.c.bf16 %v2084_v16, %v2077_v10 }
 0x45d   :  { %11565 = vmatmul.mubr.bf16.vlgmr.msra.gmra.mrb[12].mxu0 %v1750_v52  ;;  %v14191_v52 = vsub.f32 %v1886_v22, %v1957_v37  ;;  %v2056_v22 = vand.u32 4294901760, %v2055_v54  ;;  %v2062_v37 = vsub.f32 %v14171_v34, %v17464_v30  ;;  %v2104_v38 = vsub.f32 %v14189_v44, %v17458_v57 }
 0x45e   :  { %11600 = vmatprep.mubr.msk.f32.mxu0 %vm13480_vm0, %v17475_v19  ;;  %11954 = vmatpush3.bf16.msra.mxu0 %v14093_v58  ;;  %v2090_v54 = vsub.f32 %v14185_v40, %v17457_v17 }
 0x45f   :  { %11955 = vmatprep.subr.bf16.mxu0 %v17473_v33  ;;  %v14239_v11 = vpack.c.bf16 %v2056_v22, %v2049_v46  ;;  %v2063_v12 = vand.u32 4294901760, %v2062_v37  ;;  %v2097_v46 = vsub.f32 %v14187_v43, %v17460_v20  ;;  %v2105_v10 = vand.u32 4294901760, %v2104_v38 }
 0x460   :  { %v2091_v22 = vand.u32 4294901760, %v2090_v54  ;;  %v12001_v54 = vpack.c.bf16 %v14145_v41, %v14143_v53 }
 0x461   :  { %v14249_v28 = vpack.c.bf16 %v2070_v63, %v2063_v12  ;;  %v2098_v37 = vand.u32 4294901760, %v2097_v46  ;;  %v17459_v12 = vand.u32 4294901760, %v14191_v52  ;;  %v12004_v46 = vpack.c.bf16 %v14149_v2, %v14147_v59 }
 0x462   :  { %11957 = vmatpush3.bf16.msra.mxu0 %v14103_v5 }
 0x463   :  { %11958 = vmatprep.subr.bf16.mxu0 %v17473_v33  ;;  %v11995_v63 = vpack.c.bf16 %v2098_v37, %v2091_v22  ;;  %v2111_v45 = vsub.f32 %v14191_v52, %v17459_v12  ;;  %v12007_v22 = vpack.c.bf16 %v14162_v42, %v14160_v31  ;;  %v12010_v37 = vpack.c.bf16 %v14166_v26, %v14164_v48 }
 0x465   :  { %v2112_v16 = vand.u32 4294901760, %v2111_v45 }
 0x466   :  { %11960 = vmatpush3.bf16.msra.mxu0 %v14113_v32 }
 0x467   :  { %11961 = vmatprep.subr.bf16.mxu0 %v17473_v33  ;;  %v11998_v17 = vpack.c.bf16 %v2112_v16, %v2105_v10 }
 0x46a   :  { %11963 = vmatpush3.bf16.msra.mxu0 %v14123_v60 }
 0x46b   :  { %11964 = vmatprep.subr.bf16.mxu0 %v17473_v33 }
 0x46e   :  { %11966 = vmatpush3.bf16.msra.mxu0 %v14133_v18 }
 0x46f   :  { %11967 = vmatprep.subr.bf16.mxu0 %v17473_v33 }
 0x472   :  { %11969 = vmatpush3.bf16.msra.mxu0 %v14175_v36 }
 0x473   :  { %11970 = vmatprep.subr.bf16.mxu0 %v17473_v33 }
 0x476   :  { %11972 = vmatpush3.bf16.msra.mxu0 %v14183_v39 }
 0x477   :  { %11973 = vmatprep.subr.bf16.mxu0 %v17473_v33 }
 0x47a   :  { %11975 = vmatpush3.bf16.msra.mxu0 %v14196_v62 }
 0x47b   :  { %11976 = vmatprep.subr.bf16.mxu0 %v17473_v33 }
 0x530   :  { %v14291_v16 = vpop.f32.mrb[12].mxu0 }
 0x531   :  { %v14293_v12 = vpop.f32.mrb[13].mxu0  ;;  %v1899_v1 = vmul.f32 %v14291_v16, %v14291_v16 }
 0x532   :  { %v14295_v20 = vpop.f32.mrb[14].mxu0  ;;  %v1897_v0 = vmul.f32 %v14293_v12, %v14293_v12 }
 0x533   :  { %v14297_v7 = vpop.f32.mrb[15].mxu0  ;;  %v1900_v50 = vmul.f32 %v14295_v20, %v14295_v20 }
 0x534   :  { %v1888_v49 = vadd.f32 %v14297_v7, %v14293_v12  ;;  %v1898_v30 = vmul.f32 %v14297_v7, %v14297_v7 }
 0x536   :  { %v1889_v21 = vadd.f32 %v14291_v16, %v1888_v49  ;;  %v1901_v55 = vadd.f32 %v1898_v30, %v1897_v0 }
 0x538   :  { %v1890_v3 = vadd.f32 %v14295_v20, %v1889_v21  ;;  %v1902_v14 = vadd.f32 %v1901_v55, %v1899_v1 }
 0x53a   :  { %v1891_v61 = vrot.slane %v1890_v3, 4  ;;  %v1903_v51 = vadd.f32 %v1902_v14, %v1900_v50  ;;  %v17916_v50 = vand.u32 4294901760, %v14149_v2 }
 0x53c   :  { %v1892_v10 = vadd.f32 %v1891_v61, %v1890_v3  ;;  %v1904_v45 = vrot.slane %v1903_v51, 4  ;;  %v17908_v61 = vmov 0.0|0.0  }
 0x53e   :  { %v1893_v38 = vrot.slane %v1892_v10, 2  ;;  %v1905_v57 = vadd.f32 %v1904_v45, %v1903_v51  ;;  %v17907_v51 = vmov 0.0  }
 0x540   :  { %v1894_v33 = vadd.f32 %v1893_v38, %v1892_v10  ;;  %v1906_v19 = vrot.slane %v1905_v57, 2 }
 0x542   :  { %v1895_v27 = vrot.slane %v1894_v33, 1  ;;  %v1907_v24 = vadd.f32 %v1906_v19, %v1905_v57  ;;  %v17914_v19 = vand.u32 4294901760, %v14145_v41  ;;  %v17918_v41 = vand.u32 4294901760, %v14162_v42 }
 0x543   :  { %v17924_v42 = vand.u32 4294901760, %v14179_v8 }
 0x544   :  { %v1908_v23 = vrot.slane %v1907_v24, 1  ;;  %v1896_v13 = vadd.f32 %v1895_v27, %v1894_v33  ;;  %v17912_v27 = vpack.c.bf16 %v14191_v52, %v14189_v44  ;;  %v17913_v33 = vand.u32 4294901760, %v14143_v53 }
 0x545   :  { %v17917_v53 = vand.u32 4294901760, %v14160_v31  ;;  %v17923_v31 = vand.u32 4294901760, %v14177_v56 }
 0x546   :  { %v1909_v49 = vadd.f32 %v1908_v23, %v1907_v24  ;;  %v17910_v23 = vpack.c.bf16 %v14179_v8, %v14177_v56  ;;  %v17911_v24 = vpack.c.bf16 %v14187_v43, %v14185_v40  ;;  %v12049_v3 = vpack.c.bf16 %v17914_v19, %v17913_v33  ;;  %v13204_v33 = vld [vmem:[%s17929_s13 + $0x24] ss:$16 sps:$4 sm:$0xff]   ;;  %v13202_v19 = vld [vmem:[%s17929_s13 + $0x20] ss:$16 sps:$4 sm:$0xff]  }
 0x547   :  { %v12064_v57 = vpack.c.bf16 %v17924_v42, %v17923_v31  ;;  %v13225_v31 = vld [vmem:[%s17929_s13 + $0xc] ss:$16 sps:$4 sm:$0xff]  }
 0x548   :  { %v1910_v30 = vsel %vm349_vm1, %v1896_v13, %v1909_v49  ;;  %v17909_v13 = vpack.c.bf16 %v14173_v35, %v14171_v34 }
 0x549   :  { %v14312_v0 = vand.u32 4294901760, %v1910_v30 }
 0x54b   :  { %v1993_v21 = vsub.f32 %v1910_v30, %v14312_v0 }
 0x54d   :  { %v1994_v55 = vand.u32 4294901760, %v1993_v21 }
 0x54f   :  { %v1995_v1 = vsub.f32 %v1993_v21, %v1994_v55 }
 0x551   :  { %v1996_v14 = vand.u32 4294901760, %v1995_v1 }
 0x553   :  { %11601 = vmatmul.mubr.f32.vlgmr.msra.gmra.mrb[10].mxu0 %v1996_v14 }
 0x554   :  { %11978 = vmatpush3.bf16.msra.mxu0 %v14208_v6  ;;  %11635 = vmatprep.mubr.msk.f32.mxu0 %vm13480_vm0, %v17907_v51  ;;  %v17915_v6 = vand.u32 4294901760, %v14147_v59  ;;  %v17920_v59 = vand.u32 4294901760, %v14166_v26  ;;  %v17926_v26 = vand.u32 4294901760, %v14187_v43 }
 0x555   :  { %11979 = vmatprep.subr.bf16.mxu0 %v17908_v61 }
 0x558   :  { %11981 = vmatpush3.bf16.msra.mxu0 %v14219_v9  ;;  %v12052_v9 = vpack.c.bf16 %v17916_v50, %v17915_v6  ;;  %v13205_v6 = vld [vmem:[%s17929_s13 + $0x40] ss:$16 sps:$4 sm:$0xff]   ;;  %v13210_v50 = vld [vmem:[%s17929_s13 + $0x64] ss:$16 sps:$4 sm:$0xff]  }
 0x559   :  { %11982 = vmatprep.subr.bf16.mxu0 %v17908_v61 }
 0x55c   :  { %11984 = vmatpush3.bf16.msra.mxu0 %v14229_v25  ;;  %v12055_v25 = vpack.c.bf16 %v17918_v41, %v17917_v53  ;;  %v13213_v53 = vld [vmem:[%s17929_s13 + $0x84] ss:$16 sps:$4 sm:$0xff]   ;;  %v13211_v41 = vld [vmem:[%s17929_s13 + $0x80] ss:$16 sps:$4 sm:$0xff]  }
 0x55d   :  { %11985 = vmatprep.subr.bf16.mxu0 %v17908_v61 }
 0x560   :  { %11987 = vmatpush3.bf16.msra.mxu0 %v14239_v11  ;;  %v17919_v11 = vand.u32 4294901760, %v14164_v48  ;;  %v17925_v48 = vand.u32 4294901760, %v14185_v40 }
 0x561   :  { %11988 = vmatprep.subr.bf16.mxu0 %v17908_v61 }
 0x562   :  { %v12058_v2 = vpack.c.bf16 %v17920_v59, %v17919_v11  ;;  %v13214_v11 = vld [vmem:[%s17929_s13 + $0xa0] ss:$16 sps:$4 sm:$0xff]   ;;  %v13219_v59 = vld [vmem:[%s17929_s13 + $0xc4] ss:$16 sps:$4 sm:$0xff]  }
 0x564   :  { %11990 = vmatpush3.bf16.msra.mxu0 %v14249_v28  ;;  %v17921_v28 = vand.u32 4294901760, %v14171_v34  ;;  %v17927_v34 = vand.u32 4294901760, %v14189_v44 }
 0x565   :  { %11991 = vmatprep.subr.bf16.mxu0 %v17908_v61 }
 0x568   :  { %11993 = vmatpush3.bf16.msra.mxu0 %v14259_v29 }
 0x569   :  { %11994 = vmatprep.subr.bf16.mxu0 %v17908_v61 }
 0x56c   :  { %11996 = vmatpush3.bf16.msra.mxu0 %v11995_v63  ;;  %v12067_v63 = vpack.c.bf16 %v17926_v26, %v17925_v48 }
 0x56d   :  { %11997 = vmatprep.subr.bf16.mxu0 %v17908_v61 }
 0x570   :  { %11999 = vmatpush3.bf16.msra.mxu0 %v11998_v17  ;;  %v17922_v17 = vand.u32 4294901760, %v14173_v35  ;;  %v17928_v35 = vand.u32 4294901760, %v14191_v52  ;;  %v1869_v52 = vld [vmem:[%s17421_s7] sm:$0x1] }
 0x571   :  { %12000 = vmatprep.subr.bf16.mxu0 %v17908_v61 }
 0x572   :  { %v12061_v29 = vpack.c.bf16 %v17922_v17, %v17921_v28  ;;  %v13222_v28 = vld [vmem:[%s17929_s13 + $0xe4] ss:$16 sps:$4 sm:$0xff]   ;;  %v13220_v17 = vld [vmem:[%s17929_s13 + $0xe0] ss:$16 sps:$4 sm:$0xff]  }
 0x573   :  { %11636 = vmatmul.mubr.f32.vlgmr.msra.gmra.mrb[10].mxu0 %v14312_v0 }
 0x574   :  { %12002 = vmatpush3.bf16.msra.mxu0 %v12001_v54  ;;  %11670 = vmatprep.mubr.msk.f32.mxu0 %vm13480_vm0, %v17907_v51  ;;  %v12070_v54 = vpack.c.bf16 %v17928_v35, %v17927_v34 }
 0x575   :  { %12003 = vmatprep.subr.bf16.mxu0 %v17908_v61 }
 0x578   :  { %12005 = vmatpush3.bf16.msra.mxu0 %v12004_v46 }
 0x579   :  { %12006 = vmatprep.subr.bf16.mxu0 %v17908_v61 }
 0x57c   :  { %12008 = vmatpush3.bf16.msra.mxu0 %v12007_v22  ;;  %v1870_v22 = vld [vmem:[%s17422_s8] sm:$0x1] }
 0x57d   :  { %12009 = vmatprep.subr.bf16.mxu0 %v17908_v61 }
 0x580   :  { %12011 = vmatpush3.bf16.msra.mxu0 %v12010_v37 }
 0x581   :  { %12012 = vmatprep.subr.bf16.mxu0 %v17908_v61 }
 0x584   :  { %12014 = vmatpush3.bf16.msra.mxu0 %v17909_v13 }
 0x585   :  { %12015 = vmatprep.subr.bf16.mxu0 %v17908_v61 }
 0x588   :  { %12017 = vmatpush3.bf16.msra.mxu0 %v17910_v23 }
 0x589   :  { %12018 = vmatprep.subr.bf16.mxu0 %v17908_v61 }
 0x58c   :  { %12020 = vmatpush3.bf16.msra.mxu0 %v17911_v24  ;;  %v13201_v24 = vld [vmem:[%s17929_s13 + $0x4] ss:$16 sps:$4 sm:$0xff]  }
 0x58d   :  { %12021 = vmatprep.subr.bf16.mxu0 %v17908_v61 }
 0x590   :  { %12023 = vmatpush3.bf16.msra.mxu0 %v17912_v27  ;;  %v13199_v27 = vld [vmem:[%s17929_s13] ss:$16 sps:$4 sm:$0xff]  }
 0x591   :  { %12024 = vmatprep.subr.bf16.mxu0 %v17908_v61 }
 0x593   :  { %11671 = vmatmul.mubr.f32.vlgmr.msra.gmra.mrb[10].mxu0 %v1993_v21 }
 0x594   :  { %12026 = vmatpush3.bf16.msra.mxu0 %v14093_v58  ;;  %11705 = vmatprep.mubr.msk.f32.mxu0 %vm13480_vm0, %v17907_v51 }
 0x595   :  { %12027 = vmatprep.subr.bf16.mxu0 %v17908_v61 }
 0x598   :  { %12029 = vmatpush3.bf16.msra.mxu0 %v14103_v5 }
 0x599   :  { %12030 = vmatprep.subr.bf16.mxu0 %v17908_v61 }
 0x59c   :  { %12032 = vmatpush3.bf16.msra.mxu0 %v14113_v32 }
 0x59d   :  { %12033 = vmatprep.subr.bf16.mxu0 %v17908_v61 }
 0x5a0   :  { %12035 = vmatpush3.bf16.msra.mxu0 %v14123_v60 }
 0x5a1   :  { %12036 = vmatprep.subr.bf16.mxu0 %v17908_v61 }
 0x5a4   :  { %12038 = vmatpush3.bf16.msra.mxu0 %v14133_v18 }
 0x5a5   :  { %12039 = vmatprep.subr.bf16.mxu0 %v17908_v61 }
 0x5a8   :  { %12041 = vmatpush3.bf16.msra.mxu0 %v14175_v36 }
 0x5a9   :  { %12042 = vmatprep.subr.bf16.mxu0 %v17908_v61 }
 0x5ac   :  { %12044 = vmatpush3.bf16.msra.mxu0 %v14183_v39 }
 0x5ad   :  { %12045 = vmatprep.subr.bf16.mxu0 %v17908_v61 }
 0x5b0   :  { %12047 = vmatpush3.bf16.msra.mxu0 %v14196_v62 }
 0x5b1   :  { %12048 = vmatprep.subr.bf16.mxu0 %v17908_v61 }
 0x5b3   :  { %11706 = vmatmul.mubr.f32.vlgmr.msra.gmra.mrb[10].mxu0 %v1994_v55 }
 0x5b4   :  { %12050 = vmatpush3.bf16.msra.mxu0 %v12049_v3  ;;  %11740 = vmatprep.mubr.msk.f32.mxu0 %vm13480_vm0, %v17907_v51  ;;  %v13207_v3 = vld [vmem:[%s17929_s13 + $0x44] ss:$16 sps:$4 sm:$0xff]  }
 0x5b5   :  { %12051 = vmatprep.subr.bf16.mxu0 %v17908_v61 }
 0x5b8   :  { %12053 = vmatpush3.bf16.msra.mxu0 %v12052_v9  ;;  %v13208_v9 = vld [vmem:[%s17929_s13 + $0x60] ss:$16 sps:$4 sm:$0xff]  }
 0x5b9   :  { %12054 = vmatprep.subr.bf16.mxu0 %v17908_v61 }
 0x5bc   :  { %12056 = vmatpush3.bf16.msra.mxu0 %v12055_v25  ;;  %v13216_v25 = vld [vmem:[%s17929_s13 + $0xa4] ss:$16 sps:$4 sm:$0xff]  }
 0x5bd   :  { %12057 = vmatprep.subr.bf16.mxu0 %v17908_v61 }
 0x5c0   :  { %12059 = vmatpush3.bf16.msra.mxu0 %v12058_v2  ;;  %v13217_v2 = vld [vmem:[%s17929_s13 + $0xc0] ss:$16 sps:$4 sm:$0xff]  }
 0x5c1   :  { %12060 = vmatprep.subr.bf16.mxu0 %v17908_v61 }
 0x5c4   :  { %12062 = vmatpush3.bf16.msra.mxu0 %v12061_v29  ;;  %v13483_v29 = vmov 0  }
 0x5c5   :  { %12063 = vmatprep.subr.bf16.mxu0 %v17908_v61 }
 0x5c8   :  { %12065 = vmatpush3.bf16.msra.mxu0 %v12064_v57 }
 0x5c9   :  { %12066 = vmatprep.subr.bf16.mxu0 %v17908_v61 }
 0x5cc   :  { %12068 = vmatpush3.bf16.msra.mxu0 %v12067_v63 }
 0x5cd   :  { %12069 = vmatprep.subr.bf16.mxu0 %v17908_v61 }
 0x5d0   :  { %12071 = vmatpush3.bf16.msra.mxu0 %v12070_v54 }
 0x5d1   :  { %12072 = vmatprep.subr.bf16.mxu0 %v17908_v61 }
 0x5d3   :  { %11741 = vmatmul.mubr.f32.vlgmr.msra.gmra.mrb[10].mxu0 %v14312_v0 }
 0x5d4   :  { %12074 = vmatpush3.bf16.msra.mxu0 %v14093_v58  ;;  %11775 = vmatprep.mubr.msk.f32.mxu0 %vm13480_vm0, %v17907_v51  ;;  %v1887_v58 = vld [vmem:[%s17430_s16] sm:$0xff] }
 0x5d5   :  { %12075 = vmatprep.subr.bf16.mxu0 %v17908_v61 }
 0x5d8   :  { %12077 = vmatpush3.bf16.msra.mxu0 %v14103_v5  ;;  %v2591_v5 = vand.u32 4294901760, %v1887_v58 }
 0x5d9   :  { %12078 = vmatprep.subr.bf16.mxu0 %v17908_v61 }
 0x5da   :  { %11779 = vmatpush3.msra.mxu1 %v2591_v5  ;;  %v2668_v45 = vsub.f32 %v1887_v58, %v2591_v5 }
 0x5db   :  { %11783 = vmatprep.subr.mxu1 %v17907_v51 }
 0x5dc   :  { %12080 = vmatpush3.bf16.msra.mxu0 %v14113_v32 }
 0x5dd   :  { %12081 = vmatprep.subr.bf16.mxu0 %v17908_v61 }
 0x5e0   :  { %12083 = vmatpush3.bf16.msra.mxu0 %v14123_v60 }
 0x5e1   :  { %12084 = vmatprep.subr.bf16.mxu0 %v17908_v61 }
 0x5e4   :  { %12086 = vmatpush3.bf16.msra.mxu0 %v14133_v18 }
 0x5e5   :  { %12087 = vmatprep.subr.bf16.mxu0 %v17908_v61 }
 0x5e8   :  { %12089 = vmatpush3.bf16.msra.mxu0 %v14175_v36 }
 0x5e9   :  { %12090 = vmatprep.subr.bf16.mxu0 %v17908_v61 }
 0x5ec   :  { %12092 = vmatpush3.bf16.msra.mxu0 %v14183_v39 }
 0x5ed   :  { %12093 = vmatprep.subr.bf16.mxu0 %v17908_v61 }
 0x5f0   :  { %12095 = vmatpush3.bf16.msra.mxu0 %v14196_v62 }
 0x5f3   :  { %11776 = vmatmul.mubr.f32.vlgmr.msra.gmra.mrb[10].mxu0 %v14312_v0  ;;  %v2669_v0 = vand.u32 4294901760, %v2668_v45 }
 0x5f5   :  { %v2670_v1 = vsub.f32 %v2668_v45, %v2669_v0 }
 0x5f7   :  { %v2671_v13 = vand.u32 4294901760, %v2670_v1  ;;  %v14579_v1 = vld [vmem:[%s17431_s17] sm:$0xff] }
 0x6c6   :  { %v2548_v32 = vpop.f32.mrb[10].mxu0 }
 0x6c7   :  { %v2552_v60 = vmul.f32 0.001953125, %v2548_v32  ;;  %v11777_v18 = vpop.f32.mrb[11].mxu0 }
 0x6c9   :  { %v2553_v36 = vmul.f32 %v2552_v60, %v2552_v60 }
 0x6cb   :  { %v2555_v56 = vrot.slane %v2553_v36, 7 }
 0x6cd   :  { %v2557_v8 = vsub.f32 %v2552_v60, %v2555_v56 }
 0x6cf   :  { %v2558_v39 = vadd.f32 1e-05, %v2557_v8 }
 0x6d1   :  { %13345 = vrsqrt.f32 %v2558_v39  ;;  %v13223_v39 = vld [vmem:[%s17929_s13 + $0x8] ss:$16 sps:$4 sm:$0xff]  }
 0x6db   :  { %v13346_v40 = vpop.eup %13345 }
 0x6dc   :  { %v2567_v43 = vrot.slane %v13346_v40, %v14046_v15 }
 0x6de   :  { %v2568_v44 = vcombine.high %v2567_v43, %v2567_v43  ;;  %v13229_v43 = vld [vmem:[%s17929_s13 + $0x48] ss:$16 sps:$4 sm:$0xff]  }
 0x6e0   :  { %v2575_v62 = vrot.slane %v2568_v44, %v14046_v15  ;;  %v13234_v44 = vld [vmem:[%s17929_s13 + $0x6c] ss:$16 sps:$4 sm:$0xff]  }
 0x6e2   :  { %v2577_v46 = vmul.f32 %v2575_v62, %v1869_v52  ;;  %v13232_v52 = vld [vmem:[%s17929_s13 + $0x68] ss:$16 sps:$4 sm:$0xff]   ;;  %v13237_v62 = vld [vmem:[%s17929_s13 + $0x8c] ss:$16 sps:$4 sm:$0xff]  }
 0x6e4   :  { %v2578_v37 = vmul.f32 %v2577_v46, %v2552_v60 }
 0x6e6   :  { %v2579_v38 = vsub.f32 %v1870_v22, %v2578_v37  ;;  %v13240_v22 = vld [vmem:[%s17929_s13 + $0xac] ss:$16 sps:$4 sm:$0xff]   ;;  %v13238_v37 = vld [vmem:[%s17929_s13 + $0xa8] ss:$16 sps:$4 sm:$0xff]  }
 0x6e8   :  { %v2584_v10 = vrot.slane %v2579_v38, %v14057_v47  ;;  %v13243_v38 = vld [vmem:[%s17929_s13 + $0xcc] ss:$16 sps:$4 sm:$0xff]  }
 0x6ea   :  { %v2586_v49 = vsel %vm349_vm1, %v2577_v46, %v2584_v10  ;;  %v13235_v46 = vld [vmem:[%s17929_s13 + $0x88] ss:$16 sps:$4 sm:$0xff]   ;;  %v13246_v10 = vld [vmem:[%s17929_s13 + $0xec] ss:$16 sps:$4 sm:$0xff]  }
 0x6eb   :  { %v2588_v30 = vsel %vm1028_vm2, %v2586_v49, 0  ;;  %v13244_v49 = vld [vmem:[%s17929_s13 + $0xe8] ss:$16 sps:$4 sm:$0xff]  }
 0x6ec   :  { %v2656_v21 = vand.u32 4294901760, %v2588_v30 }
 0x6ee   :  { %v2657_v55 = vsub.f32 %v2588_v30, %v2656_v21  ;;  %v14567_v30 = vld [vmem:[%s17431_s17 + $0x80] sm:$0xff] }
 0x6f0   :  { %v2658_v14 = vand.u32 4294901760, %v2657_v55 }
 0x6f2   :  { %v2659_v61 = vsub.f32 %v2657_v55, %v2658_v14 }
 0x6f4   :  { %v2660_v23 = vand.u32 4294901760, %v2659_v61  ;;  %v3531_v61 = vand.u32 4294901760, %v14579_v1 }
 0x6f6   :  { %11781 = vmatmul.mubr.f32.vlgmr.msra.gmra.mrb[4].mxu1 %v2660_v23 }
 0x6f7   :  { %11784 = vmatpush3.msra.mxu1 %v2671_v13  ;;  %11785 = vmatprep.mubr.msk.f32.mxu1 %vm13480_vm0, %v17907_v51 }
 0x6f8   :  { %11788 = vmatprep.subr.mxu1 %v17907_v51 }
 0x6fe   :  { %11786 = vmatmul.mubr.f32.vlgmr.msra.gmra.mrb[4].mxu1 %v2656_v21 }
 0x6ff   :  { %11789 = vmatpush3.msra.mxu1 %v2668_v45  ;;  %11790 = vmatprep.mubr.msk.f32.mxu1 %vm13480_vm0, %v17907_v51  ;;  %v13241_v45 = vld [vmem:[%s17929_s13 + $0xc8] ss:$16 sps:$4 sm:$0xff]  }
 0x700   :  { %11793 = vmatprep.subr.mxu1 %v17907_v51 }
 0x706   :  { %11791 = vmatmul.mubr.f32.vlgmr.msra.gmra.mrb[4].mxu1 %v2657_v55 }
 0x707   :  { %11794 = vmatpush3.msra.mxu1 %v2591_v5  ;;  %11795 = vmatprep.mubr.msk.f32.mxu1 %vm13480_vm0, %v17907_v51 }
 0x708   :  { %11798 = vmatprep.subr.mxu1 %v17907_v51 }
 0x70e   :  { %11796 = vmatmul.mubr.f32.vlgmr.msra.gmra.mrb[4].mxu1 %v2658_v14  ;;  %v14584_v14 = vld [vmem:[%s17431_s17 + $0x8] sm:$0xff] }
 0x70f   :  { %11799 = vmatpush3.msra.mxu1 %v2669_v0  ;;  %11800 = vmatprep.mubr.msk.f32.mxu1 %vm13480_vm0, %v17907_v51  ;;  %v14572_v0 = vld [vmem:[%s17431_s17 + $0x88] sm:$0xff]  ;;  %v3534_v13 = vand.u32 4294901760, %v14584_v14 }
 0x710   :  { %11803 = vmatprep.subr.mxu1 %v17907_v51  ;;  %v3582_v55 = vand.u32 4294901760, %v14572_v0 }
 0x716   :  { %11801 = vmatmul.mubr.f32.vlgmr.msra.gmra.mrb[4].mxu1 %v2656_v21 }
 0x717   :  { %11804 = vmatpush3.msra.mxu1 %v2591_v5  ;;  %11805 = vmatprep.mubr.msk.f32.mxu1 %vm13480_vm0, %v17907_v51 }
 0x718   :  { %3250 = vmatprep.subr.bf16.mxu1 %v13201_v24  ;;  %v14598_v24 = vpack.c.bf16 %v3534_v13, %v3531_v61 }
 0x71a   :  { %17931 = vst [vmem:[#allocation24_spill] sm:$0xff] %v14598_v24 }
 0x71e   :  { %11806 = vmatmul.mubr.f32.vlgmr.msra.gmra.mrb[4].mxu1 %v2656_v21  ;;  %v3579_v21 = vand.u32 4294901760, %v14567_v30 }
 0x71f   :  { %3251 = vmatpush1.bf16.msra.mxu1 %v13199_v27  ;;  %3282 = vmatprep.mubr.bf16.mxu1 %v13483_v29  ;;  %v14603_v27 = vld [vmem:[%s17431_s17 + $0x90] sm:$0xff] }
 0x720   :  { %3252 = vmatprep.subr.bf16.mxu1 %v13204_v33  ;;  %v14592_v23 = vpack.c.bf16 %v3582_v55, %v3579_v21  ;;  %v14608_v33 = vld [vmem:[%s17431_s17 + $0x98] sm:$0xff] }
 0x722   :  { %17930 = vst [vmem:[#allocation23_spill] sm:$0xff] %v14592_v23  ;;  %12193 = vmatprep.subr.bf16.mxu0 %v14592_v23 }
 0x723   :  { %3253 = vmatpush1.bf16.msra.mxu1 %v13202_v19  ;;  %v3585_v19 = vand.u32 4294901760, %v14603_v27  ;;  %12195 = vmatpush3.bf16.msra.mxu0 %v14598_v24 }
 0x724   :  { %3254 = vmatprep.subr.bf16.mxu1 %v13207_v3  ;;  %v3588_v3 = vand.u32 4294901760, %v14608_v33 }
 0x727   :  { %3255 = vmatpush1.bf16.msra.mxu1 %v13205_v6  ;;  %v14617_v6 = vld [vmem:[%s17431_s17 + $0x10] sm:$0xff] }
 0x728   :  { %3256 = vmatprep.subr.bf16.mxu1 %v13210_v50  ;;  %v14622_v50 = vld [vmem:[%s17431_s17 + $0x18] sm:$0xff] }
 0x72b   :  { %3257 = vmatpush1.bf16.msra.mxu1 %v13208_v9  ;;  %v17506_v9 = vand.u32 4294901760, %v14617_v6 }
 0x72c   :  { %3258 = vmatprep.subr.bf16.mxu1 %v13213_v53  ;;  %v17505_v53 = vand.u32 4294901760, %v14622_v50 }
 0x72f   :  { %3259 = vmatpush1.bf16.msra.mxu1 %v13211_v41  ;;  %v14632_v41 = vpack.c.bf16 %v3588_v3, %v3585_v19 }
 0x730   :  { %3260 = vmatprep.subr.bf16.mxu1 %v13216_v25  ;;  %v14638_v25 = vpack.c.bf16 %v17505_v53, %v17506_v9  ;;  %v14882_v53 = vsub.f32 %v14572_v0, %v3582_v55 }
 0x731   :  { %17932 = vst [vmem:[#allocation25_spill] sm:$0xff] %v14632_v41  ;;  %12197 = vmatprep.subr.bf16.mxu0 %v14632_v41 }
 0x732   :  { %17933 = vst [vmem:[#allocation26_spill] sm:$0xff] %v14638_v25  ;;  %12199 = vmatpush3.bf16.msra.mxu0 %v14638_v25  ;;  %17946 = vst [vmem:[#allocation39_spill] sm:$0xff] %v14882_v53 }
 0x733   :  { %3261 = vmatpush1.bf16.msra.mxu1 %v13214_v11  ;;  %v14643_v11 = vld [vmem:[%s17431_s17 + $0xa0] sm:$0xff] }
 0x734   :  { %3262 = vmatprep.subr.bf16.mxu1 %v13219_v59  ;;  %v14648_v59 = vld [vmem:[%s17431_s17 + $0xa8] sm:$0xff] }
 0x737   :  { %3263 = vmatpush1.bf16.msra.mxu1 %v13217_v2  ;;  %v17504_v2 = vand.u32 4294901760, %v14643_v11 }
 0x738   :  { %3264 = vmatprep.subr.bf16.mxu1 %v13222_v28  ;;  %v17503_v28 = vand.u32 4294901760, %v14648_v59 }
 0x73b   :  { %3265 = vmatpush1.bf16.msra.mxu1 %v13220_v17  ;;  %v14657_v17 = vld [vmem:[%s17431_s17 + $0x20] sm:$0xff] }
 0x73c   :  { %3303 = vmatprep.subr.bf16.mxu1 %v13225_v31  ;;  %v17502_v31 = vand.u32 4294901760, %v14657_v17 }
 0x7f1   :  { %v3032_v42 = vpop.f32.mrb[4].mxu1 }
 0x7f2   :  { %v3039_v57 = vrot.slane %v3032_v42, %v14057_v47  ;;  %v11807_v48 = vpop.f32.mrb[5].mxu1  ;;  %v3047_v26 = vrot.slane %v3032_v42, %v14076_v4 }
 0x7f4   :  { %v3040_v63 = vmul.f32 %v3039_v57, %v14293_v12  ;;  %v3041_v34 = vmul.f32 %v3039_v57, %v14297_v7  ;;  %v3042_v35 = vmul.f32 %v14291_v16, %v3039_v57  ;;  %v3043_v54 = vmul.f32 %v14295_v20, %v3039_v57  ;;  %v13228_v7 = vld [vmem:[%s17929_s13 + $0x2c] ss:$16 sps:$4 sm:$0xff]   ;;  %v13226_v20 = vld [vmem:[%s17929_s13 + $0x28] ss:$16 sps:$4 sm:$0xff]  }
 0x7f5   :  { %v13231_v16 = vld [vmem:[%s17929_s13 + $0x4c] ss:$16 sps:$4 sm:$0xff]   ;;  %v14672_v57 = vpack.c.bf16 %v17503_v28, %v17504_v2  ;;  %v14877_v2 = vsub.f32 %v14567_v30, %v3579_v21  ;;  %v14898_v30 = vsub.f32 %v14584_v14, %v3534_v13  ;;  %v17511_v21 = vand.u32 4294901760, %v14882_v53 }
 0x7f6   :  { %v3048_v58 = vadd.f32 %v3047_v26, %v3040_v63  ;;  %v3049_v5 = vadd.f32 %v3047_v26, %v3041_v34  ;;  %v3050_v32 = vadd.f32 %v3047_v26, %v3042_v35  ;;  %v3051_v60 = vadd.f32 %v3047_v26, %v3043_v54  ;;  %v14683_v26 = vld [vmem:[%s17431_s17 + $0xb0] sm:$0xff]  ;;  %v14688_v63 = vld [vmem:[%s17431_s17 + $0xb8] sm:$0xff] }
 0x7f7   :  { %17934 = vst [vmem:[#allocation27_spill] sm:$0xff] %v14672_v57  ;;  %12201 = vmatprep.subr.bf16.mxu0 %v14672_v57  ;;  %v17496_v34 = vand.u32 4294901760, %v14683_v26  ;;  %v17495_v35 = vand.u32 4294901760, %v14688_v63  ;;  %v14697_v54 = vld [vmem:[%s17431_s17 + $0x30] sm:$0xff]  ;;  %17945 = vst [vmem:[#allocation38_spill] sm:$0xff] %v14877_v2  ;;  %v17510_v0 = vand.u32 4294901760, %v14877_v2  ;;  %v14918_v13 = vsub.f32 %v14603_v27, %v3585_v19 }
 0x7f8   :  { %v3052_v18 = vmax.f32 %v3048_v58, 0.0  ;;  %v3053_v36 = vmax.f32 %v3049_v5, 0.0  ;;  %v3054_v56 = vmax.f32 %v3050_v32, 0.0  ;;  %v3055_v8 = vmax.f32 %v3051_v60, 0.0  ;;  %v14702_v58 = vld [vmem:[%s17431_s17 + $0x38] sm:$0xff]  ;;  %17949 = vst [vmem:[#allocation42_spill] sm:$0xff] %v14898_v30 }
 0x7f9   :  { %v17494_v5 = vand.u32 4294901760, %v14697_v54  ;;  %v17493_v32 = vand.u32 4294901760, %v14702_v58  ;;  %v14712_v60 = vpack.c.bf16 %v17495_v35, %v17496_v34  ;;  %v14843_v35 = vld [vmem:[%s17431_s17 + $0xf0] sm:$0xff]  ;;  %v14848_v34 = vld [vmem:[%s17431_s17 + $0xf8] sm:$0xff]  ;;  %v3758_v14 = vsub.f32 %v14877_v2, %v17510_v0  ;;  %17950 = vst [vmem:[#allocation43_spill] sm:$0xff] %v14918_v13 }
 0x7fa   :  { %v3056_v40 = vpack.c.bf16 %v3053_v36, %v3052_v18  ;;  %v3057_v12 = vpack.c.bf16 %v3055_v8, %v3054_v56  ;;  %v14723_v36 = vld [vmem:[%s17431_s17 + $0xc0] sm:$0xff]  ;;  %v14728_v56 = vld [vmem:[%s17431_s17 + $0xc8] sm:$0xff]  ;;  %v17954_v27 = vand.u32 4294901760, %v14622_v50  ;;  %v17527_v4 = vand.u32 4294901760, %v14918_v13 }
 0x7fb   :  { %17936 = vst [vmem:[#allocation29_spill] sm:$0xff] %v14712_v60  ;;  %v14718_v18 = vpack.c.bf16 %v17493_v32, %v17494_v5  ;;  %v17492_v8 = vand.u32 4294901760, %v14723_v36 }
 0x7fc   :  { %3283 = vmatmul.mubr.bf16.vlgmr.msra.gmra.mrb[8].mxu1 %v3056_v40  ;;  %v14939_v19 = vsub.f32 %v14622_v50, %v17954_v27  ;;  %v17960_v27 = vand.u32 4294901760, %v14648_v59 }
 0x7fd   :  { %3304 = vmatpush1.bf16.msra.mxu1 %v13223_v39  ;;  %3292 = vmatprep.mubr.bf16.mxu1 %v13483_v29  ;;  %17937 = vst [vmem:[#allocation30_spill] sm:$0xff] %v14718_v18  ;;  %v17491_v39 = vand.u32 4294901760, %v14728_v56 }
 0x7fe   :  { %3305 = vmatprep.subr.bf16.mxu1 %v13228_v7  ;;  %v14742_v7 = vld [vmem:[%s17431_s17 + $0x48] sm:$0xff]  ;;  %17955 = vst [vmem:[#allocation46_spill] sm:$0xff] %v14939_v19  ;;  %v17526_v15 = vand.u32 4294901760, %v14939_v19 }
 0x801   :  { %3306 = vmatpush1.bf16.msra.mxu1 %v13226_v20  ;;  %v17485_v20 = vand.u32 4294901760, %v14742_v7 }
 0x802   :  { %3307 = vmatprep.subr.bf16.mxu1 %v13231_v16  ;;  %v14752_v16 = vpack.c.bf16 %v17491_v39, %v17492_v8 }
 0x804   :  { %3293 = vmatmul.mubr.bf16.gmra.mrb[12].mxu1 %v3057_v12  ;;  %17938 = vst [vmem:[#allocation31_spill] sm:$0xff] %v14752_v16 }
 0x805   :  { %3308 = vmatpush1.bf16.msra.mxu1 %v13229_v43  ;;  %3335 = vmatprep.mubr.bf16.mxu1 %v13483_v29 }
 0x806   :  { %3309 = vmatprep.subr.bf16.mxu1 %v13234_v44  ;;  %v14763_v44 = vld [vmem:[%s17431_s17 + $0xd0] sm:$0xff] }
 0x809   :  { %3310 = vmatpush1.bf16.msra.mxu1 %v13232_v52  ;;  %v14768_v52 = vld [vmem:[%s17431_s17 + $0xd8] sm:$0xff] }
 0x80a   :  { %3311 = vmatprep.subr.bf16.mxu1 %v13237_v62  ;;  %v17488_v62 = vand.u32 4294901760, %v14763_v44 }
 0x80d   :  { %3312 = vmatpush1.bf16.msra.mxu1 %v13235_v46  ;;  %v17487_v46 = vand.u32 4294901760, %v14768_v52 }
 0x80e   :  { %3313 = vmatprep.subr.bf16.mxu1 %v13240_v22  ;;  %v14777_v22 = vld [vmem:[%s17431_s17 + $0x50] sm:$0xff] }
 0x811   :  { %3314 = vmatpush1.bf16.msra.mxu1 %v13238_v37  ;;  %v14782_v37 = vld [vmem:[%s17431_s17 + $0x58] sm:$0xff] }
 0x812   :  { %3315 = vmatprep.subr.bf16.mxu1 %v13243_v38  ;;  %v17490_v38 = vand.u32 4294901760, %v14777_v22 }
 0x815   :  { %3316 = vmatpush1.bf16.msra.mxu1 %v13241_v45  ;;  %v17489_v45 = vand.u32 4294901760, %v14782_v37 }
 0x816   :  { %3317 = vmatprep.subr.bf16.mxu1 %v13246_v10  ;;  %v14792_v10 = vpack.c.bf16 %v17487_v46, %v17488_v62 }
 0x818   :  { %17940 = vst [vmem:[#allocation33_spill] sm:$0xff] %v14792_v10 }
 0x819   :  { %3318 = vmatpush1.bf16.msra.mxu1 %v13244_v49  ;;  %v14798_v49 = vpack.c.bf16 %v17489_v45, %v17490_v38  ;;  %v14817_v45 = vld [vmem:[%s17431_s17 + $0x60] sm:$0xff]  ;;  %v14822_v38 = vld [vmem:[%s17431_s17 + $0x68] sm:$0xff] }
 0x81a   :  { %12097 = vmatprep.subr.bf16.mxu1 %v14592_v23  ;;  %v17500_v39 = vand.u32 4294901760, %v14817_v45  ;;  %v17499_v8 = vand.u32 4294901760, %v14822_v38 }
 0x81b   :  { %17941 = vst [vmem:[#allocation34_spill] sm:$0xff] %v14798_v49 }
 0x81c   :  { %3336 = vmatmul.mubr.bf16.vlgmr.msra.gmra.mrb[16].mxu1 %v3056_v40  ;;  %v14737_v40 = vld [vmem:[%s17431_s17 + $0x40] sm:$0xff]  ;;  %v14838_v5 = vpack.c.bf16 %v17499_v8, %v17500_v39  ;;  %v14857_v8 = vld [vmem:[%s17431_s17 + $0x70] sm:$0xff]  ;;  %v14862_v39 = vld [vmem:[%s17431_s17 + $0x78] sm:$0xff] }
 0x81d   :  { %3345 = vmatprep.mubr.bf16.mxu1 %v13483_v29  ;;  %12099 = vmatpush3.bf16.msra.mxu1 %v14598_v24  ;;  %v14662_v29 = vld [vmem:[%s17431_s17 + $0x28] sm:$0xff] }
 0x81e   :  { %12101 = vmatprep.subr.bf16.mxu1 %v14632_v41  ;;  %v17501_v42 = vand.u32 4294901760, %v14662_v29  ;;  %17943 = vst [vmem:[#allocation36_spill] sm:$0xff] %v14838_v5 }
 0x820   :  { %v14678_v48 = vpack.c.bf16 %v17501_v42, %v17502_v31  ;;  %v17509_v42 = vand.u32 4294901760, %v14857_v8  ;;  %v17508_v31 = vand.u32 4294901760, %v14862_v39 }
 0x821   :  { %12103 = vmatpush3.bf16.msra.mxu1 %v14638_v25 }
 0x822   :  { %17935 = vst [vmem:[#allocation28_spill] sm:$0xff] %v14678_v48  ;;  %12105 = vmatprep.subr.bf16.mxu1 %v14672_v57  ;;  %12203 = vmatpush3.bf16.msra.mxu0 %v14678_v48  ;;  %v14888_v9 = vpack.c.bf16 %v17508_v31, %v17509_v42  ;;  %v14923_v31 = vsub.f32 %v14608_v33, %v3588_v3  ;;  %v3759_v33 = vand.u32 4294901760, %v3758_v14 }
 0x823   :  { %12205 = vmatprep.subr.bf16.mxu0 %v14712_v60 }
 0x824   :  { %3346 = vmatmul.mubr.bf16.gmra.mrb[20].mxu1 %v3057_v12  ;;  %v17486_v12 = vand.u32 4294901760, %v14737_v40  ;;  %17947 = vst [vmem:[#allocation40_spill] sm:$0xff] %v14888_v9  ;;  %17951 = vst [vmem:[#allocation44_spill] sm:$0xff] %v14923_v31 }
 0x825   :  { %12107 = vmatpush3.bf16.msra.mxu1 %v14678_v48 }
 0x826   :  { %12109 = vmatprep.subr.bf16.mxu1 %v14712_v60  ;;  %12207 = vmatpush3.bf16.msra.mxu0 %v14718_v18  ;;  %v14758_v43 = vpack.c.bf16 %v17485_v20, %v17486_v12  ;;  %v14803_v20 = vld [vmem:[%s17431_s17 + $0xe0] sm:$0xff]  ;;  %v14808_v12 = vld [vmem:[%s17431_s17 + $0xe8] sm:$0xff] }
 0x827   :  { %12209 = vmatprep.subr.bf16.mxu0 %v14752_v16  ;;  %v17498_v46 = vand.u32 4294901760, %v14803_v20  ;;  %v17497_v62 = vand.u32 4294901760, %v14808_v12 }
 0x828   :  { %17939 = vst [vmem:[#allocation32_spill] sm:$0xff] %v14758_v43 }
 0x829   :  { %12111 = vmatpush3.bf16.msra.mxu1 %v14718_v18  ;;  %v14832_v32 = vpack.c.bf16 %v17497_v62, %v17498_v46  ;;  %v17512_v62 = vand.u32 4294901760, %v14843_v35  ;;  %v17507_v46 = vand.u32 4294901760, %v14848_v34 }
 0x82a   :  { %12113 = vmatprep.subr.bf16.mxu1 %v14752_v16  ;;  %12211 = vmatpush3.bf16.msra.mxu0 %v14758_v43 }
 0x82b   :  { %12213 = vmatprep.subr.bf16.mxu0 %v14792_v10  ;;  %17942 = vst [vmem:[#allocation35_spill] sm:$0xff] %v14832_v32  ;;  %v14872_v28 = vpack.c.bf16 %v17507_v46, %v17512_v62  ;;  %v14893_v46 = vsub.f32 %v14579_v1, %v3531_v61  ;;  %v17520_v1 = vand.u32 4294901760, %v14898_v30  ;;  %v3765_v61 = vsub.f32 %v14882_v53, %v17511_v21 }
 0x82c   :  { %v17952_v21 = vand.u32 4294901760, %v14617_v6 }
 0x82d   :  { %12115 = vmatpush3.bf16.msra.mxu1 %v14758_v43  ;;  %17944 = vst [vmem:[#allocation37_spill] sm:$0xff] %v14872_v28  ;;  %17948 = vst [vmem:[#allocation41_spill] sm:$0xff] %v14893_v46  ;;  %v17515_v55 = vand.u32 4294901760, %v14893_v46  ;;  %v3653_v0 = vsub.f32 %v14898_v30, %v17520_v1  ;;  %v3766_v3 = vand.u32 4294901760, %v3765_v61  ;;  %v3667_v61 = vsub.f32 %v14939_v19, %v17526_v15 }
 0x82e   :  { %12117 = vmatprep.subr.bf16.mxu1 %v14792_v10  ;;  %12215 = vmatpush3.bf16.msra.mxu0 %v14798_v49  ;;  %v14934_v62 = vsub.f32 %v14617_v6, %v17952_v21  ;;  %v3772_v6 = vsub.f32 %v14918_v13, %v17527_v4  ;;  %v17957_v21 = vand.u32 4294901760, %v14643_v11  ;;  %v17964_v4 = vand.u32 4294901760, %v14662_v29 }
 0x82f   :  { %12217 = vmatprep.subr.bf16.mxu0 %v14832_v32  ;;  %v3646_v42 = vsub.f32 %v14893_v46, %v17515_v55  ;;  %v17525_v55 = vand.u32 4294901760, %v14923_v31  ;;  %v3654_v47 = vand.u32 4294901760, %v3653_v0  ;;  %v14945_v51 = vpack.c.bf16 %v3766_v3, %v3759_v33 }
 0x830   :  { %17953 = vst [vmem:[#allocation45_spill] sm:$0xff] %v14934_v62  ;;  %v17524_v1 = vand.u32 4294901760, %v14934_v62  ;;  %v14956_v14 = vsub.f32 %v14643_v11, %v17957_v21  ;;  %v14969_v33 = vsub.f32 %v14648_v59, %v17960_v27  ;;  %v3773_v3 = vand.u32 4294901760, %v3772_v6 }
 0x831   :  { %12119 = vmatpush3.bf16.msra.mxu1 %v14798_v49  ;;  %17956 = vst [vmem:[#allocation47_spill] sm:$0xff] %v14945_v51  ;;  %v3779_v50 = vsub.f32 %v14923_v31, %v17525_v55  ;;  %v3668_v55 = vand.u32 4294901760, %v3667_v61  ;;  %v14982_v59 = vsub.f32 %v14662_v29, %v17964_v4  ;;  %v18001_v43 = vand.u32 4294901760, %v14808_v12 }
 0x832   :  { %12121 = vmatprep.subr.bf16.mxu1 %v14832_v32  ;;  %12219 = vmatpush3.bf16.msra.mxu0 %v14838_v5  ;;  %17958 = vst [vmem:[#allocation48_spill] sm:$0xff] %v14956_v14  ;;  %v3660_v0 = vsub.f32 %v14934_v62, %v17524_v1  ;;  %17961 = vst [vmem:[#allocation50_spill] sm:$0xff] %v14969_v33  ;;  %v17529_v15 = vand.u32 4294901760, %v14969_v33 }
 0x833   :  { %12221 = vmatprep.subr.bf16.mxu0 %v14872_v28  ;;  %v3780_v11 = vand.u32 4294901760, %v3779_v50  ;;  %17965 = vst [vmem:[#allocation52_spill] sm:$0xff] %v14982_v59  ;;  %v17532_v29 = vand.u32 4294901760, %v14982_v59 }
 0x834   :  { %v3661_v1 = vand.u32 4294901760, %v3660_v0  ;;  %v3793_v4 = vsub.f32 %v14969_v33, %v17529_v15 }
 0x835   :  { %12123 = vmatpush3.bf16.msra.mxu1 %v14838_v5  ;;  %v14984_v27 = vpack.c.bf16 %v3780_v11, %v3773_v3  ;;  %v17970_v3 = vand.u32 4294901760, %v14688_v63  ;;  %v3681_v15 = vsub.f32 %v14982_v59, %v17532_v29  ;;  %v17980_v5 = vand.u32 4294901760, %v14728_v56 }
 0x836   :  { %12125 = vmatprep.subr.bf16.mxu1 %v14872_v28  ;;  %12223 = vmatpush3.bf16.msra.mxu0 %v14888_v9  ;;  %v14995_v61 = vpack.c.bf16 %v3668_v55, %v3661_v1  ;;  %v17972_v55 = vand.u32 4294901760, %v14697_v54 }
 0x837   :  { %12257 = vmatprep.subr.bf16.mxu0 %v14592_v23  ;;  %v3647_v23 = vand.u32 4294901760, %v3646_v42  ;;  %17966 = vst [vmem:[#allocation53_spill] sm:$0xff] %v14984_v27  ;;  %v15004_v11 = vsub.f32 %v14688_v63, %v17970_v3  ;;  %v3682_v63 = vand.u32 4294901760, %v3681_v15 }
 0x838   :  { %17969 = vst [vmem:[#allocation55_spill] sm:$0xff] %v14995_v61  ;;  %v15013_v1 = vsub.f32 %v14697_v54, %v17972_v55 }
 0x839   :  { %12127 = vmatpush3.bf16.msra.mxu1 %v14888_v9  ;;  %v14958_v42 = vpack.c.bf16 %v3654_v47, %v3647_v23  ;;  %v17528_v47 = vand.u32 4294901760, %v14956_v14  ;;  %v17962_v23 = vand.u32 4294901760, %v14657_v17  ;;  %17971 = vst [vmem:[#allocation56_spill] sm:$0xff] %v15004_v11  ;;  %v17979_v9 = vand.u32 4294901760, %v15004_v11 }
 0x83a   :  { %12129 = vmatprep.subr.bf16.mxu1 %v14945_v51  ;;  %17973 = vst [vmem:[#allocation57_spill] sm:$0xff] %v15013_v1  ;;  %v17540_v54 = vand.u32 4294901760, %v15013_v1 }
 0x83b   :  { %17959 = vst [vmem:[#allocation49_spill] sm:$0xff] %v14958_v42  ;;  %v14976_v21 = vsub.f32 %v14657_v17, %v17962_v23  ;;  %v3786_v6 = vsub.f32 %v14956_v14, %v17528_v47  ;;  %v17967_v17 = vand.u32 4294901760, %v14683_v26 }
 0x83d   :  { %17963 = vst [vmem:[#allocation51_spill] sm:$0xff] %v14976_v21  ;;  %v17530_v50 = vand.u32 4294901760, %v14976_v21  ;;  %v14993_v0 = vsub.f32 %v14683_v26, %v17967_v17  ;;  %v3787_v23 = vand.u32 4294901760, %v3786_v6  ;;  %v3794_v17 = vand.u32 4294901760, %v3793_v4 }
 0x83e   :  { %v17974_v6 = vand.u32 4294901760, %v14702_v58  ;;  %v17976_v4 = vand.u32 4294901760, %v14723_v36 }
 0x83f   :  { %17968 = vst [vmem:[#allocation54_spill] sm:$0xff] %v14993_v0  ;;  %v3674_v47 = vsub.f32 %v14976_v21, %v17530_v50  ;;  %v17535_v26 = vand.u32 4294901760, %v14993_v0  ;;  %v15033_v29 = vpack.c.bf16 %v3794_v17, %v3787_v23 }
 0x840   :  { %v15022_v3 = vsub.f32 %v14702_v58, %v17974_v6  ;;  %v15031_v55 = vsub.f32 %v14723_v36, %v17976_v4  ;;  %v3807_v58 = vsub.f32 %v15004_v11, %v17979_v9  ;;  %v15046_v36 = vsub.f32 %v14728_v56, %v17980_v5 }
 0x841   :  { %v3675_v50 = vand.u32 4294901760, %v3674_v47  ;;  %v3800_v51 = vsub.f32 %v14993_v0, %v17535_v26  ;;  %17978 = vst [vmem:[#allocation60_spill] sm:$0xff] %v15033_v29  ;;  %v3688_v26 = vsub.f32 %v15013_v1, %v17540_v54  ;;  %v17985_v56 = vand.u32 4294901760, %v14742_v7 }
 0x842   :  { %17975 = vst [vmem:[#allocation58_spill] sm:$0xff] %v15022_v3  ;;  %17977 = vst [vmem:[#allocation59_spill] sm:$0xff] %v15031_v55  ;;  %v17541_v47 = vand.u32 4294901760, %v15022_v3  ;;  %v17542_v28 = vand.u32 4294901760, %v15031_v55  ;;  %v3808_v15 = vand.u32 4294901760, %v3807_v58  ;;  %v17545_v5 = vand.u32 4294901760, %v15046_v36 }
 0x843   :  { %v3801_v6 = vand.u32 4294901760, %v3800_v51  ;;  %17981 = vst [vmem:[#allocation61_spill] sm:$0xff] %v15046_v36  ;;  %v15048_v23 = vpack.c.bf16 %v3682_v63, %v3675_v50  ;;  %v17983_v51 = vand.u32 4294901760, %v14737_v40  ;;  %v3689_v4 = vand.u32 4294901760, %v3688_v26 }
 0x844   :  { %v3695_v9 = vsub.f32 %v15022_v3, %v17541_v47  ;;  %v3814_v54 = vsub.f32 %v15031_v55, %v17542_v28  ;;  %v15065_v50 = vsub.f32 %v14742_v7, %v17985_v56  ;;  %v3821_v28 = vsub.f32 %v15046_v36, %v17545_v5 }
 0x845   :  { %17982 = vst [vmem:[#allocation62_spill] sm:$0xff] %v15048_v23  ;;  %v15056_v17 = vsub.f32 %v14737_v40, %v17983_v51  ;;  %v15067_v63 = vpack.c.bf16 %v3808_v15, %v3801_v6  ;;  %v17988_v40 = vand.u32 4294901760, %v14763_v44  ;;  %v17990_v7 = vand.u32 4294901760, %v14768_v52 }
 0x846   :  { %17986 = vst [vmem:[#allocation64_spill] sm:$0xff] %v15065_v50  ;;  %v3696_v58 = vand.u32 4294901760, %v3695_v9  ;;  %v3815_v51 = vand.u32 4294901760, %v3814_v54  ;;  %v17547_v32 = vand.u32 4294901760, %v15065_v50  ;;  %v17993_v54 = vand.u32 4294901760, %v14777_v22 }
 0x847   :  { %17984 = vst [vmem:[#allocation63_spill] sm:$0xff] %v15056_v17  ;;  %17987 = vst [vmem:[#allocation65_spill] sm:$0xff] %v15067_v63  ;;  %v17546_v47 = vand.u32 4294901760, %v15056_v17  ;;  %v15073_v26 = vsub.f32 %v14763_v44, %v17988_v40  ;;  %v15082_v6 = vsub.f32 %v14768_v52, %v17990_v7  ;;  %v3822_v40 = vand.u32 4294901760, %v3821_v28 }
 0x848   :  { %v15084_v15 = vpack.c.bf16 %v3696_v58, %v3689_v4  ;;  %v15093_v56 = vsub.f32 %v14777_v22, %v17993_v54  ;;  %v3709_v5 = vsub.f32 %v15065_v50, %v17547_v32  ;;  %v17995_v4 = vand.u32 4294901760, %v14782_v37 }
 0x849   :  { %17989 = vst [vmem:[#allocation66_spill] sm:$0xff] %v15073_v26  ;;  %17991 = vst [vmem:[#allocation67_spill] sm:$0xff] %v15082_v6  ;;  %v3702_v9 = vsub.f32 %v15056_v17, %v17546_v47  ;;  %v17550_v44 = vand.u32 4294901760, %v15073_v26  ;;  %v17997_v28 = vand.u32 4294901760, %v14803_v20  ;;  %v15113_v32 = vpack.c.bf16 %v3822_v40, %v3815_v51 }
 0x84a   :  { %17992 = vst [vmem:[#allocation68_spill] sm:$0xff] %v15084_v15  ;;  %17994 = vst [vmem:[#allocation69_spill] sm:$0xff] %v15093_v56  ;;  %v15102_v58 = vsub.f32 %v14782_v37, %v17995_v4  ;;  %v17555_v22 = vand.u32 4294901760, %v15093_v56  ;;  %v3710_v52 = vand.u32 4294901760, %v3709_v5  ;;  %v18000_v49 = vand.u32 4294901760, %v15082_v6 }
 0x84b   :  { %v3703_v7 = vand.u32 4294901760, %v3702_v9  ;;  %v3828_v47 = vsub.f32 %v15073_v26, %v17550_v44  ;;  %v15111_v54 = vsub.f32 %v14803_v20, %v17997_v28  ;;  %17999 = vst [vmem:[#allocation72_spill] sm:$0xff] %v15113_v32  ;;  %v15126_v20 = vsub.f32 %v14808_v12, %v18001_v43 }
 0x84c   :  { %17996 = vst [vmem:[#allocation70_spill] sm:$0xff] %v15102_v58  ;;  %v3835_v37 = vsub.f32 %v15082_v6, %v18000_v49  ;;  %v17556_v9 = vand.u32 4294901760, %v15102_v58  ;;  %v3716_v44 = vsub.f32 %v15093_v56, %v17555_v22  ;;  %v18006_v43 = vand.u32 4294901760, %v14822_v38 }
 0x84d   :  { %17998 = vst [vmem:[#allocation71_spill] sm:$0xff] %v15111_v54  ;;  %v3829_v4 = vand.u32 4294901760, %v3828_v47  ;;  %v17557_v10 = vand.u32 4294901760, %v15111_v54  ;;  %18002 = vst [vmem:[#allocation73_spill] sm:$0xff] %v15126_v20  ;;  %v15128_v51 = vpack.c.bf16 %v3710_v52, %v3703_v7  ;;  %v18004_v47 = vand.u32 4294901760, %v14817_v45 }
 0x84e   :  { %v3836_v5 = vand.u32 4294901760, %v3835_v37  ;;  %v3723_v49 = vsub.f32 %v15102_v58, %v17556_v9  ;;  %v3717_v28 = vand.u32 4294901760, %v3716_v44  ;;  %v17559_v12 = vand.u32 4294901760, %v15126_v20 }
 0x84f   :  { %18003 = vst [vmem:[#allocation74_spill] sm:$0xff] %v15128_v51  ;;  %v15136_v40 = vsub.f32 %v14817_v45, %v18004_v47  ;;  %v3842_v22 = vsub.f32 %v15111_v54, %v17557_v10  ;;  %v15145_v52 = vsub.f32 %v14822_v38, %v18006_v43  ;;  %v18009_v45 = vand.u32 4294901760, %v14843_v35 }
 0x850   :  { %v15147_v7 = vpack.c.bf16 %v3836_v5, %v3829_v4  ;;  %v3724_v37 = vand.u32 4294901760, %v3723_v49  ;;  %v3849_v10 = vsub.f32 %v15126_v20, %v17559_v12  ;;  %v18011_v38 = vand.u32 4294901760, %v14848_v34 }
 0x851   :  { %18005 = vst [vmem:[#allocation75_spill] sm:$0xff] %v15136_v40  ;;  %18007 = vst [vmem:[#allocation76_spill] sm:$0xff] %v15145_v52  ;;  %v17560_v9 = vand.u32 4294901760, %v15136_v40  ;;  %v15153_v44 = vsub.f32 %v14843_v35, %v18009_v45  ;;  %v3843_v47 = vand.u32 4294901760, %v3842_v22  ;;  %v17562_v51 = vand.u32 4294901760, %v15145_v52 }
 0x852   :  { %18008 = vst [vmem:[#allocation77_spill] sm:$0xff] %v15147_v7  ;;  %v15162_v4 = vsub.f32 %v14848_v34, %v18011_v38  ;;  %v15164_v5 = vpack.c.bf16 %v3724_v37, %v3717_v28  ;;  %v3850_v22 = vand.u32 4294901760, %v3849_v10  ;;  %v18014_v28 = vand.u32 4294901760, %v14857_v8 }
 0x853   :  { %18010 = vst [vmem:[#allocation78_spill] sm:$0xff] %v15153_v44  ;;  %v3730_v49 = vsub.f32 %v15136_v40, %v17560_v9  ;;  %v17565_v35 = vand.u32 4294901760, %v15153_v44  ;;  %v3737_v43 = vsub.f32 %v15145_v52, %v17562_v51  ;;  %v18016_v7 = vand.u32 4294901760, %v14862_v39 }
 0x854   :  { %18012 = vst [vmem:[#allocation79_spill] sm:$0xff] %v15162_v4  ;;  %18013 = vst [vmem:[#allocation80_spill] sm:$0xff] %v15164_v5  ;;  %v17570_v45 = vand.u32 4294901760, %v15162_v4  ;;  %v3742_v37 = vsub.f32 %v14857_v8, %v18014_v28  ;;  %v15180_v38 = vpack.c.bf16 %v3850_v22, %v3843_v47  ;;  %v15194_v22 = vpack.c.bf16 %v14882_v53, %v14877_v2 }
 0x855   :  { %v3731_v12 = vand.u32 4294901760, %v3730_v49  ;;  %v3856_v34 = vsub.f32 %v15153_v44, %v17565_v35  ;;  %v3738_v9 = vand.u32 4294901760, %v3737_v43  ;;  %v3749_v49 = vsub.f32 %v14862_v39, %v18016_v7 }
 0x856   :  { %18015 = vst [vmem:[#allocation81_spill] sm:$0xff] %v15180_v38  ;;  %v3863_v10 = vsub.f32 %v15162_v4, %v17570_v45  ;;  %v3743_v51 = vand.u32 4294901760, %v3742_v37  ;;  %18019 = vst [vmem:[#allocation84_spill] sm:$0xff] %v15194_v22  ;;  %v15204_v39 = vpack.c.bf16 %v14923_v31, %v14918_v13  ;;  %v15220_v7 = vpack.c.bf16 %v15004_v11, %v14993_v0 }
 0x857   :  { %v3857_v5 = vand.u32 4294901760, %v3856_v34  ;;  %v15188_v32 = vpack.c.bf16 %v3738_v9, %v3731_v12  ;;  %v3750_v16 = vand.u32 4294901760, %v3749_v49  ;;  %v15198_v34 = vpack.c.bf16 %v14898_v30, %v14893_v46 }
 0x858   :  { %v3864_v35 = vand.u32 4294901760, %v3863_v10  ;;  %v3744_v15 = vsub.f32 %v3742_v37, %v3743_v51  ;;  %18022 = vst [vmem:[#allocation87_spill] sm:$0xff] %v15204_v39  ;;  %v15208_v9 = vpack.c.bf16 %v14939_v19, %v14934_v62  ;;  %v15216_v12 = vpack.c.bf16 %v14982_v59, %v14976_v21  ;;  %v15313_v59 = vld [vmem:[%s17431_s17 + $0x100] sm:$0xff] }
 0x859   :  { %18017 = vst [vmem:[#allocation82_spill] sm:$0xff] %v15188_v32  ;;  %v3751_v47 = vsub.f32 %v3749_v49, %v3750_v16  ;;  %18020 = vst [vmem:[#allocation85_spill] sm:$0xff] %v15198_v34  ;;  %v15232_v10 = vpack.c.bf16 %v15065_v50, %v15056_v17  ;;  %v15248_v45 = vpack.c.bf16 %v15145_v52, %v15136_v40 }
 0x85a   :  { %v15190_v63 = vpack.c.bf16 %v3864_v35, %v3857_v5  ;;  %v3745_v8 = vand.u32 4294901760, %v3744_v15  ;;  %v15212_v15 = vpack.c.bf16 %v14969_v33, %v14956_v14  ;;  %v15224_v5 = vpack.c.bf16 %v15022_v3, %v15013_v1 }
 0x85b   :  { %v3752_v43 = vand.u32 4294901760, %v3751_v47  ;;  %v15228_v35 = vpack.c.bf16 %v15046_v36, %v15031_v55  ;;  %18025 = vst [vmem:[#allocation90_spill] sm:$0xff] %v15232_v10  ;;  %v15240_v47 = vpack.c.bf16 %v15102_v58, %v15093_v56  ;;  %18029 = vst [vmem:[#allocation94_spill] sm:$0xff] %v15248_v45  ;;  %v15252_v50 = vpack.c.bf16 %v15162_v4, %v15153_v44 }
 0x85c   :  { %18018 = vst [vmem:[#allocation83_spill] sm:$0xff] %v15190_v63  ;;  %18023 = vst [vmem:[#allocation88_spill] sm:$0xff] %v15224_v5  ;;  %v15254_v17 = vpack.c.bf16 %v3749_v49, %v3742_v37  ;;  %v15276_v44 = vpack.c.bf16 %v3750_v16, %v3743_v51 }
 0x85d   :  { %v15200_v28 = vpack.c.bf16 %v3752_v43, %v3745_v8  ;;  %18024 = vst [vmem:[#allocation89_spill] sm:$0xff] %v15228_v35  ;;  %v15236_v8 = vpack.c.bf16 %v15082_v6, %v15073_v26  ;;  %18027 = vst [vmem:[#allocation92_spill] sm:$0xff] %v15240_v47  ;;  %v15244_v43 = vpack.c.bf16 %v15126_v20, %v15111_v54 }
 0x85e   :  { %18030 = vst [vmem:[#allocation95_spill] sm:$0xff] %v15252_v50  ;;  %18031 = vst [vmem:[#allocation96_spill] sm:$0xff] %v15254_v17 }
 0x85f   :  { %18021 = vst [vmem:[#allocation86_spill] sm:$0xff] %v15200_v28  ;;  %18026 = vst [vmem:[#allocation91_spill] sm:$0xff] %v15236_v8 }
 0x860   :  { %18028 = vst [vmem:[#allocation93_spill] sm:$0xff] %v15244_v43  ;;  %18036 = vst [vmem:[#allocation101_spill] sm:$0xff] %v15276_v44 }
 0x8cf   :  { %v15256_v6 = vpop.f32.mrb[8].mxu1 }
 0x8d0   :  { %18032 = vst [vmem:[#allocation97_spill] sm:$0xff] %v15256_v6  ;;  %v15258_v26 = vpop.f32.mrb[9].mxu1  ;;  %v3474_v20 = vmul.f32 %v15256_v6, %v15256_v6 }
 0x8d1   :  { %18033 = vst [vmem:[#allocation98_spill] sm:$0xff] %v15258_v26  ;;  %v15260_v58 = vpop.f32.mrb[10].mxu1  ;;  %v3475_v37 = vmul.f32 %v15258_v26, %v15258_v26 }
 0x8d2   :  { %18034 = vst [vmem:[#allocation99_spill] sm:$0xff] %v15260_v58  ;;  %v3438_v54 = vadd.f32 %v15260_v58, %v15256_v6  ;;  %v3478_v52 = vmul.f32 %v15260_v58, %v15260_v58  ;;  %v15268_v40 = vpop.f32.mrb[11].mxu1 }
 0x8d3   :  { %18035 = vst [vmem:[#allocation100_spill] sm:$0xff] %v15268_v40  ;;  %v3447_v49 = vadd.f32 %v15268_v40, %v15258_v26  ;;  %v3479_v4 = vmul.f32 %v15268_v40, %v15268_v40 }
 0x8d4   :  { %v3490_v56 = vadd.f32 %v3478_v52, %v3474_v20 }
 0x8d5   :  { %v3499_v36 = vadd.f32 %v3479_v4, %v3475_v37 }
 0x8d7   :  { %v15278_v55 = vpop.f32.mrb[12].mxu1 }
 0x8d8   :  { %18037 = vst [vmem:[#allocation102_spill] sm:$0xff] %v15278_v55  ;;  %v3439_v6 = vadd.f32 %v3438_v54, %v15278_v55  ;;  %v3482_v58 = vmul.f32 %v15278_v55, %v15278_v55  ;;  %v15283_v3 = vpop.f32.mrb[13].mxu1 }
 0x8d9   :  { %18038 = vst [vmem:[#allocation103_spill] sm:$0xff] %v15283_v3  ;;  %v3448_v1 = vadd.f32 %v3447_v49, %v15283_v3  ;;  %v3483_v26 = vmul.f32 %v15283_v3, %v15283_v3  ;;  %v15288_v11 = vpop.f32.mrb[14].mxu1  ;;  %v15301_v3 = vld [vmem:[%s17431_s17 + $0x180] sm:$0xff] }
 0x8da   :  { %18039 = vst [vmem:[#allocation104_spill] sm:$0xff] %v15288_v11  ;;  %v3491_v16 = vadd.f32 %v3490_v56, %v3482_v58  ;;  %v3440_v20 = vadd.f32 %v3439_v6, %v15288_v11  ;;  %v3486_v51 = vmul.f32 %v15288_v11, %v15288_v11  ;;  %v15293_v52 = vpop.f32.mrb[15].mxu1  ;;  %v15306_v6 = vld [vmem:[%s17431_s17 + $0x188] sm:$0xff] }
 0x8db   :  { %18040 = vst [vmem:[#allocation105_spill] sm:$0xff] %v15293_v52  ;;  %v3500_v54 = vadd.f32 %v3499_v36, %v3483_v26  ;;  %v3449_v4 = vadd.f32 %v3448_v1, %v15293_v52  ;;  %v3487_v37 = vmul.f32 %v15293_v52, %v15293_v52  ;;  %v17601_v52 = vand.u32 4294901760, %v15301_v3 }
 0x8dc   :  { %v3441_v49 = vrot.slane %v3440_v20, 4  ;;  %v3492_v40 = vadd.f32 %v3491_v16, %v3486_v51  ;;  %v17602_v16 = vand.u32 4294901760, %v15306_v6 }
 0x8dd   :  { %v3450_v56 = vrot.slane %v3449_v4, 4  ;;  %v3501_v58 = vadd.f32 %v3500_v54, %v3487_v37 }
 0x8de   :  { %v3442_v36 = vadd.f32 %v3441_v49, %v3440_v20  ;;  %v3493_v26 = vrot.slane %v3492_v40, 4  ;;  %v15318_v20 = vld [vmem:[%s17431_s17 + $0x108] sm:$0xff] }
 0x8df   :  { %v3451_v1 = vadd.f32 %v3450_v56, %v3449_v4  ;;  %v3502_v11 = vrot.slane %v3501_v58, 4  ;;  %18041 = vst [vmem:[#allocation106_spill] sm:$0xff] %v15318_v20  ;;  %v17605_v56 = vand.u32 4294901760, %v15313_v59 }
 0x8e0   :  { %v3443_v51 = vrot.slane %v3442_v36, 2  ;;  %v3494_v55 = vadd.f32 %v3493_v26, %v3492_v40  ;;  %v15323_v40 = vsub.f32 %v15301_v3, %v17601_v52  ;;  %v18047_v52 = vand.u32 4294901760, %v15318_v20 }
 0x8e1   :  { %v3452_v44 = vrot.slane %v3451_v1, 2  ;;  %v3503_v0 = vadd.f32 %v3502_v11, %v3501_v58  ;;  %v15328_v11 = vsub.f32 %v15306_v6, %v17602_v16 }
 0x8e2   :  { %v3444_v21 = vadd.f32 %v3443_v51, %v3442_v36  ;;  %v3495_v33 = vrot.slane %v3494_v55, 2  ;;  %18042 = vst [vmem:[#allocation107_spill] sm:$0xff] %v15323_v40  ;;  %v15353_v16 = vsub.f32 %v15318_v20, %v18047_v52 }
 0x8e3   :  { %v3453_v54 = vadd.f32 %v3452_v44, %v3451_v1  ;;  %v3504_v4 = vrot.slane %v3503_v0, 2  ;;  %18043 = vst [vmem:[#allocation108_spill] sm:$0xff] %v15328_v11  ;;  %v15335_v44 = vld [vmem:[%s17431_s17 + $0x190] sm:$0xff]  ;;  %v18053_v52 = vand.u32 4294901760, %v15328_v11 }
 0x8e4   :  { %v3445_v37 = vrot.slane %v3444_v21, 1  ;;  %v3496_v49 = vadd.f32 %v3495_v33, %v3494_v55  ;;  %18044 = vst [vmem:[#allocation109_spill] sm:$0xff] %v15335_v44  ;;  %v15342_v33 = vsub.f32 %v15313_v59, %v17605_v56  ;;  %v17606_v55 = vand.u32 4294901760, %v15335_v44  ;;  %18048 = vst [vmem:[#allocation112_spill] sm:$0xff] %v15353_v16 }
 0x8e5   :  { %v3454_v58 = vrot.slane %v3453_v54, 1  ;;  %v3505_v36 = vadd.f32 %v3504_v4, %v3503_v0  ;;  %v15347_v0 = vld [vmem:[%s17431_s17 + $0x198] sm:$0xff]  ;;  %v18051_v56 = vand.u32 4294901760, %v15323_v40  ;;  %v18062_v46 = vand.u32 4294901760, %v15353_v16 }
 0x8e6   :  { %v3497_v1 = vrot.slane %v3496_v49, 1  ;;  %v3446_v14 = vadd.f32 %v3445_v37, %v3444_v21  ;;  %18045 = vst [vmem:[#allocation110_spill] sm:$0xff] %v15342_v33  ;;  %18046 = vst [vmem:[#allocation111_spill] sm:$0xff] %v15347_v0  ;;  %v15359_v37 = vld [vmem:[%s17431_s17 + $0x110] sm:$0xff]  ;;  %v18060_v62 = vand.u32 4294901760, %v15342_v33 }
 0x8e7   :  { %v3506_v51 = vrot.slane %v3505_v36, 1  ;;  %v3455_v4 = vadd.f32 %v3454_v58, %v3453_v54  ;;  %18049 = vst [vmem:[#allocation113_spill] sm:$0xff] %v15359_v37  ;;  %v4620_v54 = vsub.f32 %v15323_v40, %v18051_v56 }
 0x8e8   :  { %v3498_v19 = vadd.f32 %v3497_v1, %v3496_v49  ;;  %v15406_v31 = vsub.f32 %v15342_v33, %v18060_v62  ;;  %v15426_v62 = vld [vmem:[%s17431_s17 + $0x1a0] sm:$0xff] }
 0x8e9   :  { %v3507_v26 = vadd.f32 %v3506_v51, %v3505_v36 }
 0x8ea   :  { %v3526_v21 = vsel %vm349_vm1, %v3446_v14, %v3498_v19  ;;  %v4627_v19 = vsub.f32 %v15328_v11, %v18053_v52  ;;  %v15390_v52 = vld [vmem:[%s17431_s17 + $0x118] sm:$0xff]  ;;  %v4621_v11 = vand.u32 4294901760, %v4620_v54 }
 0x8eb   :  { %v3527_v49 = vsel %vm349_vm1, %v3455_v4, %v3507_v26  ;;  %v15362_v1 = vand.u32 4294901760, %v3526_v21  ;;  %v15377_v26 = vsub.f32 %v15335_v44, %v17606_v55 }
 0x8ec   :  { %v15368_v36 = vand.u32 4294901760, %v3527_v49  ;;  %v4628_v4 = vand.u32 4294901760, %v4627_v19  ;;  %v18063_v19 = vand.u32 4294901760, %v15359_v37 }
 0x8ed   :  { %18050 = vst [vmem:[#allocation114_spill] sm:$0xff] %v15362_v1  ;;  %18054 = vst [vmem:[#allocation116_spill] sm:$0xff] %v15377_v26  ;;  %v15380_v51 = vsub.f32 %v3526_v21, %v15362_v1  ;;  %v18057_v21 = vand.u32 4294901760, %v15347_v0 }
 0x8ee   :  { %18052 = vst [vmem:[#allocation115_spill] sm:$0xff] %v15368_v36  ;;  %v15385_v58 = vsub.f32 %v3527_v49, %v15368_v36  ;;  %v15421_v53 = vsub.f32 %v15359_v37, %v18063_v19 }
 0x8ef   :  { %18055 = vst [vmem:[#allocation117_spill] sm:$0xff] %v15380_v51  ;;  %v15392_v14 = vpop.f32.mrb[16].mxu1  ;;  %v3634_v55 = vand.u32 4294901760, %v15380_v51  ;;  %v15398_v40 = vsub.f32 %v15347_v0, %v18057_v21  ;;  %v15415_v21 = vsub.f32 %v15353_v16, %v18062_v46 }
 0x8f0   :  { %18056 = vst [vmem:[#allocation118_spill] sm:$0xff] %v15392_v14  ;;  %v15400_v56 = vpop.f32.mrb[17].mxu1  ;;  %v3628_v49 = vand.u32 4294901760, %v15385_v58  ;;  %18064 = vst [vmem:[#allocation122_spill] sm:$0xff] %v15421_v53  ;;  %v3476_v13 = vmul.f32 %v15392_v14, %v15392_v14 }
 0x8f1   :  { %18058 = vst [vmem:[#allocation119_spill] sm:$0xff] %v15398_v40  ;;  %18059 = vst [vmem:[#allocation120_spill] sm:$0xff] %v15400_v56  ;;  %v15409_v30 = vpop.f32.mrb[18].mxu1  ;;  %v3635_v54 = vsub.f32 %v15380_v51, %v3634_v55  ;;  %v3477_v16 = vmul.f32 %v15400_v56, %v15400_v56 }
 0x8f2   :  { %18061 = vst [vmem:[#allocation121_spill] sm:$0xff] %v15409_v30  ;;  %v3456_v33 = vadd.f32 %v15409_v30, %v15392_v14  ;;  %v3480_v46 = vmul.f32 %v15409_v30, %v15409_v30  ;;  %v15434_v17 = vpop.f32.mrb[19].mxu1  ;;  %4111 = vmatprep.mubr.f32.mxu0 %v3628_v49  ;;  %v3629_v19 = vsub.f32 %v15385_v58, %v3628_v49  ;;  %v17631_v14 = vand.u32 4294901760, %v15398_v40 }
 0x8f3   :  { %18065 = vst [vmem:[#allocation123_spill] sm:$0xff] %v15434_v17  ;;  %v3465_v51 = vadd.f32 %v15434_v17, %v15400_v56  ;;  %v3481_v37 = vmul.f32 %v15434_v17, %v15434_v17  ;;  %4115 = vmatmul.mubr.f32.vlgmr.msra.gmra.mrb[16].mxu0 %v3634_v55  ;;  %v17633_v49 = vand.u32 4294901760, %v15426_v62  ;;  %v3636_v44 = vand.u32 4294901760, %v3635_v54 }
 0x8f4   :  { %v3508_v2 = vadd.f32 %v3480_v46, %v3476_v13  ;;  %12259 = vmatpush3.bf16.msra.mxu0 %v14598_v24  ;;  %4385 = vmatprep.mubr.f32.mxu0 %v15368_v36  ;;  %v3630_v30 = vand.u32 4294901760, %v3629_v19  ;;  %v18066_v56 = vand.u32 4294901760, %v15377_v26  ;;  %v15457_v13 = vld [vmem:[%s17431_s17 + $0x1a8] sm:$0xff]  ;;  %v15459_v46 = vpack.c.bf16 %v4628_v4, %v4621_v11 }
 0x8f5   :  { %v3517_v0 = vadd.f32 %v3481_v37, %v3477_v16  ;;  %12261 = vmatprep.subr.bf16.mxu0 %v14632_v41  ;;  %v18069_v54 = vand.u32 4294901760, %v15390_v52 }
 0x8f6   :  { %v15451_v20 = vsub.f32 %v15377_v26, %v18066_v56  ;;  %3631 = vmatprep.mubr.f32.mxu1 %v3630_v30  ;;  %18067 = vst [vmem:[#allocation124_spill] sm:$0xff] %v15459_v46  ;;  %v15468_v56 = vsub.f32 %v15398_v40, %v17631_v14  ;;  %v15478_v30 = vld [vmem:[%s17431_s17 + $0x120] sm:$0xff]  ;;  %v18096_v26 = vld [vmem:[#allocation72_spill] sm:$0xff] }
 0x8f7   :  { %v15461_v19 = vpop.f32.mrb[20].mxu1  ;;  %3637 = vmatmul.mubr.f32.vlgmr.msra.gmra.mrb[6].mxu1 %v3636_v44  ;;  %v15473_v55 = vsub.f32 %v15390_v52, %v18069_v54  ;;  %18071 = vst [vmem:[#allocation127_spill] sm:$0xff] %v15478_v30  ;;  %v15491_v54 = vsub.f32 %v15426_v62, %v17633_v49  ;;  %v18076_v49 = vand.u32 4294901760, %v15421_v53 }
 0x8f8   :  { %18068 = vst [vmem:[#allocation125_spill] sm:$0xff] %v15461_v19  ;;  %v3457_v11 = vadd.f32 %v3456_v33, %v15461_v19  ;;  %v3484_v44 = vmul.f32 %v15461_v19, %v15461_v19  ;;  %v15483_v4 = vpop.f32.mrb[21].mxu1  ;;  %12131 = vmatpush3.bf16.msra.mxu1 %v14958_v42  ;;  %12263 = vmatpush3.bf16.msra.mxu0 %v14638_v25  ;;  %v15496_v33 = vld [vmem:[%s17431_s17 + $0x128] sm:$0xff] }
 0x8f9   :  { %18070 = vst [vmem:[#allocation126_spill] sm:$0xff] %v15473_v55  ;;  %18072 = vst [vmem:[#allocation128_spill] sm:$0xff] %v15483_v4  ;;  %v3466_v37 = vadd.f32 %v3465_v51, %v15483_v4  ;;  %v3485_v16 = vmul.f32 %v15483_v4, %v15483_v4  ;;  %v15501_v17 = vpop.f32.mrb[22].mxu1  ;;  %3867 = vmatprep.mubr.f32.mxu1 %v15368_v36  ;;  %12133 = vmatprep.subr.bf16.mxu1 %v14984_v27 }
 0x8fa   :  { %18073 = vst [vmem:[#allocation129_spill] sm:$0xff] %v15491_v54  ;;  %18074 = vst [vmem:[#allocation130_spill] sm:$0xff] %v15496_v33  ;;  %v15509_v19 = vsub.f32 %v15421_v53, %v18076_v49  ;;  %v3509_v25 = vadd.f32 %v3508_v2, %v3484_v44  ;;  %v3458_v41 = vadd.f32 %v3457_v11, %v15501_v17  ;;  %v15514_v4 = vpop.f32.mrb[23].mxu1  ;;  %12265 = vmatprep.subr.bf16.mxu0 %v14672_v57  ;;  %v15525_v2 = vld [vmem:[%s17431_s17 + $0x1b0] sm:$0xff]  ;;  %v15530_v11 = vld [vmem:[%s17431_s17 + $0x1b8] sm:$0xff] }
 0x8fb   :  { %18075 = vst [vmem:[#allocation131_spill] sm:$0xff] %v15501_v17  ;;  %v3488_v51 = vmul.f32 %v15501_v17, %v15501_v17  ;;  %18077 = vst [vmem:[#allocation132_spill] sm:$0xff] %v15514_v4  ;;  %v3518_v27 = vadd.f32 %v3517_v0, %v3485_v16  ;;  %v3467_v14 = vadd.f32 %v3466_v37, %v15514_v4  ;;  %v18080_v17 = vand.u32 4294901760, %v15457_v13  ;;  %v18087_v0 = vld [vmem:[#allocation65_spill] sm:$0xff]  ;;  %v18095_v53 = vld [vmem:[#allocation32_spill] sm:$0xff] }
 0x8fc   :  { %v3489_v42 = vmul.f32 %v15514_v4, %v15514_v4  ;;  %18078 = vst [vmem:[#allocation133_spill] sm:$0xff] %v15525_v2  ;;  %18079 = vst [vmem:[#allocation134_spill] sm:$0xff] %v15530_v11  ;;  %v3459_v44 = vrot.slane %v3458_v41, 4  ;;  %12135 = vmatpush3.bf16.msra.mxu1 %v14995_v61  ;;  %12267 = vmatpush3.bf16.msra.mxu0 %v14678_v48  ;;  %v18084_v4 = vand.u32 4294901760, %v15496_v33  ;;  %v18088_v48 = vld [vmem:[#allocation31_spill] sm:$0xff] }
 0x8fd   :  { %v3510_v24 = vadd.f32 %v3509_v25, %v3488_v51  ;;  %v3468_v37 = vrot.slane %v3467_v14, 4  ;;  %12137 = vmatprep.subr.bf16.mxu1 %v15033_v29  ;;  %12269 = vmatprep.subr.bf16.mxu0 %v14712_v60  ;;  %v15542_v25 = vsub.f32 %v15457_v13, %v18080_v17 }
 0x8fe   :  { %v3519_v49 = vadd.f32 %v3518_v27, %v3489_v42  ;;  %v3460_v51 = vadd.f32 %v3459_v44, %v3458_v41  ;;  %v18082_v42 = vand.u32 4294901760, %v15478_v30  ;;  %v15554_v60 = vsub.f32 %v15496_v33, %v18084_v4  ;;  %v15575_v41 = vld [vmem:[%s17431_s17 + $0x130] sm:$0xff] }
 0x8ff   :  { %18081 = vst [vmem:[#allocation135_spill] sm:$0xff] %v15542_v25  ;;  %v3511_v57 = vrot.slane %v3510_v24, 4  ;;  %v3469_v16 = vadd.f32 %v3468_v37, %v3467_v14  ;;  %v18086_v14 = vand.u32 4294901760, %v15473_v55  ;;  %v18089_v4 = vand.u32 4294901760, %v15491_v54 }
 0x900   :  { %v3520_v61 = vrot.slane %v3519_v49, 4  ;;  %v15549_v27 = vsub.f32 %v15478_v30, %v18082_v42  ;;  %18085 = vst [vmem:[#allocation137_spill] sm:$0xff] %v15554_v60  ;;  %v3461_v17 = vrot.slane %v3460_v51, 2  ;;  %12139 = vmatpush3.bf16.msra.mxu1 %v15048_v23  ;;  %12271 = vmatpush3.bf16.msra.mxu0 %v14718_v18  ;;  %v18101_v30 = vld [vmem:[#allocation74_spill] sm:$0xff] }
 0x901   :  { %v3512_v29 = vadd.f32 %v3511_v57, %v3510_v24  ;;  %v15562_v44 = vsub.f32 %v15473_v55, %v18086_v14  ;;  %v3470_v37 = vrot.slane %v3469_v16, 2  ;;  %12141 = vmatprep.subr.bf16.mxu1 %v18087_v0  ;;  %12273 = vmatprep.subr.bf16.mxu0 %v18088_v48  ;;  %v15569_v24 = vsub.f32 %v15491_v54, %v18089_v4  ;;  %v15590_v4 = vld [vmem:[%s17431_s17 + $0x138] sm:$0xff] }
 0x902   :  { %18083 = vst [vmem:[#allocation136_spill] sm:$0xff] %v15549_v27  ;;  %v3521_v42 = vadd.f32 %v3520_v61, %v3519_v49  ;;  %v3462_v14 = vadd.f32 %v3461_v17, %v3460_v51  ;;  %v18090_v61 = vand.u32 4294901760, %v15525_v2  ;;  %v18092_v48 = vand.u32 4294901760, %v15530_v11 }
 0x903   :  { %v3513_v18 = vrot.slane %v3512_v29, 2  ;;  %v3471_v57 = vadd.f32 %v3470_v37, %v3469_v16  ;;  %v4530_v40 = vand.u32 4294901760, %v15562_v44  ;;  %v15606_v37 = vld [vmem:[%s17431_s17 + $0x1c8] sm:$0xff]  ;;  %v18102_v16 = vld [vmem:[#allocation34_spill] sm:$0xff] }
 0x904   :  { %v15580_v49 = vsub.f32 %v15525_v2, %v18090_v61  ;;  %v15585_v0 = vsub.f32 %v15530_v11, %v18092_v48  ;;  %v3522_v23 = vrot.slane %v3521_v42, 2  ;;  %v15597_v61 = vld [vmem:[%s17431_s17 + $0x1c0] sm:$0xff]  ;;  %v3463_v54 = vrot.slane %v3462_v14, 1  ;;  %v18094_v48 = vld [vmem:[#allocation68_spill] sm:$0xff]  ;;  %12275 = vmatpush3.bf16.msra.mxu0 %v18095_v53  ;;  %v18097_v11 = vld [vmem:[#allocation33_spill] sm:$0xff] }
 0x905   :  { %v3514_v55 = vadd.f32 %v3513_v18, %v3512_v29  ;;  %12143 = vmatpush3.bf16.msra.mxu1 %v18094_v48  ;;  %v3472_v17 = vrot.slane %v3471_v57, 1  ;;  %12277 = vmatprep.subr.bf16.mxu0 %v18097_v11  ;;  %v18098_v18 = vand.u32 4294901760, %v15542_v25  ;;  %v18100_v11 = vand.u32 4294901760, %v15554_v60 }
 0x906   :  { %18091 = vst [vmem:[#allocation138_spill] sm:$0xff] %v15580_v49  ;;  %18093 = vst [vmem:[#allocation139_spill] sm:$0xff] %v15585_v0  ;;  %v3523_v51 = vadd.f32 %v3522_v23, %v3521_v42  ;;  %12145 = vmatprep.subr.bf16.mxu1 %v18096_v26  ;;  %v18099_v23 = vand.u32 4294901760, %v15549_v27  ;;  %v4649_v48 = vand.u32 4294901760, %v15569_v24  ;;  %v18103_v2 = vand.u32 4294901760, %v15575_v41  ;;  %v18106_v24 = vld [vmem:[#allocation35_spill] sm:$0xff] }
 0x907   :  { %v4655_v29 = vsub.f32 %v15542_v25, %v18098_v18  ;;  %v3515_v44 = vrot.slane %v3514_v55, 1  ;;  %v4543_v26 = vsub.f32 %v15554_v60, %v18100_v11  ;;  %v3464_v25 = vadd.f32 %v3463_v54, %v3462_v14  ;;  %v18105_v14 = vld [vmem:[#allocation77_spill] sm:$0xff] }
 0x908   :  { %v3524_v33 = vrot.slane %v3523_v51, 1  ;;  %v4536_v42 = vsub.f32 %v15549_v27, %v18099_v23  ;;  %12279 = vmatpush3.bf16.msra.mxu0 %v18102_v16  ;;  %v15630_v36 = vsub.f32 %v15575_v41, %v18103_v2  ;;  %v15635_v23 = vld [vmem:[%s17431_s17 + $0x140] sm:$0xff]  ;;  %v3473_v54 = vadd.f32 %v3472_v17, %v3471_v57  ;;  %v15652_v16 = vld [vmem:[%s17431_s17 + $0x1d0] sm:$0xff]  ;;  %v15657_v57 = vld [vmem:[%s17431_s17 + $0x1d8] sm:$0xff] }
 0x909   :  { %v3516_v53 = vadd.f32 %v3515_v44, %v3514_v55  ;;  %12147 = vmatpush3.bf16.msra.mxu1 %v18101_v30  ;;  %v15640_v55 = vld [vmem:[%s17431_s17 + $0x148] sm:$0xff]  ;;  %12281 = vmatprep.subr.bf16.mxu0 %v18106_v24  ;;  %v4656_v44 = vand.u32 4294901760, %v4655_v29  ;;  %v18107_v2 = vand.u32 4294901760, %v15590_v4  ;;  %v18110_v17 = vand.u32 4294901760, %v15585_v0 }
 0x90a   :  { %18104 = vst [vmem:[#allocation140_spill] sm:$0xff] %v15630_v36  ;;  %v3525_v11 = vadd.f32 %v3524_v33, %v3523_v51  ;;  %12149 = vmatprep.subr.bf16.mxu1 %v18105_v14  ;;  %v18109_v33 = vand.u32 4294901760, %v15580_v49  ;;  %v18113_v60 = vand.u32 4294901760, %v15606_v37 }
 0x90b   :  { %v15647_v18 = vsub.f32 %v15590_v4, %v18107_v2  ;;  %v4669_v29 = vsub.f32 %v15585_v0, %v18110_v17  ;;  %v18111_v2 = vand.u32 4294901760, %v15597_v61  ;;  %v15671_v14 = vsel %vm349_vm1, %v3464_v25, %v3516_v53  ;;  %v18115_v0 = vld [vmem:[#allocation80_spill] sm:$0xff] }
 0x90c   :  { %v4662_v51 = vsub.f32 %v15580_v49, %v18109_v33  ;;  %v15674_v30 = vsel %vm349_vm1, %v3473_v54, %v3525_v11  ;;  %v15679_v27 = vsub.f32 %v15606_v37, %v18113_v60  ;;  %v18116_v49 = vld [vmem:[#allocation36_spill] sm:$0xff]  ;;  %v18118_v53 = vand.u32 4294901760, %v15415_v21 }
 0x90d   :  { %18108 = vst [vmem:[#allocation141_spill] sm:$0xff] %v15647_v18  ;;  %v15668_v24 = vsub.f32 %v15597_v61, %v18111_v2  ;;  %12151 = vmatpush3.bf16.msra.mxu1 %v18115_v0  ;;  %12283 = vmatpush3.bf16.msra.mxu0 %v18116_v49  ;;  %v18117_v2 = vand.u32 4294901760, %v15406_v31  ;;  %v18120_v54 = vand.u32 4294901760, %v15451_v20  ;;  %v18121_v11 = vand.u32 4294901760, %v15468_v56  ;;  %v18123_v0 = vld [vmem:[#allocation37_spill] sm:$0xff]  ;;  %v15706_v20 = vld [vmem:[%s17431_s17 + $0x150] sm:$0xff] }
 0x90e   :  { %18114 = vst [vmem:[#allocation143_spill] sm:$0xff] %v15679_v27  ;;  %12153 = vmatprep.subr.bf16.mxu1 %v15180_v38  ;;  %12285 = vmatprep.subr.bf16.mxu0 %v18123_v0  ;;  %v4537_v49 = vand.u32 4294901760, %v4536_v42  ;;  %v4544_v31 = vand.u32 4294901760, %v4543_v26  ;;  %v15711_v56 = vld [vmem:[%s17431_s17 + $0x158] sm:$0xff]  ;;  %v4663_v42 = vand.u32 4294901760, %v4662_v51  ;;  %v4670_v26 = vand.u32 4294901760, %v4669_v29 }
 0x90f   :  { %18112 = vst [vmem:[#allocation142_spill] sm:$0xff] %v15668_v24  ;;  %v15689_v25 = vpack.c.bf16 %v18118_v53, %v18117_v2  ;;  %v15695_v60 = vpack.c.bf16 %v18121_v11, %v18120_v54  ;;  %18124 = vst [vmem:[#allocation146_spill] sm:$0xff] %v15711_v56  ;;  %v18125_v53 = vand.u32 4294901760, %v15509_v19  ;;  %v15718_v21 = vpack.c.bf16 %v4656_v44, %v4649_v48  ;;  %v15739_v19 = vld [vmem:[%s17431_s17 + $0x1e8] sm:$0xff]  ;;  %v18134_v48 = vld [vmem:[#allocation40_spill] sm:$0xff] }
 0x910   :  { %v18128_v17 = vand.u32 4294901760, %v15635_v23  ;;  %v18130_v0 = vand.u32 4294901760, %v15640_v55  ;;  %18133 = vst [vmem:[#allocation152_spill] sm:$0xff] %v15739_v19  ;;  %v18135_v44 = vand.u32 4294901760, %v15652_v16  ;;  %v15757_v2 = vpack.c.bf16 %v4544_v31, %v4537_v49  ;;  %v15775_v49 = vld [vmem:[%s17431_s17 + $0x160] sm:$0xff]  ;;  %v15780_v31 = vld [vmem:[%s17431_s17 + $0x168] sm:$0xff] }
 0x911   :  { %18119 = vst [vmem:[#allocation144_spill] sm:$0xff] %v15689_v25  ;;  %18122 = vst [vmem:[#allocation145_spill] sm:$0xff] %v15695_v60  ;;  %v15715_v54 = vpack.c.bf16 %v4530_v40, %v18125_v53  ;;  %v15734_v40 = vld [vmem:[%s17431_s17 + $0x1e0] sm:$0xff]  ;;  %12155 = vmatpush3.bf16.msra.mxu1 %v15188_v32  ;;  %12287 = vmatpush3.bf16.msra.mxu0 %v18134_v48  ;;  %v18140_v11 = vand.u32 4294901760, %v15630_v36  ;;  %v18141_v48 = vand.u32 4294901760, %v15647_v18 }
 0x912   :  { %18127 = vst [vmem:[#allocation148_spill] sm:$0xff] %v15718_v21  ;;  %v15724_v33 = vsub.f32 %v15635_v23, %v18128_v17  ;;  %v15729_v38 = vsub.f32 %v15640_v55, %v18130_v0  ;;  %18132 = vst [vmem:[#allocation151_spill] sm:$0xff] %v15734_v40  ;;  %v15746_v51 = vsub.f32 %v15652_v16, %v18135_v44  ;;  %v18137_v0 = vand.u32 4294901760, %v15657_v57 }
 0x913   :  { %18126 = vst [vmem:[#allocation147_spill] sm:$0xff] %v15715_v54  ;;  %12157 = vmatprep.subr.bf16.mxu1 %v15190_v63  ;;  %12321 = vmatprep.subr.bf16.mxu0 %v15459_v46  ;;  %18139 = vst [vmem:[#allocation155_spill] sm:$0xff] %v15757_v2  ;;  %v4550_v44 = vsub.f32 %v15630_v36, %v18140_v11  ;;  %v4557_v32 = vsub.f32 %v15647_v18, %v18141_v48  ;;  %v18143_v17 = vand.u32 4294901760, %v15668_v24  ;;  %v15794_v46 = vld [vmem:[%s17431_s17 + $0x1f0] sm:$0xff]  ;;  %v15799_v63 = vld [vmem:[%s17431_s17 + $0x1f8] sm:$0xff] }
 0x914   :  { %18129 = vst [vmem:[#allocation149_spill] sm:$0xff] %v15724_v33  ;;  %18131 = vst [vmem:[#allocation150_spill] sm:$0xff] %v15729_v38  ;;  %v15751_v29 = vsub.f32 %v15657_v57, %v18137_v0  ;;  %v15765_v0 = vpack.c.bf16 %v4670_v26, %v4663_v42  ;;  %4387 = vmatmul.mubr.f32.vlgmr.msra.gmra.mrb[18].mxu0 %v15362_v1  ;;  %v15784_v42 = vand.u32 4294901760, %v15674_v30  ;;  %v18144_v26 = vand.u32 4294901760, %v15679_v27  ;;  %v15840_v48 = vld [vmem:[%s17431_s17 + $0x178] sm:$0xff] }
 0x915   :  { %18136 = vst [vmem:[#allocation153_spill] sm:$0xff] %v15746_v51  ;;  %v4676_v53 = vsub.f32 %v15668_v24, %v18143_v17  ;;  %18145 = vst [vmem:[#allocation157_spill] sm:$0xff] %v15794_v46  ;;  %12159 = vmatpush3.bf16.msra.mxu1 %v15200_v28  ;;  %12323 = vmatpush3.bf16.msra.mxu0 %v15689_v25  ;;  %v18146_v17 = vand.u32 4294901760, %v15706_v20  ;;  %v18147_v24 = vand.u32 4294901760, %v15711_v56  ;;  %v4551_v28 = vand.u32 4294901760, %v4550_v44  ;;  %v15835_v44 = vld [vmem:[%s17431_s17 + $0x170] sm:$0xff] }
 0x916   :  { %18138 = vst [vmem:[#allocation154_spill] sm:$0xff] %v15751_v29  ;;  %18142 = vst [vmem:[#allocation156_spill] sm:$0xff] %v15765_v0  ;;  %v4683_v11 = vsub.f32 %v15679_v27, %v18144_v26  ;;  %4729 = vmatprep.mubr.f32.mxu0 %v15784_v42  ;;  %12161 = vmatprep.subr.bf16.mxu1 %v15194_v22  ;;  %v4558_v25 = vand.u32 4294901760, %v4557_v32  ;;  %v18151_v32 = vand.u32 4294901760, %v15729_v38 }
 0x917   :  { %v15808_v27 = vsub.f32 %v15706_v20, %v18146_v17  ;;  %v15813_v18 = vsub.f32 %v15711_v56, %v18147_v24  ;;  %12325 = vmatprep.subr.bf16.mxu0 %v15695_v60  ;;  %v18148_v17 = vand.u32 4294901760, %v15734_v40  ;;  %v18149_v24 = vand.u32 4294901760, %v15739_v19 }
 0x918   :  { %3869 = vmatmul.mubr.f32.vlgmr.msra.gmra.mrb[24].mxu1 %v15362_v1  ;;  %v4684_v26 = vand.u32 4294901760, %v4683_v11  ;;  %v4571_v60 = vsub.f32 %v15729_v38, %v18151_v32  ;;  %v18153_v1 = vand.u32 4294901760, %v15751_v29  ;;  %v18154_v32 = vand.u32 4294901760, %v15775_v49 }
 0x919   :  { %v15823_v36 = vsub.f32 %v15734_v40, %v18148_v17  ;;  %v15828_v56 = vsub.f32 %v15739_v19, %v18149_v24  ;;  %v4677_v17 = vand.u32 4294901760, %v4676_v53  ;;  %v18150_v24 = vand.u32 4294901760, %v15724_v33  ;;  %12163 = vmatpush3.bf16.msra.mxu1 %v15198_v34  ;;  %4004 = vmatprep.mubr.f32.mxu1 %v15385_v58 }
 0x91a   :  { %v18152_v19 = vand.u32 4294901760, %v15746_v51  ;;  %v4697_v53 = vsub.f32 %v15751_v29, %v18153_v1  ;;  %12327 = vmatpush3.bf16.msra.mxu0 %v15715_v54  ;;  %12165 = vmatprep.subr.bf16.mxu1 %v15204_v39  ;;  %v15864_v58 = vsub.f32 %v15775_v49, %v18154_v32  ;;  %v18155_v34 = vand.u32 4294901760, %v15780_v31 }
 0x91b   :  { %v4564_v22 = vsub.f32 %v15724_v33, %v18150_v24  ;;  %12329 = vmatprep.subr.bf16.mxu0 %v15718_v21  ;;  %v18156_v39 = vand.u32 4294901760, %v15794_v46  ;;  %v18157_v29 = vand.u32 4294901760, %v15799_v63  ;;  %v15888_v1 = vpack.c.bf16 %v4684_v26, %v4677_v17 }
 0x91c   :  { %v4690_v40 = vsub.f32 %v15746_v51, %v18152_v19  ;;  %v15869_v19 = vsub.f32 %v15780_v31, %v18155_v34  ;;  %v15886_v51 = vpack.c.bf16 %v4558_v25, %v4551_v28  ;;  %v4572_v21 = vand.u32 4294901760, %v4571_v60 }
 0x91d   :  { %v15879_v32 = vsub.f32 %v15794_v46, %v18156_v39  ;;  %v15884_v34 = vsub.f32 %v15799_v63, %v18157_v29  ;;  %18159 = vst [vmem:[#allocation159_spill] sm:$0xff] %v15888_v1  ;;  %v4565_v11 = vand.u32 4294901760, %v4564_v22  ;;  %12167 = vmatpush3.bf16.msra.mxu1 %v15208_v9  ;;  %v4698_v54 = vand.u32 4294901760, %v4697_v53 }
 0x91e   :  { %18158 = vst [vmem:[#allocation158_spill] sm:$0xff] %v15886_v51  ;;  %v4691_v24 = vand.u32 4294901760, %v4690_v40  ;;  %v18160_v38 = vand.u32 4294901760, %v15808_v27  ;;  %v18161_v33 = vand.u32 4294901760, %v15813_v18  ;;  %12331 = vmatpush3.bf16.msra.mxu0 %v15757_v2  ;;  %12169 = vmatprep.subr.bf16.mxu1 %v15212_v15  ;;  %v18162_v25 = vand.u32 4294901760, %v15835_v44 }
 0x91f   :  { %v18163_v40 = vand.u32 4294901760, %v15840_v48  ;;  %12333 = vmatprep.subr.bf16.mxu0 %v15765_v0  ;;  %v18165_v26 = vand.u32 4294901760, %v15828_v56  ;;  %v15921_v22 = vpack.c.bf16 %v4572_v21, %v4565_v11  ;;  %v18169_v53 = vand.u32 4294901760, %v15869_v19 }
 0x920   :  { %v4578_v39 = vsub.f32 %v15808_v27, %v18160_v38  ;;  %v4585_v46 = vsub.f32 %v15813_v18, %v18161_v33  ;;  %v15904_v60 = vsub.f32 %v15835_v44, %v18162_v25  ;;  %v18164_v33 = vand.u32 4294901760, %v15823_v36 }
 0x921   :  { %v15909_v38 = vsub.f32 %v15840_v48, %v18163_v40  ;;  %v4711_v17 = vsub.f32 %v15828_v56, %v18165_v26  ;;  %12171 = vmatpush3.bf16.msra.mxu1 %v15216_v12  ;;  %18166 = vst [vmem:[#allocation160_spill] sm:$0xff] %v15921_v22  ;;  %v15923_v40 = vpack.c.bf16 %v4698_v54, %v4691_v24  ;;  %v18170_v11 = vand.u32 4294901760, %v15879_v32 }
 0x922   :  { %v4704_v29 = vsub.f32 %v15823_v36, %v18164_v33  ;;  %v4579_v28 = vand.u32 4294901760, %v4578_v39  ;;  %v4586_v0 = vand.u32 4294901760, %v4585_v46  ;;  %12335 = vmatpush3.bf16.msra.mxu0 %v15886_v51  ;;  %12173 = vmatprep.subr.bf16.mxu1 %v15220_v7  ;;  %v18168_v33 = vand.u32 4294901760, %v15864_v58 }
 0x923   :  { %18167 = vst [vmem:[#allocation161_spill] sm:$0xff] %v15923_v40  ;;  %v4599_v25 = vsub.f32 %v15869_v19, %v18169_v53  ;;  %v17718_v2 = vand.u32 4294901760, %v15904_v60  ;;  %12337 = vmatprep.subr.bf16.mxu0 %v15888_v1  ;;  %v4712_v46 = vand.u32 4294901760, %v4711_v17  ;;  %v4718_v24 = vsub.f32 %v15879_v32, %v18170_v11 }
 0x924   :  { %v4592_v26 = vsub.f32 %v15864_v58, %v18168_v33  ;;  %v4705_v54 = vand.u32 4294901760, %v4704_v29  ;;  %v18171_v39 = vand.u32 4294901760, %v15884_v34  ;;  %v15943_v51 = vpack.c.bf16 %v4586_v0, %v4579_v28 }
 0x925   :  { %12175 = vmatpush3.bf16.msra.mxu1 %v15224_v5  ;;  %v4600_v21 = vand.u32 4294901760, %v4599_v25  ;;  %v4606_v29 = vsub.f32 %v15904_v60, %v17718_v2  ;;  %v18173_v17 = vand.u32 4294901760, %v15909_v38  ;;  %v4719_v0 = vand.u32 4294901760, %v4718_v24 }
 0x926   :  { %v4725_v33 = vsub.f32 %v15884_v34, %v18171_v39  ;;  %18172 = vst [vmem:[#allocation162_spill] sm:$0xff] %v15943_v51  ;;  %12339 = vmatpush3.bf16.msra.mxu0 %v15921_v22  ;;  %12177 = vmatprep.subr.bf16.mxu1 %v15228_v35  ;;  %v4593_v53 = vand.u32 4294901760, %v4592_v26  ;;  %v15954_v39 = vpack.c.bf16 %v4712_v46, %v4705_v54  ;;  %v18178_v46 = vand.u32 4294901760, %v15301_v3 }
 0x927   :  { %v4613_v11 = vsub.f32 %v15909_v38, %v18173_v17  ;;  %12341 = vmatprep.subr.bf16.mxu0 %v15923_v40  ;;  %v4607_v26 = vand.u32 4294901760, %v4606_v29  ;;  %v18179_v24 = vand.u32 4294901760, %v15306_v6  ;;  %v18185_v6 = vld [vmem:[#allocation109_spill] sm:$0xff]  ;;  %v18227_v40 = vld [vmem:[#allocation50_spill] sm:$0xff] }
 0x928   :  { %18174 = vst [vmem:[#allocation163_spill] sm:$0xff] %v15954_v39  ;;  %v4726_v28 = vand.u32 4294901760, %v4725_v33  ;;  %v15959_v25 = vpack.c.bf16 %v4600_v21, %v4593_v53  ;;  %v15978_v33 = vsub.f32 %v15674_v30, %v15784_v42  ;;  %v18182_v53 = vld [vmem:[#allocation106_spill] sm:$0xff]  ;;  %v18186_v17 = vand.u32 4294901760, %v18185_v6 }
 0x929   :  { %12179 = vmatpush3.bf16.msra.mxu1 %v15232_v10  ;;  %v4614_v2 = vand.u32 4294901760, %v4613_v11  ;;  %v15973_v21 = vpack.c.bf16 %v18179_v24, %v18178_v46  ;;  %v18183_v3 = vand.u32 4294901760, %v18182_v53  ;;  %v18187_v11 = vld [vmem:[#allocation111_spill] sm:$0xff]  ;;  %v15996_v30 = vand.u32 4294901760, %v15671_v14  ;;  %v18195_v53 = vld [vmem:[#allocation96_spill] sm:$0xff] }
 0x92a   :  { %12343 = vmatpush3.bf16.msra.mxu0 %v15943_v51  ;;  %12181 = vmatprep.subr.bf16.mxu1 %v15236_v8  ;;  %18175 = vst [vmem:[#allocation164_spill] sm:$0xff] %v15959_v25  ;;  %v15962_v22 = vpack.c.bf16 %v4726_v28, %v4719_v0  ;;  %v18188_v0 = vand.u32 4294901760, %v18187_v11  ;;  %v18192_v24 = vld [vmem:[#allocation39_spill] sm:$0xff] }
 0x92b   :  { %12345 = vmatprep.subr.bf16.mxu0 %v15954_v39  ;;  %v15967_v54 = vpack.c.bf16 %v4614_v2, %v4607_v26  ;;  %18180 = vst [vmem:[#allocation167_spill] sm:$0xff] %v15973_v21  ;;  %v18181_v2 = vand.u32 4294901760, %v15313_v59  ;;  %v18190_v26 = vld [vmem:[#allocation38_spill] sm:$0xff]  ;;  %v18207_v39 = vld [vmem:[#allocation44_spill] sm:$0xff] }
 0x92c   :  { %18176 = vst [vmem:[#allocation165_spill] sm:$0xff] %v15962_v22  ;;  %v15993_v28 = vpack.c.bf16 %v18188_v0, %v18186_v17  ;;  %v18191_v46 = vand.u32 4294901760, %v18190_v26  ;;  %v18198_v17 = vld [vmem:[#allocation42_spill] sm:$0xff]  ;;  %v18201_v26 = vld [vmem:[#allocation113_spill] sm:$0xff]  ;;  %v18208_v51 = vand.u32 4294901760, %v18207_v39 }
 0x92d   :  { %12183 = vmatpush3.bf16.msra.mxu1 %v15240_v47  ;;  %18177 = vst [vmem:[#allocation166_spill] sm:$0xff] %v15967_v54  ;;  %v15987_v29 = vpack.c.bf16 %v18183_v3, %v18181_v2  ;;  %v17725_v2 = vand.u32 4294901760, %v15978_v33  ;;  %v18196_v3 = vld [vmem:[#allocation41_spill] sm:$0xff]  ;;  %v18199_v11 = vand.u32 4294901760, %v18198_v17  ;;  %v18211_v17 = vand.u32 4294901760, %v15457_v13 }
 0x92e   :  { %12347 = vmatpush3.bf16.msra.mxu0 %v15959_v25  ;;  %12185 = vmatprep.subr.bf16.mxu1 %v15244_v43  ;;  %18189 = vst [vmem:[#allocation109_spill] sm:$0xff] %v15993_v28  ;;  %v18197_v6 = vand.u32 4294901760, %v18196_v3 }
 0x92f   :  { %12349 = vmatprep.subr.bf16.mxu0 %v15962_v22  ;;  %18184 = vst [vmem:[#allocation106_spill] sm:$0xff] %v15987_v29  ;;  %v18205_v22 = vld [vmem:[#allocation43_spill] sm:$0xff] }
 0x930   :  { %v16012_v0 = vpack.c.bf16 %v18199_v11, %v18197_v6  ;;  %v18206_v25 = vand.u32 4294901760, %v18205_v22  ;;  %v18210_v6 = vand.u32 4294901760, %v15426_v62  ;;  %v18215_v22 = vld [vmem:[#allocation45_spill] sm:$0xff]  ;;  %v18220_v62 = vld [vmem:[#allocation127_spill] sm:$0xff] }
 0x931   :  { %12187 = vmatpush3.bf16.msra.mxu1 %v15248_v45  ;;  %v18216_v39 = vand.u32 4294901760, %v18215_v22  ;;  %v18221_v13 = vand.u32 4294901760, %v18220_v62  ;;  %v18230_v22 = vld [vmem:[#allocation133_spill] sm:$0xff]  ;;  %v18235_v62 = vld [vmem:[#allocation51_spill] sm:$0xff] }
 0x932   :  { %12351 = vmatpush3.bf16.msra.mxu0 %v15967_v54  ;;  %12189 = vmatprep.subr.bf16.mxu1 %v15252_v50  ;;  %v18193_v54 = vand.u32 4294901760, %v18192_v24  ;;  %18200 = vst [vmem:[#allocation38_spill] sm:$0xff] %v16012_v0  ;;  %v16027_v3 = vpack.c.bf16 %v18208_v51, %v18206_v25  ;;  %v16033_v11 = vpack.c.bf16 %v18211_v17, %v18210_v6  ;;  %v18217_v51 = vld [vmem:[#allocation46_spill] sm:$0xff] }
 0x933   :  { %12385 = vmatprep.subr.bf16.mxu0 %v15973_v21  ;;  %v18218_v25 = vand.u32 4294901760, %v18217_v51  ;;  %v18231_v51 = vand.u32 4294901760, %v18230_v22 }
 0x934   :  { %v16003_v59 = vpack.c.bf16 %v18193_v54, %v18191_v46  ;;  %v18202_v54 = vand.u32 4294901760, %v18201_v26  ;;  %v18203_v46 = vand.u32 4294901760, %v15390_v52  ;;  %18209 = vst [vmem:[#allocation41_spill] sm:$0xff] %v16027_v3  ;;  %18212 = vst [vmem:[#allocation42_spill] sm:$0xff] %v16033_v11  ;;  %v18213_v26 = vld [vmem:[#allocation117_spill] sm:$0xff]  ;;  %v18214_v52 = vld [vmem:[#allocation115_spill] sm:$0xff] }
 0x935   :  { %4731 = vmatmul.mubr.f32.vlgmr.msra.gmra.mrb[20].mxu0 %v15996_v30  ;;  %12191 = vmatpush3.bf16.msra.mxu1 %v18195_v53 }
 0x936   :  { %18194 = vst [vmem:[#allocation111_spill] sm:$0xff] %v16003_v59  ;;  %12387 = vmatpush3.bf16.msra.mxu0 %v15987_v29  ;;  %4973 = vmatprep.mubr.f32.mxu0 %v17725_v2  ;;  %v16021_v24 = vpack.c.bf16 %v18203_v46, %v18202_v54  ;;  %v16044_v54 = vpack.c.bf16 %v18218_v25, %v18216_v39  ;;  %v18222_v46 = vld [vmem:[#allocation130_spill] sm:$0xff] }
 0x937   :  { %12225 = vmatprep.subr.bf16.mxu1 %v16003_v59  ;;  %12389 = vmatprep.subr.bf16.mxu0 %v15993_v28  ;;  %v18223_v6 = vand.u32 4294901760, %v18222_v46  ;;  %v18232_v39 = vld [vmem:[#allocation134_spill] sm:$0xff]  ;;  %v18236_v46 = vand.u32 4294901760, %v18235_v62  ;;  %v18248_v62 = vand.u32 4294901760, %v15597_v61  ;;  %v18256_v61 = vand.u32 4294901760, %v15635_v23  ;;  %v18267_v23 = vld [vmem:[#allocation63_spill] sm:$0xff] }
 0x938   :  { %18204 = vst [vmem:[#allocation39_spill] sm:$0xff] %v16021_v24  ;;  %4007 = vmatmul.mubr.f32.vlgmr.msra.gmra.mrb[26].mxu1 %v18213_v26  ;;  %18219 = vst [vmem:[#allocation113_spill] sm:$0xff] %v16044_v54  ;;  %v18225_v26 = vld [vmem:[#allocation48_spill] sm:$0xff]  ;;  %v18233_v25 = vand.u32 4294901760, %v18232_v39 }
 0x939   :  { %12227 = vmatpush3.bf16.msra.mxu1 %v16012_v0  ;;  %4281 = vmatprep.mubr.f32.mxu1 %v18214_v52  ;;  %v16052_v17 = vpack.c.bf16 %v18223_v6, %v18221_v13  ;;  %v18226_v2 = vand.u32 4294901760, %v18225_v26  ;;  %v18228_v52 = vand.u32 4294901760, %v18227_v40  ;;  %v18237_v13 = vld [vmem:[#allocation52_spill] sm:$0xff]  ;;  %v18240_v40 = vand.u32 4294901760, %v15575_v41  ;;  %v18251_v41 = vld [vmem:[#allocation57_spill] sm:$0xff] }
 0x93a   :  { %12391 = vmatpush3.bf16.msra.mxu0 %v16021_v24  ;;  %12229 = vmatprep.subr.bf16.mxu1 %v16027_v3  ;;  %v16064_v0 = vpack.c.bf16 %v18233_v25, %v18231_v51  ;;  %v18238_v6 = vand.u32 4294901760, %v18237_v13  ;;  %v18245_v51 = vld [vmem:[#allocation56_spill] sm:$0xff] }
 0x93b   :  { %18224 = vst [vmem:[#allocation43_spill] sm:$0xff] %v16052_v17  ;;  %v16058_v1 = vpack.c.bf16 %v18228_v52, %v18226_v2  ;;  %12393 = vmatprep.subr.bf16.mxu0 %v16033_v11  ;;  %v18241_v2 = vand.u32 4294901760, %v15590_v4  ;;  %v18243_v52 = vld [vmem:[#allocation54_spill] sm:$0xff]  ;;  %v18246_v39 = vand.u32 4294901760, %v18245_v51  ;;  %v18252_v4 = vand.u32 4294901760, %v18251_v41 }
 0x93c   :  { %18234 = vst [vmem:[#allocation117_spill] sm:$0xff] %v16064_v0  ;;  %v16072_v3 = vpack.c.bf16 %v18238_v6, %v18236_v46  ;;  %v18244_v22 = vand.u32 4294901760, %v18243_v52  ;;  %v18249_v46 = vand.u32 4294901760, %v15606_v37  ;;  %v18253_v6 = vld [vmem:[#allocation58_spill] sm:$0xff]  ;;  %v18257_v37 = vand.u32 4294901760, %v15640_v55 }
 0x93d   :  { %18229 = vst [vmem:[#allocation44_spill] sm:$0xff] %v16058_v1  ;;  %12231 = vmatpush3.bf16.msra.mxu1 %v16044_v54  ;;  %v16080_v26 = vpack.c.bf16 %v18241_v2, %v18240_v40  ;;  %v18254_v40 = vand.u32 4294901760, %v18253_v6  ;;  %v18264_v41 = vand.u32 4294901760, %v15652_v16  ;;  %v18268_v55 = vand.u32 4294901760, %v18267_v23  ;;  %v18281_v23 = vld [vmem:[#allocation151_spill] sm:$0xff] }
 0x93e   :  { %18239 = vst [vmem:[#allocation115_spill] sm:$0xff] %v16072_v3  ;;  %12395 = vmatpush3.bf16.msra.mxu0 %v16052_v17  ;;  %12233 = vmatprep.subr.bf16.mxu1 %v16058_v1  ;;  %v16086_v25 = vpack.c.bf16 %v18246_v39, %v18244_v22  ;;  %v16092_v13 = vpack.c.bf16 %v18249_v46, %v18248_v62  ;;  %v18259_v22 = vld [vmem:[#allocation59_spill] sm:$0xff]  ;;  %v18261_v39 = vld [vmem:[#allocation61_spill] sm:$0xff]  ;;  %v18272_v16 = vand.u32 4294901760, %v15706_v20 }
 0x93f   :  { %18242 = vst [vmem:[#allocation45_spill] sm:$0xff] %v16080_v26  ;;  %12397 = vmatprep.subr.bf16.mxu0 %v16064_v0  ;;  %v16100_v2 = vpack.c.bf16 %v18254_v40, %v18252_v4  ;;  %v16108_v52 = vpack.c.bf16 %v18257_v37, %v18256_v61  ;;  %v18260_v51 = vand.u32 4294901760, %v18259_v22  ;;  %v18262_v62 = vand.u32 4294901760, %v18261_v39  ;;  %v18269_v40 = vld [vmem:[#allocation64_spill] sm:$0xff]  ;;  %v18273_v22 = vld [vmem:[#allocation146_spill] sm:$0xff]  ;;  %v18286_v20 = vld [vmem:[#allocation69_spill] sm:$0xff] }
 0x940   :  { %18247 = vst [vmem:[#allocation46_spill] sm:$0xff] %v16086_v25  ;;  %18250 = vst [vmem:[#allocation127_spill] sm:$0xff] %v16092_v13  ;;  %v18265_v4 = vand.u32 4294901760, %v15657_v57  ;;  %v18270_v61 = vand.u32 4294901760, %v18269_v40  ;;  %v18274_v57 = vand.u32 4294901760, %v18273_v22  ;;  %v18276_v39 = vld [vmem:[#allocation66_spill] sm:$0xff] }
 0x941   :  { %12235 = vmatpush3.bf16.msra.mxu1 %v16072_v3  ;;  %18255 = vst [vmem:[#allocation130_spill] sm:$0xff] %v16100_v2  ;;  %18258 = vst [vmem:[#allocation48_spill] sm:$0xff] %v16108_v52  ;;  %v16114_v46 = vpack.c.bf16 %v18262_v62, %v18260_v51  ;;  %v18277_v62 = vand.u32 4294901760, %v18276_v39  ;;  %v18282_v40 = vand.u32 4294901760, %v18281_v23  ;;  %v18287_v22 = vand.u32 4294901760, %v18286_v20  ;;  %v18299_v20 = vld [vmem:[#allocation157_spill] sm:$0xff] }
 0x942   :  { %12399 = vmatpush3.bf16.msra.mxu0 %v16080_v26  ;;  %12237 = vmatprep.subr.bf16.mxu1 %v16086_v25  ;;  %v16120_v6 = vpack.c.bf16 %v18265_v4, %v18264_v41  ;;  %v16128_v37 = vpack.c.bf16 %v18270_v61, %v18268_v55  ;;  %v16136_v51 = vpack.c.bf16 %v18274_v57, %v18272_v16  ;;  %v18278_v41 = vld [vmem:[#allocation67_spill] sm:$0xff]  ;;  %v18283_v55 = vld [vmem:[#allocation152_spill] sm:$0xff]  ;;  %v18288_v16 = vld [vmem:[#allocation70_spill] sm:$0xff]  ;;  %v18291_v39 = vand.u32 4294901760, %v15775_v49 }
 0x943   :  { %18263 = vst [vmem:[#allocation50_spill] sm:$0xff] %v16114_v46  ;;  %12401 = vmatprep.subr.bf16.mxu0 %v16092_v13  ;;  %v18279_v4 = vand.u32 4294901760, %v18278_v41  ;;  %v18284_v61 = vand.u32 4294901760, %v18283_v55  ;;  %v18289_v57 = vand.u32 4294901760, %v18288_v16  ;;  %v18300_v16 = vand.u32 4294901760, %v18299_v20  ;;  %v18303_v49 = vld [vmem:[#allocation75_spill] sm:$0xff] }
 0x944   :  { %18266 = vst [vmem:[#allocation133_spill] sm:$0xff] %v16120_v6  ;;  %18271 = vst [vmem:[#allocation134_spill] sm:$0xff] %v16128_v37  ;;  %v18313_v20 = vld [vmem:[#allocation79_spill] sm:$0xff] }
 0x945   :  { %12239 = vmatpush3.bf16.msra.mxu1 %v16100_v2  ;;  %18275 = vst [vmem:[#allocation51_spill] sm:$0xff] %v16136_v51  ;;  %v16142_v2 = vpack.c.bf16 %v18279_v4, %v18277_v62  ;;  %v16148_v25 = vpack.c.bf16 %v18284_v61, %v18282_v40  ;;  %v18292_v62 = vand.u32 4294901760, %v15780_v31  ;;  %v18294_v4 = vld [vmem:[#allocation71_spill] sm:$0xff]  ;;  %v18296_v40 = vld [vmem:[#allocation73_spill] sm:$0xff]  ;;  %v18304_v31 = vand.u32 4294901760, %v18303_v49 }
 0x946   :  { %12403 = vmatpush3.bf16.msra.mxu0 %v16108_v52  ;;  %12241 = vmatprep.subr.bf16.mxu1 %v16114_v46  ;;  %v16156_v46 = vpack.c.bf16 %v18289_v57, %v18287_v22  ;;  %v18295_v23 = vand.u32 4294901760, %v18294_v4  ;;  %v18297_v55 = vand.u32 4294901760, %v18296_v40  ;;  %v18301_v22 = vand.u32 4294901760, %v15799_v63  ;;  %v18311_v40 = vld [vmem:[#allocation78_spill] sm:$0xff] }
 0x947   :  { %18280 = vst [vmem:[#allocation52_spill] sm:$0xff] %v16142_v2  ;;  %18285 = vst [vmem:[#allocation54_spill] sm:$0xff] %v16148_v25  ;;  %12405 = vmatprep.subr.bf16.mxu0 %v16120_v6  ;;  %v16164_v41 = vpack.c.bf16 %v18292_v62, %v18291_v39  ;;  %v18305_v39 = vld [vmem:[#allocation76_spill] sm:$0xff]  ;;  %v18308_v4 = vand.u32 4294901760, %v15835_v44  ;;  %v18309_v63 = vand.u32 4294901760, %v15840_v48  ;;  %v16202_v49 = vsub.f32 %v15671_v14, %v15996_v30 }
 0x948   :  { %18290 = vst [vmem:[#allocation56_spill] sm:$0xff] %v16156_v46  ;;  %v16170_v61 = vpack.c.bf16 %v18297_v55, %v18295_v23  ;;  %v16176_v57 = vpack.c.bf16 %v18301_v22, %v18300_v16  ;;  %v18306_v62 = vand.u32 4294901760, %v18305_v39  ;;  %v18312_v55 = vand.u32 4294901760, %v18311_v40  ;;  %v18317_v39 = vld [vmem:[#allocation101_spill] sm:$0xff]  ;;  %v18320_v40 = vld [vmem:[#allocation108_spill] sm:$0xff] }
 0x949   :  { %12243 = vmatpush3.bf16.msra.mxu1 %v16128_v37  ;;  %18293 = vst [vmem:[#allocation57_spill] sm:$0xff] %v16164_v41  ;;  %v16192_v23 = vpack.c.bf16 %v18309_v63, %v18308_v4  ;;  %v18314_v16 = vand.u32 4294901760, %v18313_v20  ;;  %v4496_v48 = vand.u32 4294901760, %v16202_v49  ;;  %v18316_v44 = vand.u32 4294901760, %v15978_v33  ;;  %v18319_v63 = vld [vmem:[#allocation107_spill] sm:$0xff]  ;;  %v18322_v20 = vld [vmem:[#allocation110_spill] sm:$0xff] }
 0x94a   :  { %12407 = vmatpush3.bf16.msra.mxu0 %v16136_v51  ;;  %12245 = vmatprep.subr.bf16.mxu1 %v16142_v2  ;;  %18298 = vst [vmem:[#allocation58_spill] sm:$0xff] %v16170_v61  ;;  %18302 = vst [vmem:[#allocation59_spill] sm:$0xff] %v16176_v57  ;;  %v16184_v2 = vpack.c.bf16 %v18306_v62, %v18304_v31  ;;  %v18318_v62 = vld [vmem:[#allocation114_spill] sm:$0xff] }
 0x94b   :  { %12409 = vmatprep.subr.bf16.mxu0 %v16148_v25  ;;  %18310 = vst [vmem:[#allocation63_spill] sm:$0xff] %v16192_v23  ;;  %v16198_v22 = vpack.c.bf16 %v18314_v16, %v18312_v55  ;;  %v4491_v31 = vsub.f32 %v15978_v33, %v18316_v44  ;;  %v4497_v4 = vsub.f32 %v16202_v49, %v4496_v48  ;;  %v18323_v16 = vld [vmem:[#allocation112_spill] sm:$0xff] }
 0x94c   :  { %18307 = vst [vmem:[#allocation61_spill] sm:$0xff] %v16184_v2  ;;  %v16249_v55 = vpack.c.bf16 %v18320_v40, %v18319_v63  ;;  %v16255_v44 = vpack.c.bf16 %v18323_v16, %v18322_v20 }
 0x94d   :  { %12247 = vmatpush3.bf16.msra.mxu1 %v16156_v46  ;;  %18315 = vst [vmem:[#allocation64_spill] sm:$0xff] %v16198_v22  ;;  %v4492_v14 = vand.u32 4294901760, %v4491_v31  ;;  %v4498_v31 = vand.u32 4294901760, %v4497_v4  ;;  %v18332_v4 = vld [vmem:[#allocation129_spill] sm:$0xff] }
 0x94e   :  { %12411 = vmatpush3.bf16.msra.mxu0 %v16164_v41  ;;  %12249 = vmatprep.subr.bf16.mxu1 %v16170_v61  ;;  %18321 = vst [vmem:[#allocation146_spill] sm:$0xff] %v16249_v55  ;;  %18324 = vst [vmem:[#allocation66_spill] sm:$0xff] %v16255_v44 }
 0x94f   :  { %12413 = vmatprep.subr.bf16.mxu0 %v16176_v57 }
 0x951   :  { %12251 = vmatpush3.bf16.msra.mxu1 %v16184_v2  ;;  %v18362_v2 = vand.u32 4294901760, %v18323_v16 }
 0x952   :  { %12415 = vmatpush3.bf16.msra.mxu0 %v16192_v23  ;;  %12253 = vmatprep.subr.bf16.mxu1 %v16198_v22 }
 0x953   :  { %12449 = vmatprep.subr.bf16.mxu0 %v15973_v21 }
 0x955   :  { %4977 = vmatmul.mubr.f32.vlgmr.msra.gmra.mrb[22].mxu0 %v4496_v48  ;;  %12255 = vmatpush3.bf16.msra.mxu1 %v18317_v39  ;;  %v18328_v48 = vmov 0.0   ;;  %v18359_v39 = vand.u32 4294901760, %v18320_v40 }
 0x956   :  { %12451 = vmatpush3.bf16.msra.mxu0 %v15987_v29  ;;  %5247 = vmatprep.mubr.f32.mxu0 %v15784_v42 }
 0x957   :  { %12289 = vmatprep.subr.bf16.mxu1 %v15973_v21  ;;  %12453 = vmatprep.subr.bf16.mxu0 %v15993_v28 }
 0x958   :  { %4283 = vmatmul.mubr.f32.vlgmr.msra.gmra.mrb[28].mxu1 %v18318_v62  ;;  %v18326_v62 = vld [vmem:[#allocation119_spill] sm:$0xff] }
 0x959   :  { %12291 = vmatpush3.bf16.msra.mxu1 %v15987_v29  ;;  %4493 = vmatprep.mubr.f32.mxu1 %v4492_v14  ;;  %v18325_v14 = vld [vmem:[#allocation116_spill] sm:$0xff]  ;;  %v18350_v29 = vld [vmem:[#allocation153_spill] sm:$0xff] }
 0x95a   :  { %12455 = vmatpush3.bf16.msra.mxu0 %v16021_v24  ;;  %12293 = vmatprep.subr.bf16.mxu1 %v15993_v28 }
 0x95b   :  { %12457 = vmatprep.subr.bf16.mxu0 %v16033_v11 }
 0x95d   :  { %12295 = vmatpush3.bf16.msra.mxu1 %v16021_v24  ;;  %v18347_v24 = vld [vmem:[#allocation149_spill] sm:$0xff] }
 0x95e   :  { %12459 = vmatpush3.bf16.msra.mxu0 %v16052_v17  ;;  %12297 = vmatprep.subr.bf16.mxu1 %v16033_v11 }
 0x95f   :  { %12461 = vmatprep.subr.bf16.mxu0 %v16064_v0 }
 0x961   :  { %12299 = vmatpush3.bf16.msra.mxu1 %v16052_v17  ;;  %v18344_v17 = vld [vmem:[#allocation142_spill] sm:$0xff] }
 0x962   :  { %12463 = vmatpush3.bf16.msra.mxu0 %v16080_v26  ;;  %12301 = vmatprep.subr.bf16.mxu1 %v16064_v0 }
 0x963   :  { %12465 = vmatprep.subr.bf16.mxu0 %v16092_v13 }
 0x965   :  { %12303 = vmatpush3.bf16.msra.mxu1 %v16080_v26  ;;  %v18341_v26 = vld [vmem:[#allocation140_spill] sm:$0xff] }
 0x966   :  { %12467 = vmatpush3.bf16.msra.mxu0 %v16108_v52  ;;  %12305 = vmatprep.subr.bf16.mxu1 %v16092_v13 }
 0x967   :  { %12469 = vmatprep.subr.bf16.mxu0 %v16120_v6 }
 0x969   :  { %12307 = vmatpush3.bf16.msra.mxu1 %v16108_v52  ;;  %v18336_v52 = vld [vmem:[#allocation137_spill] sm:$0xff] }
 0x96a   :  { %12471 = vmatpush3.bf16.msra.mxu0 %v16136_v51  ;;  %12309 = vmatprep.subr.bf16.mxu1 %v16120_v6  ;;  %v18335_v6 = vld [vmem:[#allocation136_spill] sm:$0xff] }
 0x96b   :  { %12473 = vmatprep.subr.bf16.mxu0 %v16148_v25  ;;  %v16277_v13 = vpack.c.bf16 %v18336_v52, %v18335_v6 }
 0x96d   :  { %12311 = vmatpush3.bf16.msra.mxu1 %v16136_v51  ;;  %v18333_v51 = vld [vmem:[#allocation135_spill] sm:$0xff]  ;;  %18337 = vst [vmem:[#allocation69_spill] sm:$0xff] %v16277_v13 }
 0x96e   :  { %12475 = vmatpush3.bf16.msra.mxu0 %v16164_v41  ;;  %12313 = vmatprep.subr.bf16.mxu1 %v16148_v25  ;;  %v18371_v40 = vand.u32 4294901760, %v18333_v51 }
 0x96f   :  { %12477 = vmatprep.subr.bf16.mxu0 %v16176_v57 }
 0x971   :  { %12315 = vmatpush3.bf16.msra.mxu1 %v16164_v41  ;;  %v18329_v41 = vld [vmem:[#allocation122_spill] sm:$0xff] }
 0x972   :  { %12479 = vmatpush3.bf16.msra.mxu0 %v16192_v23  ;;  %12317 = vmatprep.subr.bf16.mxu1 %v16176_v57  ;;  %v16260_v57 = vpack.c.bf16 %v18326_v62, %v18325_v14 }
 0x974   :  { %18327 = vst [vmem:[#allocation67_spill] sm:$0xff] %v16260_v57 }
 0x975   :  { %5249 = vmatmul.mubr.f32.vlgmr.msra.gmra.mrb[24].mxu0 %v15996_v30  ;;  %12319 = vmatpush3.bf16.msra.mxu1 %v16192_v23  ;;  %v18330_v23 = vld [vmem:[#allocation126_spill] sm:$0xff] }
 0x976   :  { %12353 = vmatprep.subr.bf16.mxu1 %v16249_v55  ;;  %5908 = vmatprep.mubr.f32.mxu0 %v18328_v48  ;;  %v16267_v25 = vpack.c.bf16 %v18330_v23, %v18329_v41  ;;  %v16272_v55 = vpack.c.bf16 %v18333_v51, %v18332_v4  ;;  %v18379_v51 = vand.u32 4294901760, %v18341_v26 }
 0x978   :  { %4499 = vmatmul.mubr.f32.vlgmr.msra.gmra.mrb[30].mxu1 %v4498_v31  ;;  %18331 = vst [vmem:[#allocation151_spill] sm:$0xff] %v16267_v25  ;;  %18334 = vst [vmem:[#allocation152_spill] sm:$0xff] %v16272_v55  ;;  %v18338_v31 = vld [vmem:[#allocation138_spill] sm:$0xff] }
 0x979   :  { %12355 = vmatpush3.bf16.msra.mxu1 %v16255_v44  ;;  %4866 = vmatprep.mubr.f32.mxu1 %v15978_v33  ;;  %v18339_v33 = vld [vmem:[#allocation139_spill] sm:$0xff] }
 0x97a   :  { %12357 = vmatprep.subr.bf16.mxu1 %v16260_v57  ;;  %v16282_v44 = vpack.c.bf16 %v18339_v33, %v18338_v31  ;;  %v18342_v57 = vld [vmem:[#allocation141_spill] sm:$0xff] }
 0x97b   :  { %v16287_v0 = vpack.c.bf16 %v18342_v57, %v18341_v26  ;;  %v18380_v16 = vand.u32 4294901760, %v18342_v57  ;;  %v18388_v26 = vand.u32 4294901760, %v18350_v29 }
 0x97c   :  { %18340 = vst [vmem:[#allocation70_spill] sm:$0xff] %v16282_v44 }
 0x97d   :  { %12359 = vmatpush3.bf16.msra.mxu1 %v16267_v25  ;;  %18343 = vst [vmem:[#allocation71_spill] sm:$0xff] %v16287_v0  ;;  %v18345_v25 = vld [vmem:[#allocation143_spill] sm:$0xff] }
 0x97e   :  { %12361 = vmatprep.subr.bf16.mxu1 %v16272_v55  ;;  %v16292_v11 = vpack.c.bf16 %v18345_v25, %v18344_v17  ;;  %v18348_v55 = vld [vmem:[#allocation150_spill] sm:$0xff] }
 0x97f   :  { %v16297_v28 = vpack.c.bf16 %v18348_v55, %v18347_v24 }
 0x980   :  { %18346 = vst [vmem:[#allocation73_spill] sm:$0xff] %v16292_v11 }
 0x981   :  { %12363 = vmatpush3.bf16.msra.mxu1 %v16277_v13  ;;  %18349 = vst [vmem:[#allocation157_spill] sm:$0xff] %v16297_v28  ;;  %v18351_v13 = vld [vmem:[#allocation154_spill] sm:$0xff] }
 0x982   :  { %12365 = vmatprep.subr.bf16.mxu1 %v16282_v44  ;;  %v16302_v21 = vpack.c.bf16 %v18351_v13, %v18350_v29  ;;  %v16307_v44 = vpack.c.bf16 %v15813_v18, %v15808_v27  ;;  %v18389_v57 = vand.u32 4294901760, %v18351_v13  ;;  %v18397_v29 = vand.u32 4294901760, %v15864_v58 }
 0x983   :  { %v18398_v13 = vand.u32 4294901760, %v15869_v19 }
 0x984   :  { %18352 = vst [vmem:[#allocation75_spill] sm:$0xff] %v16302_v21  ;;  %18353 = vst [vmem:[#allocation76_spill] sm:$0xff] %v16307_v44 }
 0x985   :  { %12367 = vmatpush3.bf16.msra.mxu1 %v16287_v0  ;;  %v16312_v0 = vpack.c.bf16 %v15828_v56, %v15823_v36 }
 0x986   :  { %12369 = vmatprep.subr.bf16.mxu1 %v16292_v11  ;;  %v16317_v11 = vpack.c.bf16 %v15869_v19, %v15864_v58 }
 0x987   :  { %18354 = vst [vmem:[#allocation78_spill] sm:$0xff] %v16312_v0 }
 0x988   :  { %18355 = vst [vmem:[#allocation79_spill] sm:$0xff] %v16317_v11 }
 0x989   :  { %12371 = vmatpush3.bf16.msra.mxu1 %v16297_v28  ;;  %v16322_v28 = vpack.c.bf16 %v15884_v34, %v15879_v32 }
 0x98a   :  { %12373 = vmatprep.subr.bf16.mxu1 %v16302_v21  ;;  %v16327_v21 = vpack.c.bf16 %v15909_v38, %v15904_v60 }
 0x98b   :  { %18356 = vst [vmem:[#allocation114_spill] sm:$0xff] %v16322_v28 }
 0x98c   :  { %18357 = vst [vmem:[#allocation107_spill] sm:$0xff] %v16327_v21 }
 0x98d   :  { %12375 = vmatpush3.bf16.msra.mxu1 %v16307_v44  ;;  %v18358_v44 = vand.u32 4294901760, %v18319_v63  ;;  %v18368_v63 = vand.u32 4294901760, %v18330_v23  ;;  %v18377_v23 = vand.u32 4294901760, %v18339_v33  ;;  %v16406_v33 = vpack.c.bf16 %v18389_v57, %v18388_v26 }
 0x98e   :  { %12377 = vmatprep.subr.bf16.mxu1 %v16312_v0  ;;  %v18361_v0 = vand.u32 4294901760, %v18322_v20 }
 0x98f   :  { %v16334_v22 = vpack.c.bf16 %v18359_v39, %v18358_v44  ;;  %v18367_v39 = vand.u32 4294901760, %v18329_v41  ;;  %v18376_v41 = vand.u32 4294901760, %v18338_v31  ;;  %v16385_v44 = vpack.c.bf16 %v18380_v16, %v18379_v51  ;;  %18390 = vst [vmem:[#allocation137_spill] sm:$0xff] %v16406_v33 }
 0x990   :  { %v16341_v61 = vpack.c.bf16 %v18362_v2, %v18361_v0  ;;  %v18370_v2 = vand.u32 4294901760, %v18332_v4  ;;  %v18386_v4 = vand.u32 4294901760, %v18348_v55  ;;  %v18395_v55 = vand.u32 4294901760, %v15828_v56 }
 0x991   :  { %12379 = vmatpush3.bf16.msra.mxu1 %v16317_v11  ;;  %18360 = vst [vmem:[#allocation108_spill] sm:$0xff] %v16334_v22  ;;  %v18364_v11 = vand.u32 4294901760, %v18325_v14  ;;  %v16357_v0 = vpack.c.bf16 %v18368_v63, %v18367_v39  ;;  %v16378_v20 = vpack.c.bf16 %v18377_v23, %v18376_v41  ;;  %18381 = vst [vmem:[#allocation129_spill] sm:$0xff] %v16385_v44  ;;  %v18404_v56 = vand.u32 4294901760, %v15909_v38 }
 0x992   :  { %12381 = vmatprep.subr.bf16.mxu1 %v16322_v28  ;;  %18363 = vst [vmem:[#allocation110_spill] sm:$0xff] %v16341_v61  ;;  %v18365_v28 = vand.u32 4294901760, %v18326_v62  ;;  %v18385_v62 = vand.u32 4294901760, %v18347_v24  ;;  %v18394_v24 = vand.u32 4294901760, %v15823_v36  ;;  %v18403_v36 = vand.u32 4294901760, %v15904_v60 }
 0x993   :  { %18369 = vst [vmem:[#allocation116_spill] sm:$0xff] %v16357_v0  ;;  %18378 = vst [vmem:[#allocation126_spill] sm:$0xff] %v16378_v20 }
 0x994   :  { %v16348_v46 = vpack.c.bf16 %v18365_v28, %v18364_v11  ;;  %v16364_v28 = vpack.c.bf16 %v18371_v40, %v18370_v2  ;;  %v18373_v11 = vand.u32 4294901760, %v18335_v6  ;;  %v18383_v6 = vand.u32 4294901760, %v18345_v25 }
 0x995   :  { %12383 = vmatpush3.bf16.msra.mxu1 %v16327_v21  ;;  %v16399_v31 = vpack.c.bf16 %v18386_v4, %v18385_v62  ;;  %v18392_v25 = vand.u32 4294901760, %v15813_v18  ;;  %v16420_v63 = vpack.c.bf16 %v18395_v55, %v18394_v24  ;;  %v16427_v2 = vpack.c.bf16 %v18398_v13, %v18397_v29 }
 0x996   :  { %12417 = vmatprep.subr.bf16.mxu1 %v16334_v22  ;;  %18366 = vst [vmem:[#allocation112_spill] sm:$0xff] %v16348_v46  ;;  %18372 = vst [vmem:[#allocation119_spill] sm:$0xff] %v16364_v28  ;;  %v18401_v18 = vand.u32 4294901760, %v15884_v34 }
 0x997   :  { %18387 = vst [vmem:[#allocation136_spill] sm:$0xff] %v16399_v31  ;;  %18396 = vst [vmem:[#allocation139_spill] sm:$0xff] %v16420_v63 }
 0x998   :  { %4869 = vmatmul.mubr.f32.vlgmr.msra.gmra.mrb[32].mxu1 %v16202_v49  ;;  %18399 = vst [vmem:[#allocation140_spill] sm:$0xff] %v16427_v2 }
 0x999   :  { %12419 = vmatpush3.bf16.msra.mxu1 %v16341_v61  ;;  %5143 = vmatprep.mubr.f32.mxu1 %v15784_v42  ;;  %v18374_v42 = vand.u32 4294901760, %v18336_v52  ;;  %v18382_v52 = vand.u32 4294901760, %v18344_v17  ;;  %v18391_v17 = vand.u32 4294901760, %v15808_v27  ;;  %v18400_v27 = vand.u32 4294901760, %v15879_v32 }
 0x99a   :  { %12421 = vmatprep.subr.bf16.mxu1 %v16348_v46 }
 0x99b   :  { %v16371_v49 = vpack.c.bf16 %v18374_v42, %v18373_v11  ;;  %v16392_v14 = vpack.c.bf16 %v18383_v6, %v18382_v52  ;;  %v16413_v39 = vpack.c.bf16 %v18392_v25, %v18391_v17  ;;  %v16434_v40 = vpack.c.bf16 %v18401_v18, %v18400_v27 }
 0x99c   :  { %v16441_v11 = vpack.c.bf16 %v18404_v56, %v18403_v36 }
 0x99d   :  { %12423 = vmatpush3.bf16.msra.mxu1 %v16357_v0  ;;  %18375 = vst [vmem:[#allocation122_spill] sm:$0xff] %v16371_v49  ;;  %18384 = vst [vmem:[#allocation135_spill] sm:$0xff] %v16392_v14 }
 0x99e   :  { %12425 = vmatprep.subr.bf16.mxu1 %v16364_v28  ;;  %18393 = vst [vmem:[#allocation138_spill] sm:$0xff] %v16413_v39  ;;  %18402 = vst [vmem:[#allocation141_spill] sm:$0xff] %v16434_v40 }
 0x99f   :  { %18405 = vst [vmem:[#allocation142_spill] sm:$0xff] %v16441_v11 }
 0x9a1   :  { %12427 = vmatpush3.bf16.msra.mxu1 %v16371_v49 }
 0x9a2   :  { %12429 = vmatprep.subr.bf16.mxu1 %v16378_v20 }
 0x9a5   :  { %12431 = vmatpush3.bf16.msra.mxu1 %v16385_v44 }
 0x9a6   :  { %12433 = vmatprep.subr.bf16.mxu1 %v16392_v14  ;;  %v16475_v14 = vld [vmem:[#allocation9 + $0x70] sm:$0xff] }
 0x9a7   :  { %v17803_v49 = vand.u32 4294901760, %v16475_v14 }
 0x9a9   :  { %12435 = vmatpush3.bf16.msra.mxu1 %v16399_v31  ;;  %v16473_v31 = vld [vmem:[#allocation9 + $0x50] sm:$0xff] }
 0x9aa   :  { %12437 = vmatprep.subr.bf16.mxu1 %v16406_v33  ;;  %v17804_v20 = vand.u32 4294901760, %v16473_v31 }
 0x9ac   :  { %v16502_v37 = vpack.c.bf16 %v17803_v49, %v17804_v20 }
 0x9ad   :  { %12439 = vmatpush3.bf16.msra.mxu1 %v16413_v39 }
 0x9ae   :  { %12441 = vmatprep.subr.bf16.mxu1 %v16420_v63 }
 0x9b1   :  { %12443 = vmatpush3.bf16.msra.mxu1 %v16427_v2 }
 0x9b2   :  { %12445 = vmatprep.subr.bf16.mxu1 %v16434_v40  ;;  %v16464_v40 = vld [vmem:[#allocation9 + $0x78] sm:$0xff] }
 0x9b3   :  { %v5848_v44 = vand.u32 4294901760, %v16464_v40 }
 0x9b5   :  { %12447 = vmatpush3.bf16.msra.mxu1 %v16441_v11  ;;  %v16462_v11 = vld [vmem:[#allocation9 + $0x58] sm:$0xff] }
 0x9b6   :  { %v5844_v33 = vand.u32 4294901760, %v16462_v11 }
 0x9b8   :  { %5145 = vmatmul.mubr.f32.vlgmr.msra.gmra.mrb[34].mxu1 %v15996_v30  ;;  %v16496_v21 = vpack.c.bf16 %v5848_v44, %v5844_v33 }
 0x9b9   :  { %5365 = vmatprep.mubr.f32.mxu1 %v18328_v48 }
 0x9c6   :  { %v10565_v58 = vpop.f32.mrb[16].mxu0 }
 0x9c7   :  { %v10566_v19 = vpop.f32.mrb[17].mxu0 }
 0x9c8   :  { %v10567_v32 = vadd.f32 %v10566_v19, %v10565_v58  ;;  %v3423_v19 = vld [vmem:[#allocation9 + $0x8] sm:$0xff] }
 0x9ca   :  { %v10460_v34 = vpop.f32.mrb[6].mxu1 }
 0x9cb   :  { %v10461_v42 = vpop.f32.mrb[7].mxu1 }
 0x9cc   :  { %v10462_v41 = vadd.f32 %v10461_v42, %v10460_v34  ;;  %v3427_v34 = vld [vmem:[#allocation9 + $0x28] sm:$0xff]  ;;  %v5293_v42 = vand.u32 4294901760, %v3423_v19 }
 0x9ce   :  { %v16488_v46 = vsub.f32 %v3423_v19, %v5293_v42 }
 0x9d0   :  { %v17807_v19 = vand.u32 4294901760, %v16488_v46 }
 0x9e7   :  { %v10635_v23 = vpop.f32.mrb[18].mxu0 }
 0x9e8   :  { %v10636_v60 = vpop.f32.mrb[19].mxu0 }
 0x9e9   :  { %v10637_v51 = vadd.f32 %v10636_v60, %v10635_v23  ;;  %v3422_v23 = vld [vmem:[#allocation9] sm:$0xff] }
 0x9ea   :  { %v3426_v60 = vld [vmem:[#allocation9 + $0x20] sm:$0xff] }
 0x9eb   :  { %v10495_v38 = vpop.f32.mrb[24].mxu1 }
 0x9ec   :  { %v10496_v16 = vpop.f32.mrb[25].mxu1 }
 0x9ed   :  { %v10497_v52 = vadd.f32 %v10496_v16, %v10495_v38  ;;  %v3425_v38 = vld [vmem:[#allocation9 + $0x18] sm:$0xff]  ;;  %v5295_v16 = vand.u32 4294901760, %v3422_v23 }
 0x9ef   :  { %v3871_v6 = vadd.f32 %v10497_v52, %v10462_v41  ;;  %v5297_v41 = vand.u32 4294901760, %v3427_v34  ;;  %v5299_v52 = vand.u32 4294901760, %v3426_v60  ;;  %v16492_v22 = vsub.f32 %v3422_v23, %v5295_v16 }
 0x9f1   :  { %v16490_v61 = vsub.f32 %v3427_v34, %v5297_v41 }
 0x9f3   :  { %v17805_v34 = vand.u32 4294901760, %v16490_v61 }
 0xa08   :  { %v10705_v62 = vpop.f32.mrb[20].mxu0 }
 0xa09   :  { %v10706_v4 = vpop.f32.mrb[21].mxu0 }
 0xa0a   :  { %v16447_v26 = vadd.f32 %v10706_v4, %v10705_v62  ;;  %v3424_v62 = vld [vmem:[#allocation9 + $0x10] sm:$0xff] }
 0xa0b   :  { %v10530_v30 = vpop.f32.mrb[26].mxu1  ;;  %v3428_v4 = vld [vmem:[#allocation9 + $0x30] sm:$0xff] }
 0xa0c   :  { %v10531_v57 = vpop.f32.mrb[27].mxu1 }
 0xa0d   :  { %v10532_v17 = vadd.f32 %v10531_v57, %v10530_v30  ;;  %v16453_v30 = vpack.c.bf16 %v5297_v41, %v5293_v42  ;;  %v17806_v42 = vand.u32 4294901760, %v16492_v22 }
 0xa0f   :  { %v4009_v25 = vadd.f32 %v10532_v17, %v3871_v6  ;;  %v5836_v6 = vand.u32 4294901760, %v3425_v38  ;;  %v5838_v17 = vand.u32 4294901760, %v3424_v62  ;;  %12481 = vmatprep.subr.bf16.mxu1 %v16453_v30 }
 0xa11   :  { %v4117_v24 = vadd.f32 %v10567_v32, %v4009_v25  ;;  %v3429_v32 = vld [vmem:[#allocation9 + $0x38] sm:$0xff]  ;;  %v5842_v25 = vand.u32 4294901760, %v3428_v4  ;;  %v16509_v41 = vsub.f32 %v3425_v38, %v5836_v6  ;;  %v16516_v49 = vsub.f32 %v3424_v62, %v5838_v17 }
 0xa12   :  { %v5840_v57 = vand.u32 4294901760, %v3429_v32  ;;  %v5392_v38 = vsub.f32 %v16490_v61, %v17805_v34 }
 0xa13   :  { %v16469_v63 = vpack.c.bf16 %v5842_v25, %v5838_v17  ;;  %v17812_v20 = vand.u32 4294901760, %v16509_v41 }
 0xa14   :  { %v16467_v2 = vpack.c.bf16 %v5840_v57, %v5836_v6  ;;  %v5386_v6 = vsub.f32 %v16492_v22, %v17806_v42 }
 0xa15   :  { %v5923_v42 = vsub.f32 %v16509_v41, %v17812_v20 }
 0xa16   :  { %12529 = vmatprep.subr.bf16.mxu0 %v16467_v2  ;;  %v5387_v34 = vand.u32 4294901760, %v5386_v6 }
 0xa17   :  { %12531 = vmatpush1.bf16.msra.mxu0 %v16469_v63 }
 0xa18   :  { %12533 = vmatprep.subr.bf16.mxu0 %v16496_v21 }
 0xa1b   :  { %12535 = vmatpush1.bf16.msra.mxu0 %v16502_v37 }
 0xa28   :  { %v10775_v55 = vpop.f32.mrb[22].mxu0 }
 0xa29   :  { %v10776_v29 = vpop.f32.mrb[23].mxu0 }
 0xa2a   :  { %v16449_v13 = vadd.f32 %v10776_v29, %v10775_v55  ;;  %v16455_v55 = vld [vmem:[#allocation9 + $0x40] sm:$0xff]  ;;  %v16457_v29 = vpack.c.bf16 %v5299_v52, %v5295_v16  ;;  %v16514_v16 = vsub.f32 %v3429_v32, %v5840_v57 }
 0xa2b   :  { %v10600_v27 = vpop.f32.mrb[28].mxu1  ;;  %v18406_v28 = vand.u32 4294901760, %v16455_v55 }
 0xa2c   :  { %v10601_v18 = vpop.f32.mrb[29].mxu1  ;;  %12483 = vmatpush1.bf16.msra.mxu1 %v16457_v29  ;;  %v17814_v62 = vand.u32 4294901760, %v16514_v16 }
 0xa2d   :  { %v10602_v36 = vadd.f32 %v10601_v18, %v10600_v27 }
 0xa2e   :  { %v5935_v3 = vsub.f32 %v16514_v16, %v17814_v62 }
 0xa2f   :  { %v4285_v56 = vadd.f32 %v10602_v36, %v4117_v24  ;;  %v3435_v24 = vld [vmem:[#allocation9 + $0x68] sm:$0xff]  ;;  %v16459_v36 = vld [vmem:[#allocation9 + $0x60] sm:$0xff] }
 0xa30   :  { %v5305_v18 = vand.u32 4294901760, %v3435_v24  ;;  %v5307_v39 = vand.u32 4294901760, %v16459_v36  ;;  %v5936_v20 = vand.u32 4294901760, %v5935_v3  ;;  %v5945_v3 = vsub.f32 %v16462_v11, %v5844_v33 }
 0xa31   :  { %v16451_v58 = vadd.f32 %v10637_v51, %v4285_v56  ;;  %v3431_v51 = vld [vmem:[#allocation9 + $0x48] sm:$0xff]  ;;  %v18413_v33 = vand.u32 4294901760, %v16475_v14 }
 0xa32   :  { %v5301_v27 = vand.u32 4294901760, %v3431_v51  ;;  %v16486_v0 = vpack.c.bf16 %v5307_v39, %v18406_v28  ;;  %v16504_v28 = vsub.f32 %v3426_v60, %v5299_v52  ;;  %v16518_v60 = vsub.f32 %v3428_v4, %v5842_v25 }
 0xa33   :  { %v5380_v52 = vsub.f32 %v16488_v46, %v17807_v19  ;;  %v17815_v4 = vand.u32 4294901760, %v16516_v49  ;;  %v5393_v25 = vand.u32 4294901760, %v5392_v38  ;;  %v5924_v38 = vand.u32 4294901760, %v5923_v42 }
 0xa34   :  { %v16478_v56 = vpack.c.bf16 %v5305_v18, %v5301_v27  ;;  %v17809_v23 = vand.u32 4294901760, %v16504_v28  ;;  %v17816_v57 = vand.u32 4294901760, %v16518_v60  ;;  %v16551_v6 = vsub.f32 %v3431_v51, %v5301_v27 }
 0xa35   :  { %v5381_v17 = vand.u32 4294901760, %v5380_v52  ;;  %v16553_v54 = vsub.f32 %v3435_v24, %v5305_v18  ;;  %v5420_v51 = vsub.f32 %v16459_v36, %v5307_v39  ;;  %v16564_v27 = vpack.c.bf16 %v5936_v20, %v5924_v38 }
 0xa36   :  { %12485 = vmatprep.subr.bf16.mxu1 %v16478_v56  ;;  %v5398_v32 = vsub.f32 %v16504_v28, %v17809_v23  ;;  %v5929_v23 = vsub.f32 %v16516_v49, %v17815_v4  ;;  %v5941_v1 = vsub.f32 %v16518_v60, %v17816_v57  ;;  %v5403_v4 = vand.u32 4294901760, %v16551_v6 }
 0xa37   :  { %12487 = vmatpush1.bf16.msra.mxu1 %v16486_v0  ;;  %v16549_v52 = vpack.c.bf16 %v5393_v25, %v5381_v17  ;;  %v5415_v53 = vand.u32 4294901760, %v16553_v54  ;;  %v18409_v57 = vand.u32 4294901760, %v16455_v55  ;;  %18410 = vst [vmem:[#allocation150_spill] sm:$0xff] %v16564_v27  ;;  %12537 = vmatprep.subr.bf16.mxu0 %v16564_v27  ;;  %v18412_v20 = vand.u32 4294901760, %v16473_v31 }
 0xa38   :  { %v5399_v19 = vand.u32 4294901760, %v5398_v32  ;;  %v5930_v59 = vand.u32 4294901760, %v5929_v23  ;;  %v5942_v62 = vand.u32 4294901760, %v5941_v1  ;;  %v5957_v1 = vsub.f32 %v16464_v40, %v5848_v44 }
 0xa39   :  { %18407 = vst [vmem:[#allocation143_spill] sm:$0xff] %v16549_v52  ;;  %12489 = vmatprep.subr.bf16.mxu1 %v16549_v52  ;;  %v5408_v17 = vsub.f32 %v16455_v55, %v18409_v57  ;;  %v5421_v23 = vand.u32 4294901760, %v5420_v51  ;;  %v5946_v55 = vand.u32 4294901760, %v5945_v3  ;;  %v5963_v44 = vsub.f32 %v16475_v14, %v18413_v33 }
 0xa3a   :  { %v16555_v32 = vpack.c.bf16 %v5399_v19, %v5387_v34  ;;  %v16566_v24 = vpack.c.bf16 %v5942_v62, %v5930_v59  ;;  %v5404_v19 = vsub.f32 %v16551_v6, %v5403_v4  ;;  %v5416_v34 = vsub.f32 %v16553_v54, %v5415_v53 }
 0xa3b   :  { %v5409_v42 = vand.u32 4294901760, %v5408_v17  ;;  %v5958_v39 = vand.u32 4294901760, %v5957_v1  ;;  %v5951_v59 = vsub.f32 %v16473_v31, %v18412_v20  ;;  %v5422_v38 = vsub.f32 %v5420_v51, %v5421_v23 }
 0xa3c   :  { %18408 = vst [vmem:[#allocation149_spill] sm:$0xff] %v16555_v32  ;;  %18411 = vst [vmem:[#allocation153_spill] sm:$0xff] %v16566_v24  ;;  %v5405_v11 = vand.u32 4294901760, %v5404_v19  ;;  %v5417_v36 = vand.u32 4294901760, %v5416_v34  ;;  %v5947_v52 = vsub.f32 %v5945_v3, %v5946_v55  ;;  %v5964_v8 = vand.u32 4294901760, %v5963_v44 }
 0xa3d   :  { %v5410_v62 = vsub.f32 %v5408_v17, %v5409_v42  ;;  %v5959_v50 = vsub.f32 %v5957_v1, %v5958_v39  ;;  %v5952_v45 = vand.u32 4294901760, %v5951_v59  ;;  %v16583_v31 = vpack.c.bf16 %v16490_v61, %v16488_v46 }
 0xa3e   :  { %v16579_v43 = vpack.c.bf16 %v5417_v36, %v5405_v11  ;;  %v5423_v14 = vand.u32 4294901760, %v5422_v38  ;;  %v16587_v33 = vpack.c.bf16 %v16504_v28, %v16492_v22  ;;  %v16591_v11 = vpack.c.bf16 %v16514_v16, %v16509_v41 }
 0xa3f   :  { %v5411_v47 = vand.u32 4294901760, %v5410_v62  ;;  %18415 = vst [vmem:[#allocation168_spill] sm:$0xff] %v16583_v31  ;;  %v5960_v19 = vand.u32 4294901760, %v5959_v50  ;;  %v5953_v34 = vsub.f32 %v5951_v59, %v5952_v45  ;;  %v16606_v38 = vpack.c.bf16 %v5420_v51, %v5408_v17 }
 0xa40   :  { %18414 = vst [vmem:[#allocation154_spill] sm:$0xff] %v16579_v43  ;;  %18416 = vst [vmem:[#allocation169_spill] sm:$0xff] %v16587_v33  ;;  %v16609_v5 = vpack.c.bf16 %v5957_v1, %v5945_v3  ;;  %v18433_v17 = vand.u32 4294901760, %v16514_v16  ;;  %v18435_v3 = vand.u32 4294901760, %v16516_v49 }
 0xa41   :  { %18417 = vst [vmem:[#allocation170_spill] sm:$0xff] %v16591_v11  ;;  %v16594_v62 = vpack.c.bf16 %v5423_v14, %v5411_v47  ;;  %v5954_v50 = vand.u32 4294901760, %v5953_v34  ;;  %18422 = vst [vmem:[#allocation175_spill] sm:$0xff] %v16606_v38  ;;  %v16611_v47 = vpack.c.bf16 %v5963_v44, %v5951_v59  ;;  %v18427_v14 = vand.u32 4294901760, %v16490_v61 }
 0xa42   :  { %18423 = vst [vmem:[#allocation176_spill] sm:$0xff] %v16609_v5  ;;  %v16639_v61 = vpack.c.bf16 %v5415_v53, %v5403_v4  ;;  %v16641_v59 = vpack.c.bf16 %v5421_v23, %v5409_v42 }
 0xa43   :  { %18418 = vst [vmem:[#allocation171_spill] sm:$0xff] %v16594_v62  ;;  %18424 = vst [vmem:[#allocation177_spill] sm:$0xff] %v16611_v47 }
 0xa44   :  { %18438 = vst [vmem:[#allocation183_spill] sm:$0xff] %v16639_v61  ;;  %18439 = vst [vmem:[#allocation184_spill] sm:$0xff] %v16641_v59 }
 0xa48   :  { %v10845_v18 = vpop.f32.mrb[24].mxu0 }
 0xa49   :  { %v10846_v25 = vpop.f32.mrb[25].mxu0 }
 0xa4a   :  { %v10847_v40 = vadd.f32 %v10846_v25, %v10845_v18  ;;  %v5948_v18 = vand.u32 4294901760, %v5947_v52  ;;  %v5965_v25 = vsub.f32 %v5963_v44, %v5964_v8  ;;  %v16600_v52 = vpack.c.bf16 %v16518_v60, %v16516_v49 }
 0xa4b   :  { %v10670_v57 = vpop.f32.mrb[30].mxu1 }
 0xa4c   :  { %v10671_v27 = vpop.f32.mrb[31].mxu1  ;;  %v16596_v10 = vpack.c.bf16 %v5960_v19, %v5948_v18  ;;  %18420 = vst [vmem:[#allocation173_spill] sm:$0xff] %v16600_v52  ;;  %v18429_v19 = vand.u32 4294901760, %v16492_v22  ;;  %v16643_v22 = vpack.c.bf16 %v5958_v39, %v5946_v55 }
 0xa4d   :  { %v10672_v20 = vadd.f32 %v10671_v27, %v10670_v57  ;;  %v5966_v27 = vand.u32 4294901760, %v5965_v25  ;;  %v16604_v57 = vpack.c.bf16 %v16553_v54, %v16551_v6  ;;  %v18430_v54 = vand.u32 4294901760, %v16504_v28 }
 0xa4e   :  { %18419 = vst [vmem:[#allocation172_spill] sm:$0xff] %v16596_v10  ;;  %18440 = vst [vmem:[#allocation185_spill] sm:$0xff] %v16643_v22  ;;  %v16645_v28 = vpack.c.bf16 %v5964_v8, %v5952_v45  ;;  %v18442_v45 = vld [vmem:[#allocation20_spill] sm:$0xff] }
 0xa4f   :  { %v4501_v36 = vadd.f32 %v10672_v20, %v16451_v58  ;;  %18421 = vst [vmem:[#allocation174_spill] sm:$0xff] %v16604_v57  ;;  %v16613_v58 = vpack.c.bf16 %v5966_v27, %v5954_v50  ;;  %v18426_v20 = vand.u32 4294901760, %v16488_v46  ;;  %v16625_v6 = vpack.c.bf16 %v18430_v54, %v18429_v19 }
 0xa50   :  { %v18436_v46 = vand.u32 4294901760, %v16518_v60  ;;  %18441 = vst [vmem:[#allocation186_spill] sm:$0xff] %v16645_v28 }
 0xa51   :  { %v4733_v35 = vadd.f32 %v16447_v26, %v4501_v36  ;;  %18425 = vst [vmem:[#allocation178_spill] sm:$0xff] %v16613_v58  ;;  %v16619_v18 = vpack.c.bf16 %v18427_v14, %v18426_v20  ;;  %18431 = vst [vmem:[#allocation180_spill] sm:$0xff] %v16625_v6  ;;  %v18432_v26 = vand.u32 4294901760, %v16509_v41 }
 0xa52   :  { %v16637_v1 = vpack.c.bf16 %v18436_v46, %v18435_v3 }
 0xa53   :  { %18428 = vst [vmem:[#allocation179_spill] sm:$0xff] %v16619_v18  ;;  %v16631_v51 = vpack.c.bf16 %v18433_v17, %v18432_v26  ;;  %v18443_v26 = vld [vmem:[#allocation21_spill] sm:$0xff] }
 0xa54   :  { %18437 = vst [vmem:[#allocation182_spill] sm:$0xff] %v16637_v1 }
 0xa55   :  { %18434 = vst [vmem:[#allocation181_spill] sm:$0xff] %v16631_v51 }
 0xa6b   :  { %v10740_v44 = vpop.f32.mrb[32].mxu1 }
 0xa6c   :  { %v10741_v41 = vpop.f32.mrb[33].mxu1 }
 0xa6d   :  { %v10742_v34 = vadd.f32 %v10741_v41, %v10740_v44 }
 0xa6f   :  { %v4871_v16 = vadd.f32 %v10742_v34, %v4733_v35  ;;  %v3356_v35 = vld [vmem:[%s17423_s9] sm:$0x1] }
 0xa71   :  { %v4979_v25 = vadd.f32 %v16449_v13, %v4871_v16 }
 0xa8b   :  { %v10810_v36 = vpop.f32.mrb[34].mxu1 }
 0xa8c   :  { %v10811_v49 = vpop.f32.mrb[35].mxu1 }
 0xa8d   :  { %v10812_v50 = vadd.f32 %v10811_v49, %v10810_v36  ;;  %v13249_v36 = vld [vmem:[%s17418_s4 + $0x4] ss:$16 sps:$4 sm:$0xff]   ;;  %v13297_v49 = vld [vmem:[%s17418_s4 + $0xc] ss:$16 sps:$4 sm:$0xff]  }
 0xa8f   :  { %v5147_v60 = vadd.f32 %v10812_v50, %v4979_v25  ;;  %v13247_v50 = vld [vmem:[%s17418_s4] ss:$16 sps:$4 sm:$0xff]  }
 0xa91   :  { %v5251_v27 = vadd.f32 %v10847_v40, %v5147_v60  ;;  %v3357_v40 = vld [vmem:[%s17424_s10] sm:$0x1]  ;;  %v13252_v60 = vld [vmem:[%s17418_s4 + $0x24] ss:$16 sps:$4 sm:$0xff]  }
 0xa93   :  { %v5254_v20 = vmul.f32 0.001953125, %v5251_v27  ;;  %v13295_v27 = vld [vmem:[%s17418_s4 + $0x8] ss:$16 sps:$4 sm:$0xff]  }
 0xa95   :  { %v5255_v53 = vmul.f32 %v5254_v20, %v5254_v20 }
 0xa97   :  { %v5257_v4 = vrot.slane %v5255_v53, 7  ;;  %v13250_v53 = vld [vmem:[%s17418_s4 + $0x20] ss:$16 sps:$4 sm:$0xff]  }
 0xa99   :  { %v5259_v42 = vsub.f32 %v5254_v20, %v5257_v4  ;;  %v18444_v4 = vld [vmem:[#allocation16_spill] sm:$0xff] }
 0xa9b   :  { %v5260_v23 = vadd.f32 1e-05, %v5259_v42  ;;  %v13255_v42 = vld [vmem:[%s17418_s4 + $0x44] ss:$16 sps:$4 sm:$0xff]  }
 0xa9d   :  { %13347 = vrsqrt.f32 %v5260_v23  ;;  %v13298_v23 = vld [vmem:[%s17418_s4 + $0x28] ss:$16 sps:$4 sm:$0xff]  }
 0xaa7   :  { %v13348_v55 = vpop.eup %13347 }
 0xaa8   :  { %v5269_v8 = vrot.slane %v13348_v55, %v18442_v45  ;;  %v13303_v55 = vld [vmem:[%s17418_s4 + $0x4c] ss:$16 sps:$4 sm:$0xff]  }
 0xaaa   :  { %v5270_v39 = vcombine.high %v5269_v8, %v5269_v8  ;;  %v13253_v8 = vld [vmem:[%s17418_s4 + $0x40] ss:$16 sps:$4 sm:$0xff]  }
 0xaac   :  { %v5277_v13 = vrot.slane %v5270_v39, %v18442_v45  ;;  %v13258_v39 = vld [vmem:[%s17418_s4 + $0x64] ss:$16 sps:$4 sm:$0xff]  }
 0xaae   :  { %v5279_v14 = vmul.f32 %v5277_v13, %v3356_v35  ;;  %v13301_v35 = vld [vmem:[%s17418_s4 + $0x48] ss:$16 sps:$4 sm:$0xff]   ;;  %v13306_v13 = vld [vmem:[%s17418_s4 + $0x6c] ss:$16 sps:$4 sm:$0xff]  }
 0xab0   :  { %v5280_v19 = vmul.f32 %v5279_v14, %v5254_v20  ;;  %v13300_v20 = vld [vmem:[%s17418_s4 + $0x2c] ss:$16 sps:$4 sm:$0xff]  }
 0xab2   :  { %v5281_v54 = vsub.f32 %v3357_v40, %v5280_v19  ;;  %v13261_v40 = vld [vmem:[%s17418_s4 + $0x84] ss:$16 sps:$4 sm:$0xff]   ;;  %v13304_v19 = vld [vmem:[%s17418_s4 + $0x68] ss:$16 sps:$4 sm:$0xff]  }
 0xab4   :  { %v5286_v17 = vrot.slane %v5281_v54, %v18443_v26  ;;  %v13309_v54 = vld [vmem:[%s17418_s4 + $0x8c] ss:$16 sps:$4 sm:$0xff]  }
 0xab6   :  { %v5288_v3 = vsel %vm349_vm1, %v5279_v14, %v5286_v17  ;;  %v13256_v14 = vld [vmem:[%s17418_s4 + $0x60] ss:$16 sps:$4 sm:$0xff]  }
 0xab7   :  { %v5291_v46 = vsel %vm5289_vm3, %v5288_v3, 0  ;;  %v13259_v17 = vld [vmem:[%s17418_s4 + $0x80] ss:$16 sps:$4 sm:$0xff]   ;;  %v13264_v3 = vld [vmem:[%s17418_s4 + $0xa4] ss:$16 sps:$4 sm:$0xff]  }
 0xab8   :  { %v16659_v44 = vand.u32 4294901760, %v5291_v46 }
 0xaba   :  { %v5367_v41 = vsub.f32 %v5291_v46, %v16659_v44  ;;  %v13307_v46 = vld [vmem:[%s17418_s4 + $0x88] ss:$16 sps:$4 sm:$0xff]  }
 0xabc   :  { %v5368_v34 = vand.u32 4294901760, %v5367_v41 }
 0xabe   :  { %v5369_v16 = vsub.f32 %v5367_v41, %v5368_v34 }
 0xac0   :  { %v5370_v25 = vand.u32 4294901760, %v5369_v16  ;;  %v13310_v16 = vld [vmem:[%s17418_s4 + $0xa8] ss:$16 sps:$4 sm:$0xff]  }
 0xac2   :  { %5371 = vmatmul.mubr.f32.vlgmr.msra.gmra.mrb[36].mxu1 %v5370_v25  ;;  %5914 = vmatmul.mubr.f32.vlgmr.msra.gmra.mrb[26].mxu0 %v5370_v25  ;;  %v13315_v25 = vld [vmem:[%s17418_s4 + $0xcc] ss:$16 sps:$4 sm:$0xff]  }
 0xac3   :  { %12491 = vmatpush1.bf16.msra.mxu1 %v16555_v32  ;;  %12539 = vmatpush1.bf16.msra.mxu0 %v16566_v24 }
 0xac4   :  { %12493 = vmatprep.subr.bf16.mxu1 %v16579_v43  ;;  %12541 = vmatprep.subr.bf16.mxu0 %v16596_v10 }
 0xac5   :  { %5481 = vmatprep.mubr.f32.mxu1 %v18328_v48  ;;  %6024 = vmatprep.mubr.f32.mxu0 %v18328_v48 }
 0xac7   :  { %12495 = vmatpush1.bf16.msra.mxu1 %v16594_v62  ;;  %12543 = vmatpush1.bf16.msra.mxu0 %v16613_v58 }
 0xac8   :  { %12497 = vmatprep.subr.bf16.mxu1 %v16583_v31  ;;  %12545 = vmatprep.subr.bf16.mxu0 %v16591_v11  ;;  %v18489_v11 = vld [vmem:[#allocation131_spill] sm:$0xff] }
 0xaca   :  { %5483 = vmatmul.mubr.f32.vlgmr.msra.gmra.mrb[36].mxu1 %v16659_v44  ;;  %6026 = vmatmul.mubr.f32.vlgmr.msra.gmra.mrb[26].mxu0 %v16659_v44 }
 0xacb   :  { %12499 = vmatpush1.bf16.msra.mxu1 %v16587_v33  ;;  %12547 = vmatpush1.bf16.msra.mxu0 %v16600_v52  ;;  %v18488_v52 = vld [vmem:[#allocation125_spill] sm:$0xff] }
 0xacc   :  { %12501 = vmatprep.subr.bf16.mxu1 %v16604_v57  ;;  %12549 = vmatprep.subr.bf16.mxu0 %v16609_v5  ;;  %v18487_v5 = vld [vmem:[#allocation121_spill] sm:$0xff] }
 0xacd   :  { %5569 = vmatprep.mubr.f32.mxu1 %v18328_v48  ;;  %6112 = vmatprep.mubr.f32.mxu0 %v18328_v48 }
 0xacf   :  { %12503 = vmatpush1.bf16.msra.mxu1 %v16606_v38  ;;  %12551 = vmatpush1.bf16.msra.mxu0 %v16611_v47  ;;  %v18486_v38 = vld [vmem:[#allocation118_spill] sm:$0xff] }
 0xad0   :  { %12505 = vmatprep.subr.bf16.mxu1 %v16453_v30  ;;  %12553 = vmatprep.subr.bf16.mxu0 %v16467_v2 }
 0xad2   :  { %5572 = vmatmul.mubr.f32.vlgmr.msra.gmra.mrb[36].mxu1 %v5367_v41  ;;  %6115 = vmatmul.mubr.f32.vlgmr.msra.gmra.mrb[26].mxu0 %v5367_v41  ;;  %v13262_v41 = vld [vmem:[%s17418_s4 + $0xa0] ss:$16 sps:$4 sm:$0xff]  }
 0xad3   :  { %12507 = vmatpush1.bf16.msra.mxu1 %v16457_v29  ;;  %12555 = vmatpush1.bf16.msra.mxu0 %v16469_v63 }
 0xad4   :  { %12509 = vmatprep.subr.bf16.mxu1 %v16478_v56  ;;  %12557 = vmatprep.subr.bf16.mxu0 %v16496_v21 }
 0xad5   :  { %5650 = vmatprep.mubr.f32.mxu1 %v18328_v48  ;;  %6193 = vmatprep.mubr.f32.mxu0 %v18328_v48 }
 0xad7   :  { %12511 = vmatpush1.bf16.msra.mxu1 %v16486_v0  ;;  %12559 = vmatpush1.bf16.msra.mxu0 %v16502_v37 }
 0xad8   :  { %12513 = vmatprep.subr.bf16.mxu1 %v16619_v18  ;;  %12561 = vmatprep.subr.bf16.mxu0 %v16631_v51  ;;  %v18484_v51 = vld [vmem:[#allocation102_spill] sm:$0xff]  ;;  %v18485_v18 = vld [vmem:[#allocation104_spill] sm:$0xff] }
 0xada   :  { %5654 = vmatmul.mubr.f32.vlgmr.msra.gmra.mrb[36].mxu1 %v5368_v34  ;;  %6197 = vmatmul.mubr.f32.vlgmr.msra.gmra.mrb[26].mxu0 %v5368_v34  ;;  %v13267_v34 = vld [vmem:[%s17418_s4 + $0xc4] ss:$16 sps:$4 sm:$0xff]  }
 0xadb   :  { %12515 = vmatpush1.bf16.msra.mxu1 %v16625_v6  ;;  %12563 = vmatpush1.bf16.msra.mxu0 %v16637_v1  ;;  %v18483_v1 = vld [vmem:[#allocation99_spill] sm:$0xff] }
 0xadc   :  { %12517 = vmatprep.subr.bf16.mxu1 %v16639_v61  ;;  %12565 = vmatprep.subr.bf16.mxu0 %v16643_v22  ;;  %v18482_v22 = vld [vmem:[#allocation97_spill] sm:$0xff] }
 0xadd   :  { %5748 = vmatprep.mubr.f32.mxu1 %v18328_v48  ;;  %6291 = vmatprep.mubr.f32.mxu0 %v18328_v48 }
 0xadf   :  { %12519 = vmatpush1.bf16.msra.mxu1 %v16641_v59  ;;  %12567 = vmatpush1.bf16.msra.mxu0 %v16645_v28 }
 0xae0   :  { %12521 = vmatprep.subr.bf16.mxu1 %v16453_v30  ;;  %12569 = vmatprep.subr.bf16.mxu0 %v16467_v2 }
 0xae2   :  { %5750 = vmatmul.mubr.f32.vlgmr.msra.gmra.mrb[36].mxu1 %v16659_v44  ;;  %6293 = vmatmul.mubr.f32.vlgmr.msra.gmra.mrb[26].mxu0 %v16659_v44 }
 0xae3   :  { %12523 = vmatpush1.bf16.msra.mxu1 %v16457_v29  ;;  %12571 = vmatpush1.bf16.msra.mxu0 %v16469_v63 }
 0xae4   :  { %12525 = vmatprep.subr.bf16.mxu1 %v16478_v56  ;;  %12573 = vmatprep.subr.bf16.mxu0 %v16496_v21 }
 0xae5   :  { %5828 = vmatprep.mubr.f32.mxu1 %v18328_v48  ;;  %6371 = vmatprep.mubr.f32.mxu0 %v18328_v48 }
 0xae7   :  { %12527 = vmatpush1.bf16.msra.mxu1 %v16486_v0  ;;  %12575 = vmatpush1.bf16.msra.mxu0 %v16502_v37 }
 0xae8   :  { %6827 = vmatprep.subr.bf16.mxu1 %v13249_v36  ;;  %6880 = vmatprep.subr.bf16.mxu0 %v13297_v49  ;;  %v13265_v36 = vld [vmem:[%s17418_s4 + $0xc0] ss:$16 sps:$4 sm:$0xff]   ;;  %v13270_v49 = vld [vmem:[%s17418_s4 + $0xe4] ss:$16 sps:$4 sm:$0xff]  }
 0xaea   :  { %5830 = vmatmul.mubr.f32.vlgmr.msra.gmra.mrb[36].mxu1 %v16659_v44  ;;  %6373 = vmatmul.mubr.f32.vlgmr.msra.gmra.mrb[26].mxu0 %v16659_v44  ;;  %v13312_v44 = vld [vmem:[%s17418_s4 + $0xac] ss:$16 sps:$4 sm:$0xff]  }
 0xaeb   :  { %6828 = vmatpush1.bf16.msra.mxu1 %v13247_v50  ;;  %6859 = vmatprep.mubr.bf16.mxu1 %v18444_v4  ;;  %v13313_v50 = vld [vmem:[%s17418_s4 + $0xc8] ss:$16 sps:$4 sm:$0xff]  }
 0xaec   :  { %6829 = vmatprep.subr.bf16.mxu1 %v13252_v60  ;;  %6881 = vmatpush1.bf16.msra.mxu0 %v13295_v27  ;;  %v13318_v60 = vld [vmem:[%s17418_s4 + $0xec] ss:$16 sps:$4 sm:$0xff]   ;;  %v13268_v27 = vld [vmem:[%s17418_s4 + $0xe0] ss:$16 sps:$4 sm:$0xff]  }
 0xaed   :  { %6882 = vmatprep.subr.bf16.mxu0 %v13300_v20  ;;  %6912 = vmatprep.mubr.bf16.mxu0 %v18444_v4  ;;  %v13273_v20 = vld [vmem:[%s17418_s4 + $0x104] ss:$16 sps:$4 sm:$0xff]   ;;  %v13321_v4 = vld [vmem:[%s17418_s4 + $0x10c] ss:$16 sps:$4 sm:$0xff]  }
 0xaef   :  { %6830 = vmatpush1.bf16.msra.mxu1 %v13250_v53  ;;  %v13316_v53 = vld [vmem:[%s17418_s4 + $0xe8] ss:$16 sps:$4 sm:$0xff]  }
 0xaf0   :  { %6831 = vmatprep.subr.bf16.mxu1 %v13255_v42  ;;  %6883 = vmatpush1.bf16.msra.mxu0 %v13298_v23  ;;  %v13271_v42 = vld [vmem:[%s17418_s4 + $0x100] ss:$16 sps:$4 sm:$0xff]   ;;  %v13276_v23 = vld [vmem:[%s17418_s4 + $0x124] ss:$16 sps:$4 sm:$0xff]  }
 0xaf1   :  { %6884 = vmatprep.subr.bf16.mxu0 %v13303_v55  ;;  %v13319_v55 = vld [vmem:[%s17418_s4 + $0x108] ss:$16 sps:$4 sm:$0xff]  }
 0xaf3   :  { %6832 = vmatpush1.bf16.msra.mxu1 %v13253_v8  ;;  %v13324_v8 = vld [vmem:[%s17418_s4 + $0x12c] ss:$16 sps:$4 sm:$0xff]  }
 0xaf4   :  { %6833 = vmatprep.subr.bf16.mxu1 %v13258_v39  ;;  %6885 = vmatpush1.bf16.msra.mxu0 %v13301_v35  ;;  %v13274_v39 = vld [vmem:[%s17418_s4 + $0x120] ss:$16 sps:$4 sm:$0xff]   ;;  %v13279_v35 = vld [vmem:[%s17418_s4 + $0x144] ss:$16 sps:$4 sm:$0xff]  }
 0xaf5   :  { %6886 = vmatprep.subr.bf16.mxu0 %v13306_v13  ;;  %v13322_v13 = vld [vmem:[%s17418_s4 + $0x128] ss:$16 sps:$4 sm:$0xff]  }
 0xaf7   :  { %6834 = vmatpush1.bf16.msra.mxu1 %v13256_v14  ;;  %v13327_v14 = vld [vmem:[%s17418_s4 + $0x14c] ss:$16 sps:$4 sm:$0xff]  }
 0xaf8   :  { %6835 = vmatprep.subr.bf16.mxu1 %v13261_v40  ;;  %6887 = vmatpush1.bf16.msra.mxu0 %v13304_v19  ;;  %v13277_v40 = vld [vmem:[%s17418_s4 + $0x140] ss:$16 sps:$4 sm:$0xff]   ;;  %v13282_v19 = vld [vmem:[%s17418_s4 + $0x164] ss:$16 sps:$4 sm:$0xff]  }
 0xaf9   :  { %6888 = vmatprep.subr.bf16.mxu0 %v13309_v54  ;;  %v13325_v54 = vld [vmem:[%s17418_s4 + $0x148] ss:$16 sps:$4 sm:$0xff]  }
 0xafb   :  { %6836 = vmatpush1.bf16.msra.mxu1 %v13259_v17  ;;  %v13330_v17 = vld [vmem:[%s17418_s4 + $0x16c] ss:$16 sps:$4 sm:$0xff]  }
 0xafc   :  { %6837 = vmatprep.subr.bf16.mxu1 %v13264_v3  ;;  %6889 = vmatpush1.bf16.msra.mxu0 %v13307_v46  ;;  %v13280_v3 = vld [vmem:[%s17418_s4 + $0x160] ss:$16 sps:$4 sm:$0xff]   ;;  %v13285_v46 = vld [vmem:[%s17418_s4 + $0x184] ss:$16 sps:$4 sm:$0xff]  }
 0xafd   :  { %6890 = vmatprep.subr.bf16.mxu0 %v13312_v44  ;;  %v13328_v44 = vld [vmem:[%s17418_s4 + $0x168] ss:$16 sps:$4 sm:$0xff]  }
 0xaff   :  { %6838 = vmatpush1.bf16.msra.mxu1 %v13262_v41  ;;  %v13333_v41 = vld [vmem:[%s17418_s4 + $0x18c] ss:$16 sps:$4 sm:$0xff]  }
 0xb00   :  { %6839 = vmatprep.subr.bf16.mxu1 %v13267_v34  ;;  %6891 = vmatpush1.bf16.msra.mxu0 %v13310_v16  ;;  %v13283_v34 = vld [vmem:[%s17418_s4 + $0x180] ss:$16 sps:$4 sm:$0xff]   ;;  %v13288_v16 = vld [vmem:[%s17418_s4 + $0x1a4] ss:$16 sps:$4 sm:$0xff]  }
 0xb01   :  { %6892 = vmatprep.subr.bf16.mxu0 %v13315_v25  ;;  %v13331_v25 = vld [vmem:[%s17418_s4 + $0x188] ss:$16 sps:$4 sm:$0xff]  }
 0xb03   :  { %6840 = vmatpush1.bf16.msra.mxu1 %v13265_v36  ;;  %v13336_v36 = vld [vmem:[%s17418_s4 + $0x1ac] ss:$16 sps:$4 sm:$0xff]  }
 0xb04   :  { %6841 = vmatprep.subr.bf16.mxu1 %v13270_v49  ;;  %6893 = vmatpush1.bf16.msra.mxu0 %v13313_v50  ;;  %v13286_v49 = vld [vmem:[%s17418_s4 + $0x1a0] ss:$16 sps:$4 sm:$0xff]   ;;  %v13291_v50 = vld [vmem:[%s17418_s4 + $0x1c4] ss:$16 sps:$4 sm:$0xff]  }
 0xb05   :  { %6894 = vmatprep.subr.bf16.mxu0 %v13318_v60  ;;  %v13334_v60 = vld [vmem:[%s17418_s4 + $0x1a8] ss:$16 sps:$4 sm:$0xff]  }
 0xb07   :  { %6842 = vmatpush1.bf16.msra.mxu1 %v13268_v27  ;;  %v13339_v27 = vld [vmem:[%s17418_s4 + $0x1cc] ss:$16 sps:$4 sm:$0xff]  }
 0xb08   :  { %6843 = vmatprep.subr.bf16.mxu1 %v13273_v20  ;;  %6895 = vmatpush1.bf16.msra.mxu0 %v13316_v53  ;;  %v13289_v20 = vld [vmem:[%s17418_s4 + $0x1c0] ss:$16 sps:$4 sm:$0xff]   ;;  %v13294_v53 = vld [vmem:[%s17418_s4 + $0x1e4] ss:$16 sps:$4 sm:$0xff]  }
 0xb09   :  { %6896 = vmatprep.subr.bf16.mxu0 %v13321_v4  ;;  %v13337_v4 = vld [vmem:[%s17418_s4 + $0x1c8] ss:$16 sps:$4 sm:$0xff]  }
 0xb0b   :  { %6844 = vmatpush1.bf16.msra.mxu1 %v13271_v42  ;;  %v13342_v42 = vld [vmem:[%s17418_s4 + $0x1ec] ss:$16 sps:$4 sm:$0xff]  }
 0xb0c   :  { %6845 = vmatprep.subr.bf16.mxu1 %v13276_v23  ;;  %6897 = vmatpush1.bf16.msra.mxu0 %v13319_v55  ;;  %v13292_v23 = vld [vmem:[%s17418_s4 + $0x1e0] ss:$16 sps:$4 sm:$0xff]   ;;  %v13340_v55 = vld [vmem:[%s17418_s4 + $0x1e8] ss:$16 sps:$4 sm:$0xff]  }
 0xb0d   :  { %6898 = vmatprep.subr.bf16.mxu0 %v13324_v8  ;;  %v18445_v8 = vld [vmem:[#allocation23_spill] sm:$0xff] }
 0xb0f   :  { %6846 = vmatpush1.bf16.msra.mxu1 %v13274_v39  ;;  %v18446_v39 = vld [vmem:[#allocation47_spill] sm:$0xff] }
 0xb10   :  { %6847 = vmatprep.subr.bf16.mxu1 %v13279_v35  ;;  %6899 = vmatpush1.bf16.msra.mxu0 %v13322_v13  ;;  %v18447_v35 = vld [vmem:[#allocation17_spill] sm:$0xff]  ;;  %v18448_v13 = vld [vmem:[#allocation18_spill] sm:$0xff] }
 0xb11   :  { %6900 = vmatprep.subr.bf16.mxu0 %v13327_v14  ;;  %v18449_v14 = vld [vmem:[#allocation49_spill] sm:$0xff] }
 0xb13   :  { %6848 = vmatpush1.bf16.msra.mxu1 %v13277_v40  ;;  %v18450_v40 = vld [vmem:[#allocation53_spill] sm:$0xff] }
 0xb14   :  { %6849 = vmatprep.subr.bf16.mxu1 %v13282_v19  ;;  %6901 = vmatpush1.bf16.msra.mxu0 %v13325_v54  ;;  %v18451_v19 = vld [vmem:[#allocation24_spill] sm:$0xff]  ;;  %v18452_v54 = vld [vmem:[#allocation25_spill] sm:$0xff] }
 0xb15   :  { %6902 = vmatprep.subr.bf16.mxu0 %v13330_v17  ;;  %v18453_v17 = vld [vmem:[#allocation55_spill] sm:$0xff] }
 0xb17   :  { %6850 = vmatpush1.bf16.msra.mxu1 %v13280_v3  ;;  %v18454_v3 = vld [vmem:[#allocation60_spill] sm:$0xff] }
 0xb18   :  { %6851 = vmatprep.subr.bf16.mxu1 %v13285_v46  ;;  %6903 = vmatpush1.bf16.msra.mxu0 %v13328_v44  ;;  %v18455_v46 = vld [vmem:[#allocation26_spill] sm:$0xff]  ;;  %v18456_v44 = vld [vmem:[#allocation19_spill] sm:$0xff] }
 0xb19   :  { %6904 = vmatprep.subr.bf16.mxu0 %v13333_v41  ;;  %v18457_v41 = vld [vmem:[#allocation27_spill] sm:$0xff] }
 0xb1b   :  { %6852 = vmatpush1.bf16.msra.mxu1 %v13283_v34  ;;  %v18458_v34 = vld [vmem:[#allocation62_spill] sm:$0xff] }
 0xb1c   :  { %6853 = vmatprep.subr.bf16.mxu1 %v13288_v16  ;;  %6905 = vmatpush1.bf16.msra.mxu0 %v13331_v25  ;;  %v18459_v16 = vld [vmem:[#allocation65_spill] sm:$0xff]  ;;  %v18460_v25 = vld [vmem:[#allocation28_spill] sm:$0xff] }
 0xb1d   :  { %6906 = vmatprep.subr.bf16.mxu0 %v13336_v36  ;;  %v18461_v36 = vld [vmem:[#allocation29_spill] sm:$0xff] }
 0xb1f   :  { %6854 = vmatpush1.bf16.msra.mxu1 %v13286_v49  ;;  %v18462_v49 = vld [vmem:[#allocation68_spill] sm:$0xff] }
 0xb20   :  { %6855 = vmatprep.subr.bf16.mxu1 %v13291_v50  ;;  %6907 = vmatpush1.bf16.msra.mxu0 %v13334_v60  ;;  %v18463_v50 = vld [vmem:[#allocation72_spill] sm:$0xff]  ;;  %v18464_v60 = vld [vmem:[#allocation30_spill] sm:$0xff] }
 0xb21   :  { %6908 = vmatprep.subr.bf16.mxu0 %v13339_v27  ;;  %v18465_v27 = vld [vmem:[#allocation31_spill] sm:$0xff] }
 0xb23   :  { %6856 = vmatpush1.bf16.msra.mxu1 %v13289_v20  ;;  %v18466_v20 = vld [vmem:[#allocation74_spill] sm:$0xff] }
 0xb24   :  { %6857 = vmatprep.subr.bf16.mxu1 %v13294_v53  ;;  %6909 = vmatpush1.bf16.msra.mxu0 %v13337_v4  ;;  %v18467_v53 = vld [vmem:[#allocation77_spill] sm:$0xff]  ;;  %v18468_v4 = vld [vmem:[#allocation32_spill] sm:$0xff] }
 0xb25   :  { %6910 = vmatprep.subr.bf16.mxu0 %v13342_v42  ;;  %v18469_v42 = vld [vmem:[#allocation33_spill] sm:$0xff] }
 0xb27   :  { %6858 = vmatpush1.bf16.msra.mxu1 %v13292_v23  ;;  %v18470_v23 = vld [vmem:[#allocation80_spill] sm:$0xff] }
 0xb28   :  { %6911 = vmatpush1.bf16.msra.mxu0 %v13340_v55  ;;  %12577 = vmatprep.subr.bf16.mxu1 %v18445_v8  ;;  %v18471_v55 = vld [vmem:[#allocation81_spill] sm:$0xff] }
 0xb29   :  { %12609 = vmatprep.subr.bf16.mxu0 %v18446_v39  ;;  %v18472_v39 = vld [vmem:[#allocation34_spill] sm:$0xff] }
 0xb2a   :  { %6860 = vmatmul.mubr.bf16.vlgmr.msra.gmra.mrb[40].mxu1 %v18447_v35 }
 0xb2b   :  { %6869 = vmatprep.mubr.bf16.mxu1 %v18448_v13  ;;  %6913 = vmatmul.mubr.bf16.vlgmr.msra.gmra.mrb[28].mxu0 %v18447_v35  ;;  %v18473_v35 = vld [vmem:[#allocation35_spill] sm:$0xff] }
 0xb2c   :  { %6922 = vmatprep.mubr.bf16.mxu0 %v18448_v13  ;;  %12611 = vmatpush3.bf16.msra.mxu0 %v18449_v14  ;;  %v18474_v13 = vld [vmem:[#allocation82_spill] sm:$0xff]  ;;  %v18475_v14 = vld [vmem:[#allocation83_spill] sm:$0xff] }
 0xb2d   :  { %12613 = vmatprep.subr.bf16.mxu0 %v18450_v40  ;;  %12579 = vmatpush3.bf16.msra.mxu1 %v18451_v19  ;;  %v18476_v40 = vld [vmem:[#allocation36_spill] sm:$0xff] }
 0xb2e   :  { %12581 = vmatprep.subr.bf16.mxu1 %v18452_v54 }
 0xb30   :  { %12615 = vmatpush3.bf16.msra.mxu0 %v18453_v17  ;;  %v18477_v17 = vld [vmem:[#allocation37_spill] sm:$0xff] }
 0xb31   :  { %12617 = vmatprep.subr.bf16.mxu0 %v18454_v3  ;;  %12583 = vmatpush3.bf16.msra.mxu1 %v18455_v46  ;;  %v18478_v3 = vld [vmem:[#allocation86_spill] sm:$0xff] }
 0xb32   :  { %6870 = vmatmul.mubr.bf16.gmra.mrb[44].mxu1 %v18456_v44  ;;  %12585 = vmatprep.subr.bf16.mxu1 %v18457_v41 }
 0xb33   :  { %6923 = vmatmul.mubr.bf16.gmra.mrb[32].mxu0 %v18456_v44  ;;  %v18479_v44 = vld [vmem:[#allocation40_spill] sm:$0xff] }
 0xb34   :  { %12619 = vmatpush3.bf16.msra.mxu0 %v18458_v34  ;;  %v18480_v34 = vld [vmem:[#allocation84_spill] sm:$0xff] }
 0xb35   :  { %12621 = vmatprep.subr.bf16.mxu0 %v18459_v16  ;;  %12587 = vmatpush3.bf16.msra.mxu1 %v18460_v25 }
 0xb36   :  { %12589 = vmatprep.subr.bf16.mxu1 %v18461_v36 }
 0xb38   :  { %12623 = vmatpush3.bf16.msra.mxu0 %v18462_v49 }
 0xb39   :  { %12625 = vmatprep.subr.bf16.mxu0 %v18463_v50  ;;  %12591 = vmatpush3.bf16.msra.mxu1 %v18464_v60 }
 0xb3a   :  { %12593 = vmatprep.subr.bf16.mxu1 %v18465_v27 }
 0xb3c   :  { %12627 = vmatpush3.bf16.msra.mxu0 %v18466_v20  ;;  %v18481_v20 = vld [vmem:[#allocation22_spill] sm:$0xff] }
 0xb3d   :  { %12629 = vmatprep.subr.bf16.mxu0 %v18467_v53  ;;  %12595 = vmatpush3.bf16.msra.mxu1 %v18468_v4 }
 0xb3e   :  { %12597 = vmatprep.subr.bf16.mxu1 %v18469_v42 }
 0xb40   :  { %12631 = vmatpush3.bf16.msra.mxu0 %v18470_v23 }
 0xb41   :  { %12633 = vmatprep.subr.bf16.mxu0 %v18471_v55  ;;  %12599 = vmatpush3.bf16.msra.mxu1 %v18472_v39 }
 0xb42   :  { %12601 = vmatprep.subr.bf16.mxu1 %v18473_v35 }
 0xb44   :  { %12635 = vmatpush3.bf16.msra.mxu0 %v18474_v13 }
 0xb45   :  { %12637 = vmatprep.subr.bf16.mxu0 %v18475_v14  ;;  %12603 = vmatpush3.bf16.msra.mxu1 %v18476_v40 }
 0xb46   :  { %12605 = vmatprep.subr.bf16.mxu1 %v18477_v17 }
 0xb48   :  { %12639 = vmatpush3.bf16.msra.mxu0 %v18478_v3 }
 0xb49   :  { %12673 = vmatprep.subr.bf16.mxu0 %v18445_v8  ;;  %12607 = vmatpush3.bf16.msra.mxu1 %v18479_v44 }
 0xb4a   :  { %12641 = vmatprep.subr.bf16.mxu1 %v18480_v34 }
 0xbbd   :  { %v5831_v16 = vpop.f32.mrb[36].mxu1  ;;  %v6374_v49 = vpop.f32.mrb[26].mxu0 }
 0xbbe   :  { %v6382_v50 = vrot.slane %v5831_v16, %v18443_v26  ;;  %v6414_v53 = vrot.slane %v5831_v16, %v18481_v20  ;;  %v6390_v23 = vrot.slane %v6374_v49, %v18443_v26  ;;  %v6422_v55 = vrot.slane %v6374_v49, %v18481_v20  ;;  %v5833_v13 = vpop.f32.mrb[37].mxu1  ;;  %v6376_v14 = vpop.f32.mrb[27].mxu0 }
 0xbbf   :  { %v6386_v3 = vrot.slane %v5833_v13, %v18443_v26  ;;  %v6418_v28 = vrot.slane %v5833_v13, %v18481_v20  ;;  %v6394_v59 = vrot.slane %v6376_v14, %v18443_v26  ;;  %v6426_v34 = vrot.slane %v6376_v14, %v18481_v20 }
 0xbc0   :  { %v6395_v61 = vmul.f32 %v6382_v50, %v18482_v22  ;;  %v6399_v6 = vmul.f32 %v6382_v50, %v18483_v1  ;;  %v6403_v16 = vmul.f32 %v6382_v50, %v18484_v51  ;;  %v6407_v47 = vmul.f32 %v6382_v50, %v18485_v18  ;;  %v18499_v50 = vld [vmem:[#allocation100_spill] sm:$0xff] }
 0xbc1   :  { %v6397_v49 = vmul.f32 %v6390_v23, %v18486_v38  ;;  %v6401_v57 = vmul.f32 %v6390_v23, %v18487_v5  ;;  %v6405_v33 = vmul.f32 %v6390_v23, %v18488_v52  ;;  %v6409_v13 = vmul.f32 %v6390_v23, %v18489_v11  ;;  %v18498_v5 = vld [vmem:[#allocation98_spill] sm:$0xff] }
 0xbc2   :  { %v16966_v31 = vadd.f32 %v6414_v53, %v6395_v61  ;;  %v16968_v58 = vadd.f32 %v6414_v53, %v6399_v6  ;;  %v16970_v14 = vadd.f32 %v6414_v53, %v6403_v16  ;;  %v16972_v22 = vadd.f32 %v6414_v53, %v6407_v47  ;;  %v18500_v61 = vld [vmem:[#allocation103_spill] sm:$0xff]  ;;  %v18501_v6 = vld [vmem:[#allocation105_spill] sm:$0xff]  ;;  %v18502_v16 = vld [vmem:[#allocation120_spill] sm:$0xff] }
 0xbc3   :  { %v16974_v1 = vadd.f32 %v6422_v55, %v6397_v49  ;;  %v16976_v51 = vadd.f32 %v6422_v55, %v6401_v57  ;;  %v16978_v18 = vadd.f32 %v6422_v55, %v6405_v33  ;;  %v16980_v38 = vadd.f32 %v6422_v55, %v6409_v13  ;;  %v18503_v47 = vld [vmem:[#allocation123_spill] sm:$0xff]  ;;  %v18504_v49 = vld [vmem:[#allocation128_spill] sm:$0xff] }
 0xbc4   :  { %18490 = vst [vmem:[#allocation20_spill] sm:$0xff] %v16966_v31  ;;  %18491 = vst [vmem:[#allocation21_spill] sm:$0xff] %v16968_v58  ;;  %v6396_v52 = vmul.f32 %v6386_v3, %v18498_v5  ;;  %v6400_v11 = vmul.f32 %v6386_v3, %v18499_v50  ;;  %v6404_v23 = vmul.f32 %v6386_v3, %v18500_v61  ;;  %v18505_v57 = vld [vmem:[#allocation132_spill] sm:$0xff] }
 0xbc5   :  { %18492 = vst [vmem:[#allocation16_spill] sm:$0xff] %v16970_v14  ;;  %18493 = vst [vmem:[#allocation23_spill] sm:$0xff] %v16972_v22  ;;  %v6408_v58 = vmul.f32 %v6386_v3, %v18501_v6  ;;  %v6398_v14 = vmul.f32 %v6394_v59, %v18502_v16  ;;  %v6402_v53 = vmul.f32 %v6394_v59, %v18503_v47 }
 0xbc6   :  { %18494 = vst [vmem:[#allocation47_spill] sm:$0xff] %v16974_v1  ;;  %18495 = vst [vmem:[#allocation17_spill] sm:$0xff] %v16976_v51  ;;  %v6406_v1 = vmul.f32 %v6394_v59, %v18504_v49  ;;  %v6410_v51 = vmul.f32 %v6394_v59, %v18505_v57  ;;  %v16990_v33 = vadd.f32 %v6418_v28, %v6396_v52 }
 0xbc7   :  { %18496 = vst [vmem:[#allocation18_spill] sm:$0xff] %v16978_v18  ;;  %18497 = vst [vmem:[#allocation49_spill] sm:$0xff] %v16980_v38  ;;  %v16992_v55 = vadd.f32 %v6418_v28, %v6400_v11  ;;  %v16994_v13 = vadd.f32 %v6418_v28, %v6404_v23  ;;  %v16996_v5 = vadd.f32 %v6418_v28, %v6408_v58 }
 0xbc8   :  { %18506 = vst [vmem:[#allocation53_spill] sm:$0xff] %v16990_v33  ;;  %v16998_v50 = vadd.f32 %v6426_v34, %v6398_v14  ;;  %v17000_v61 = vadd.f32 %v6426_v34, %v6402_v53  ;;  %v17002_v3 = vadd.f32 %v6426_v34, %v6406_v1  ;;  %v17004_v6 = vadd.f32 %v6426_v34, %v6410_v51 }
 0xbc9   :  { %18507 = vst [vmem:[#allocation24_spill] sm:$0xff] %v16992_v55  ;;  %18508 = vst [vmem:[#allocation25_spill] sm:$0xff] %v16994_v13 }
 0xbca   :  { %18509 = vst [vmem:[#allocation55_spill] sm:$0xff] %v16996_v5  ;;  %18510 = vst [vmem:[#allocation60_spill] sm:$0xff] %v16998_v50 }
 0xbcb   :  { %18511 = vst [vmem:[#allocation26_spill] sm:$0xff] %v17000_v61  ;;  %18512 = vst [vmem:[#allocation19_spill] sm:$0xff] %v17002_v3 }
 0xbcc   :  { %18513 = vst [vmem:[#allocation27_spill] sm:$0xff] %v17004_v6 }
 0xbfd   :  { %v17006_v16 = vpop.f32.mrb[40].mxu1 }
 0xbfe   :  { %18514 = vst [vmem:[#allocation62_spill] sm:$0xff] %v17006_v16  ;;  %v17008_v47 = vpop.f32.mrb[41].mxu1  ;;  %v17010_v59 = vpop.f32.mrb[28].mxu0  ;;  %v6971_v52 = vmul.f32 %v17006_v16, %v17006_v16 }
 0xbff   :  { %18515 = vst [vmem:[#allocation65_spill] sm:$0xff] %v17008_v47  ;;  %18516 = vst [vmem:[#allocation28_spill] sm:$0xff] %v17010_v59  ;;  %v17014_v11 = vpop.f32.mrb[42].mxu1  ;;  %v6973_v58 = vmul.f32 %v17010_v59, %v17010_v59  ;;  %v17018_v28 = vpop.f32.mrb[29].mxu0  ;;  %v6972_v34 = vmul.f32 %v17008_v47, %v17008_v47 }
 0xc00   :  { %18517 = vst [vmem:[#allocation29_spill] sm:$0xff] %v17014_v11  ;;  %18518 = vst [vmem:[#allocation68_spill] sm:$0xff] %v17018_v28  ;;  %v6935_v14 = vadd.f32 %v17014_v11, %v17006_v16  ;;  %v6975_v1 = vmul.f32 %v17014_v11, %v17014_v11  ;;  %v17026_v51 = vpop.f32.mrb[43].mxu1  ;;  %v6974_v23 = vmul.f32 %v17018_v28, %v17018_v28  ;;  %v17030_v53 = vpop.f32.mrb[30].mxu0 }
 0xc01   :  { %18519 = vst [vmem:[#allocation72_spill] sm:$0xff] %v17026_v51  ;;  %18520 = vst [vmem:[#allocation30_spill] sm:$0xff] %v17030_v53  ;;  %v6944_v49 = vadd.f32 %v17026_v51, %v17008_v47  ;;  %v6976_v57 = vmul.f32 %v17026_v51, %v17026_v51  ;;  %v6953_v6 = vadd.f32 %v17030_v53, %v17010_v59  ;;  %v17040_v61 = vpop.f32.mrb[31].mxu0 }
 0xc02   :  { %v6977_v3 = vmul.f32 %v17030_v53, %v17030_v53  ;;  %18521 = vst [vmem:[#allocation31_spill] sm:$0xff] %v17040_v61  ;;  %v6987_v50 = vadd.f32 %v6975_v1, %v6971_v52  ;;  %v6962_v5 = vadd.f32 %v17040_v61, %v17018_v28  ;;  %v6978_v13 = vmul.f32 %v17040_v61, %v17040_v61 }
 0xc03   :  { %v6996_v55 = vadd.f32 %v6976_v57, %v6972_v34 }
 0xc04   :  { %v7005_v33 = vadd.f32 %v6977_v3, %v6973_v58  ;;  %v7014_v47 = vadd.f32 %v6978_v13, %v6974_v23 }
 0xc05   :  { %v17046_v38 = vpop.f32.mrb[44].mxu1 }
 0xc06   :  { %18522 = vst [vmem:[#allocation74_spill] sm:$0xff] %v17046_v38  ;;  %v6936_v51 = vadd.f32 %v6935_v14, %v17046_v38  ;;  %v6979_v18 = vmul.f32 %v17046_v38, %v17046_v38  ;;  %v17051_v22 = vpop.f32.mrb[45].mxu1  ;;  %v17053_v31 = vpop.f32.mrb[32].mxu0 }
 0xc07   :  { %18523 = vst [vmem:[#allocation77_spill] sm:$0xff] %v17051_v22  ;;  %18524 = vst [vmem:[#allocation32_spill] sm:$0xff] %v17053_v31  ;;  %v6945_v52 = vadd.f32 %v6944_v49, %v17051_v22  ;;  %v6980_v1 = vmul.f32 %v17051_v22, %v17051_v22  ;;  %v17058_v61 = vpop.f32.mrb[46].mxu1  ;;  %v6954_v13 = vadd.f32 %v6953_v6, %v17053_v31  ;;  %v17063_v58 = vpop.f32.mrb[33].mxu0 }
 0xc08   :  { %18525 = vst [vmem:[#allocation33_spill] sm:$0xff] %v17058_v61  ;;  %v6981_v3 = vmul.f32 %v17053_v31, %v17053_v31  ;;  %18526 = vst [vmem:[#allocation80_spill] sm:$0xff] %v17063_v58  ;;  %v6988_v34 = vadd.f32 %v6987_v50, %v6979_v18  ;;  %v6937_v14 = vadd.f32 %v6936_v51, %v17058_v61  ;;  %v17068_v57 = vpop.f32.mrb[47].mxu1  ;;  %v17071_v28 = vpop.f32.mrb[34].mxu0 }
 0xc09   :  { %v6983_v23 = vmul.f32 %v17058_v61, %v17058_v61  ;;  %18527 = vst [vmem:[#allocation81_spill] sm:$0xff] %v17068_v57  ;;  %v6963_v49 = vadd.f32 %v6962_v5, %v17063_v58  ;;  %18528 = vst [vmem:[#allocation34_spill] sm:$0xff] %v17071_v28  ;;  %v6997_v22 = vadd.f32 %v6996_v55, %v6980_v1  ;;  %v17076_v59 = vpop.f32.mrb[35].mxu0 }
 0xc0a   :  { %v6946_v6 = vadd.f32 %v6945_v52, %v17068_v57  ;;  %v6984_v31 = vmul.f32 %v17068_v57, %v17068_v57  ;;  %v7006_v53 = vadd.f32 %v7005_v33, %v6981_v3  ;;  %18529 = vst [vmem:[#allocation35_spill] sm:$0xff] %v17076_v59  ;;  %v6938_v18 = vrot.slane %v6937_v14, 4 }
 0xc0b   :  { %v6989_v50 = vadd.f32 %v6988_v34, %v6983_v23  ;;  %v6982_v51 = vmul.f32 %v17063_v58, %v17063_v58  ;;  %v6955_v61 = vadd.f32 %v6954_v13, %v17071_v28  ;;  %v6985_v55 = vmul.f32 %v17071_v28, %v17071_v28 }
 0xc0c   :  { %v6947_v38 = vrot.slane %v6946_v6, 4  ;;  %v6998_v5 = vadd.f32 %v6997_v22, %v6984_v31  ;;  %v6964_v52 = vadd.f32 %v6963_v49, %v17076_v59  ;;  %v6939_v1 = vadd.f32 %v6938_v18, %v6937_v14 }
 0xc0d   :  { %v6990_v11 = vrot.slane %v6989_v50, 4  ;;  %v7015_v57 = vadd.f32 %v7014_v47, %v6982_v51  ;;  %v6956_v33 = vrot.slane %v6955_v61, 4  ;;  %v7007_v20 = vadd.f32 %v7006_v53, %v6985_v55 }
 0xc0e   :  { %v6948_v3 = vadd.f32 %v6947_v38, %v6946_v6  ;;  %v6999_v16 = vrot.slane %v6998_v5, 4  ;;  %v6965_v34 = vrot.slane %v6964_v52, 4  ;;  %v6940_v23 = vrot.slane %v6939_v1, 2 }
 0xc0f   :  { %v6991_v62 = vadd.f32 %v6990_v11, %v6989_v50  ;;  %v6957_v58 = vadd.f32 %v6956_v33, %v6955_v61  ;;  %v6986_v13 = vmul.f32 %v17076_v59, %v17076_v59  ;;  %v7008_v10 = vrot.slane %v7007_v20, 4 }
 0xc10   :  { %v6949_v31 = vrot.slane %v6948_v3, 2  ;;  %v7000_v22 = vadd.f32 %v6999_v16, %v6998_v5  ;;  %v6966_v28 = vadd.f32 %v6965_v34, %v6964_v52  ;;  %v6941_v43 = vadd.f32 %v6940_v23, %v6939_v1 }
 0xc11   :  { %v6992_v49 = vrot.slane %v6991_v62, 2  ;;  %v6958_v14 = vrot.slane %v6957_v58, 2  ;;  %v7016_v18 = vadd.f32 %v7015_v57, %v6986_v13  ;;  %v7009_v38 = vadd.f32 %v7008_v10, %v7007_v20 }
 0xc12   :  { %v6950_v47 = vadd.f32 %v6949_v31, %v6948_v3  ;;  %v7001_v51 = vrot.slane %v7000_v22, 2  ;;  %v6967_v6 = vrot.slane %v6966_v28, 2  ;;  %v6942_v53 = vrot.slane %v6941_v43, 1 }
 0xc13   :  { %v6993_v55 = vadd.f32 %v6992_v49, %v6991_v62  ;;  %v6959_v24 = vadd.f32 %v6958_v14, %v6957_v58  ;;  %v7017_v11 = vrot.slane %v7016_v18, 4  ;;  %v7010_v33 = vrot.slane %v7009_v38, 2 }
 0xc14   :  { %v6951_v61 = vrot.slane %v6950_v47, 1  ;;  %v7002_v50 = vadd.f32 %v7001_v51, %v7000_v22  ;;  %v6968_v59 = vadd.f32 %v6967_v6, %v6966_v28  ;;  %v6943_v34 = vadd.f32 %v6942_v53, %v6941_v43 }
 0xc15   :  { %v6994_v32 = vrot.slane %v6993_v55, 1  ;;  %v6960_v16 = vrot.slane %v6959_v24, 1  ;;  %v7018_v5 = vadd.f32 %v7017_v11, %v7016_v18  ;;  %v7011_v1 = vadd.f32 %v7010_v33, %v7009_v38  ;;  %v18531_v33 = vld [vmem:[#allocation87_spill] sm:$0xff] }
 0xc16   :  { %v7003_v52 = vrot.slane %v7002_v50, 1  ;;  %v6969_v57 = vrot.slane %v6968_v59, 1  ;;  %v6952_v13 = vadd.f32 %v6951_v61, %v6950_v47 }
 0xc17   :  { %v6995_v23 = vadd.f32 %v6994_v32, %v6993_v55  ;;  %v7019_v3 = vrot.slane %v7018_v5, 2  ;;  %v6961_v20 = vadd.f32 %v6960_v16, %v6959_v24  ;;  %v7012_v31 = vrot.slane %v7011_v1, 1  ;;  %v18532_v16 = vld [vmem:[#allocation88_spill] sm:$0xff] }
 0xc18   :  { %v7004_v10 = vadd.f32 %v7003_v52, %v7002_v50  ;;  %v6970_v18 = vadd.f32 %v6969_v57, %v6968_v59  ;;  %v18530_v50 = vld [vmem:[#allocation85_spill] sm:$0xff]  ;;  %v18538_v52 = vld [vmem:[#allocation94_spill] sm:$0xff] }
 0xc19   :  { %v7023_v62 = vsel %vm349_vm1, %v6943_v34, %v6995_v23  ;;  %v7020_v58 = vadd.f32 %v7019_v3, %v7018_v5  ;;  %v7013_v28 = vadd.f32 %v7012_v31, %v7011_v1  ;;  %v18533_v5 = vld [vmem:[#allocation89_spill] sm:$0xff]  ;;  %v18539_v1 = vld [vmem:[#allocation95_spill] sm:$0xff]  ;;  %v18540_v34 = vld [vmem:[#allocation96_spill] sm:$0xff] }
 0xc1a   :  { %v7024_v22 = vsel %vm349_vm1, %v6952_v13, %v7004_v10  ;;  %v17088_v49 = vand.u32 4294901760, %v7023_v62  ;;  %v18541_v23 = vld [vmem:[#allocation111_spill] sm:$0xff]  ;;  %v18544_v57 = vld [vmem:[#allocation113_spill] sm:$0xff]  ;;  %v18552_v3 = vld [vmem:[#allocation56_spill] sm:$0xff] }
 0xc1b   :  { %v7123_v14 = vand.u32 4294901760, %v7024_v22  ;;  %v7021_v51 = vrot.slane %v7020_v58, 1  ;;  %v17092_v32 = vsel %vm349_vm1, %v6961_v20, %v7013_v28  ;;  %v18553_v13 = vld [vmem:[#allocation58_spill] sm:$0xff]  ;;  %v18555_v10 = vld [vmem:[#allocation61_spill] sm:$0xff]  ;;  %v18556_v20 = vld [vmem:[#allocation144_spill] sm:$0xff] }
 0xc1c   :  { %v7130_v43 = vsub.f32 %v7023_v62, %v17088_v49  ;;  %v18557_v31 = vld [vmem:[#allocation64_spill] sm:$0xff]  ;;  %v18559_v62 = vld [vmem:[#allocation101_spill] sm:$0xff] }
 0xc1d   :  { %7364 = vmatprep.mubr.f32.mxu0 %v7123_v14  ;;  %v7124_v47 = vsub.f32 %v7024_v22, %v7123_v14  ;;  %v7022_v24 = vadd.f32 %v7021_v51, %v7020_v58  ;;  %v18560_v58 = vld [vmem:[#allocation147_spill] sm:$0xff]  ;;  %v18562_v28 = vld [vmem:[#allocation148_spill] sm:$0xff]  ;;  %v18565_v51 = vld [vmem:[#allocation109_spill] sm:$0xff] }
 0xc1e   :  { %7366 = vmatmul.mubr.f32.vlgmr.msra.gmra.mrb[36].mxu0 %v17088_v49  ;;  %v7131_v38 = vand.u32 4294901760, %v7130_v43  ;;  %v18561_v22 = vld [vmem:[#allocation167_spill] sm:$0xff] }
 0xc1f   :  { %12675 = vmatpush3.bf16.msra.mxu0 %v18451_v19  ;;  %v7125_v6 = vand.u32 4294901760, %v7124_v47  ;;  %v17097_v53 = vsel %vm349_vm1, %v6970_v18, %v7022_v24  ;;  %v18564_v18 = vld [vmem:[#allocation155_spill] sm:$0xff]  ;;  %v18568_v24 = vld [vmem:[#allocation158_spill] sm:$0xff] }
 0xc20   :  { %12677 = vmatprep.subr.bf16.mxu0 %v18452_v54  ;;  %v7132_v59 = vsub.f32 %v7130_v43, %v7131_v38 }
 0xc21   :  { %7608 = vmatprep.mubr.f32.mxu0 %v7125_v6  ;;  %v7126_v55 = vsub.f32 %v7124_v47, %v7125_v6  ;;  %v18570_v6 = vld [vmem:[#allocation159_spill] sm:$0xff] }
 0xc22   :  { %v7133_v61 = vand.u32 4294901760, %v7132_v59  ;;  %v18573_v59 = vld [vmem:[#allocation117_spill] sm:$0xff] }
 0xc23   :  { %12679 = vmatpush3.bf16.msra.mxu0 %v18455_v46  ;;  %v7127_v11 = vand.u32 4294901760, %v7126_v55  ;;  %v18574_v55 = vld [vmem:[#allocation161_spill] sm:$0xff] }
 0xc24   :  { %12681 = vmatprep.subr.bf16.mxu0 %v18457_v41 }
 0xc25   :  { %7128 = vmatprep.mubr.f32.mxu1 %v7127_v11  ;;  %v18575_v11 = vld [vmem:[#allocation45_spill] sm:$0xff] }
 0xc26   :  { %7134 = vmatmul.mubr.f32.vlgmr.msra.gmra.mrb[38].mxu1 %v7133_v61  ;;  %v18576_v61 = vld [vmem:[#allocation162_spill] sm:$0xff] }
 0xc27   :  { %12643 = vmatpush3.bf16.msra.mxu1 %v18530_v50  ;;  %12683 = vmatpush3.bf16.msra.mxu0 %v18460_v25  ;;  %v18577_v50 = vld [vmem:[#allocation127_spill] sm:$0xff] }
 0xc28   :  { %7501 = vmatprep.mubr.f32.mxu1 %v7124_v47  ;;  %12645 = vmatprep.subr.bf16.mxu1 %v18531_v33  ;;  %v18567_v47 = vld [vmem:[#allocation39_spill] sm:$0xff]  ;;  %v17194_v33 = vand.u32 4294901760, %v17092_v32 }
 0xc29   :  { %12685 = vmatprep.subr.bf16.mxu0 %v18461_v36 }
 0xc2b   :  { %12647 = vmatpush3.bf16.msra.mxu1 %v15208_v9  ;;  %12687 = vmatpush3.bf16.msra.mxu0 %v18464_v60  ;;  %v18534_v9 = vld [vmem:[#allocation90_spill] sm:$0xff] }
 0xc2c   :  { %12649 = vmatprep.subr.bf16.mxu1 %v15212_v15  ;;  %12689 = vmatprep.subr.bf16.mxu0 %v18465_v27  ;;  %v18535_v15 = vld [vmem:[#allocation91_spill] sm:$0xff] }
 0xc2f   :  { %12651 = vmatpush3.bf16.msra.mxu1 %v15216_v12  ;;  %12691 = vmatpush3.bf16.msra.mxu0 %v18468_v4  ;;  %v18536_v12 = vld [vmem:[#allocation92_spill] sm:$0xff] }
 0xc30   :  { %12653 = vmatprep.subr.bf16.mxu1 %v15220_v7  ;;  %12693 = vmatprep.subr.bf16.mxu0 %v18469_v42  ;;  %v18537_v7 = vld [vmem:[#allocation93_spill] sm:$0xff] }
 0xc33   :  { %12655 = vmatpush3.bf16.msra.mxu1 %v18532_v16  ;;  %12695 = vmatpush3.bf16.msra.mxu0 %v18472_v39  ;;  %v18578_v16 = vld [vmem:[#allocation163_spill] sm:$0xff] }
 0xc34   :  { %12657 = vmatprep.subr.bf16.mxu1 %v18533_v5  ;;  %12697 = vmatprep.subr.bf16.mxu0 %v18473_v35  ;;  %v18579_v5 = vld [vmem:[#allocation48_spill] sm:$0xff] }
 0xc37   :  { %12659 = vmatpush3.bf16.msra.mxu1 %v18534_v9  ;;  %12699 = vmatpush3.bf16.msra.mxu0 %v18476_v40  ;;  %v18580_v9 = vld [vmem:[#allocation164_spill] sm:$0xff] }
 0xc38   :  { %12661 = vmatprep.subr.bf16.mxu1 %v18535_v15  ;;  %12701 = vmatprep.subr.bf16.mxu0 %v18477_v17  ;;  %v18581_v15 = vld [vmem:[#allocation133_spill] sm:$0xff] }
 0xc3b   :  { %12663 = vmatpush3.bf16.msra.mxu1 %v18536_v12  ;;  %12703 = vmatpush3.bf16.msra.mxu0 %v18479_v44  ;;  %v7992_v12 = vsub.f32 %v17092_v32, %v17194_v33  ;;  %v18587_v32 = vld [vmem:[#allocation59_spill] sm:$0xff] }
 0xc3c   :  { %12665 = vmatprep.subr.bf16.mxu1 %v18537_v7  ;;  %12737 = vmatprep.subr.bf16.mxu0 %v18445_v8  ;;  %v18542_v8 = vld [vmem:[#allocation38_spill] sm:$0xff]  ;;  %v18582_v7 = vld [vmem:[#allocation165_spill] sm:$0xff] }
 0xc3e   :  { %7612 = vmatmul.mubr.f32.vlgmr.msra.gmra.mrb[38].mxu0 %v7131_v38  ;;  %v18569_v38 = vld [vmem:[#allocation42_spill] sm:$0xff] }
 0xc3f   :  { %12667 = vmatpush3.bf16.msra.mxu1 %v18538_v52  ;;  %12739 = vmatpush3.bf16.msra.mxu0 %v18451_v19  ;;  %v18543_v19 = vld [vmem:[#allocation41_spill] sm:$0xff]  ;;  %v18583_v52 = vld [vmem:[#allocation51_spill] sm:$0xff] }
 0xc40   :  { %7882 = vmatprep.mubr.f32.mxu0 %v7123_v14  ;;  %12669 = vmatprep.subr.bf16.mxu1 %v18539_v1  ;;  %v18584_v1 = vld [vmem:[#allocation166_spill] sm:$0xff] }
 0xc41   :  { %12741 = vmatprep.subr.bf16.mxu0 %v18452_v54  ;;  %v18545_v54 = vld [vmem:[#allocation44_spill] sm:$0xff] }
 0xc43   :  { %12671 = vmatpush3.bf16.msra.mxu1 %v18540_v34  ;;  %12743 = vmatpush3.bf16.msra.mxu0 %v18455_v46  ;;  %v18546_v46 = vld [vmem:[#allocation115_spill] sm:$0xff]  ;;  %v18585_v34 = vld [vmem:[#allocation54_spill] sm:$0xff] }
 0xc44   :  { %12705 = vmatprep.subr.bf16.mxu1 %v18541_v23  ;;  %12745 = vmatprep.subr.bf16.mxu0 %v18457_v41  ;;  %v18547_v41 = vld [vmem:[#allocation46_spill] sm:$0xff]  ;;  %v7993_v23 = vand.u32 4294901760, %v7992_v12 }
 0xc46   :  { %7504 = vmatmul.mubr.f32.vlgmr.msra.gmra.mrb[48].mxu1 %v7130_v43  ;;  %v18566_v43 = vld [vmem:[#allocation156_spill] sm:$0xff] }
 0xc47   :  { %12707 = vmatpush3.bf16.msra.mxu1 %v18542_v8  ;;  %7778 = vmatprep.mubr.f32.mxu1 %v7123_v14  ;;  %v18563_v14 = vld [vmem:[#allocation106_spill] sm:$0xff]  ;;  %v18586_v8 = vld [vmem:[#allocation57_spill] sm:$0xff] }
 0xc48   :  { %12747 = vmatpush3.bf16.msra.mxu0 %v18460_v25  ;;  %12709 = vmatprep.subr.bf16.mxu1 %v18543_v19  ;;  %v18548_v25 = vld [vmem:[#allocation130_spill] sm:$0xff]  ;;  %v7994_v19 = vsub.f32 %v7992_v12, %v7993_v23 }
 0xc49   :  { %12749 = vmatprep.subr.bf16.mxu0 %v18461_v36  ;;  %v17148_v36 = vand.u32 4294901760, %v17097_v53 }
 0xc4b   :  { %12711 = vmatpush3.bf16.msra.mxu1 %v18544_v57  ;;  %v18588_v57 = vld [vmem:[#allocation63_spill] sm:$0xff] }
 0xc4c   :  { %12751 = vmatpush3.bf16.msra.mxu0 %v18464_v60  ;;  %12713 = vmatprep.subr.bf16.mxu1 %v18545_v54  ;;  %v18549_v60 = vld [vmem:[#allocation50_spill] sm:$0xff]  ;;  %v7995_v54 = vand.u32 4294901760, %v7994_v19 }
 0xc4d   :  { %12753 = vmatprep.subr.bf16.mxu0 %v18465_v27  ;;  %v18550_v27 = vld [vmem:[#allocation134_spill] sm:$0xff] }
 0xc4f   :  { %12715 = vmatpush3.bf16.msra.mxu1 %v18546_v46  ;;  %v18589_v46 = vld [vmem:[#allocation146_spill] sm:$0xff] }
 0xc50   :  { %12755 = vmatpush3.bf16.msra.mxu0 %v18468_v4  ;;  %12717 = vmatprep.subr.bf16.mxu1 %v18547_v41  ;;  %v17156_v4 = vsub.f32 %v17097_v53, %v17148_v36  ;;  %v18571_v53 = vld [vmem:[#allocation43_spill] sm:$0xff]  ;;  %v18590_v41 = vld [vmem:[#allocation66_spill] sm:$0xff] }
 0xc51   :  { %12757 = vmatprep.subr.bf16.mxu0 %v18469_v42  ;;  %v18551_v42 = vld [vmem:[#allocation52_spill] sm:$0xff] }
 0xc53   :  { %12719 = vmatpush3.bf16.msra.mxu1 %v18548_v25  ;;  %v18591_v25 = vld [vmem:[#allocation67_spill] sm:$0xff] }
 0xc54   :  { %12759 = vmatpush3.bf16.msra.mxu0 %v18472_v39  ;;  %12721 = vmatprep.subr.bf16.mxu1 %v18549_v60  ;;  %v7987_v39 = vand.u32 4294901760, %v17156_v4  ;;  %v18592_v60 = vld [vmem:[#allocation151_spill] sm:$0xff] }
 0xc55   :  { %12761 = vmatprep.subr.bf16.mxu0 %v18473_v35  ;;  %v18554_v35 = vld [vmem:[#allocation124_spill] sm:$0xff] }
 0xc57   :  { %12723 = vmatpush3.bf16.msra.mxu1 %v18550_v27  ;;  %v18593_v27 = vld [vmem:[#allocation152_spill] sm:$0xff] }
 0xc58   :  { %12763 = vmatpush3.bf16.msra.mxu0 %v18476_v40  ;;  %12725 = vmatprep.subr.bf16.mxu1 %v18551_v42  ;;  %v7988_v40 = vsub.f32 %v17156_v4, %v7987_v39  ;;  %v18594_v42 = vld [vmem:[#allocation69_spill] sm:$0xff] }
 0xc59   :  { %12765 = vmatprep.subr.bf16.mxu0 %v18477_v17  ;;  %v18558_v17 = vld [vmem:[#allocation145_spill] sm:$0xff] }
 0xc5b   :  { %12727 = vmatpush3.bf16.msra.mxu1 %v18552_v3  ;;  %v18595_v3 = vld [vmem:[#allocation70_spill] sm:$0xff] }
 0xc5c   :  { %12767 = vmatpush3.bf16.msra.mxu0 %v18479_v44  ;;  %12729 = vmatprep.subr.bf16.mxu1 %v18553_v13  ;;  %v7989_v44 = vand.u32 4294901760, %v7988_v40  ;;  %v18598_v13 = vld [vmem:[#allocation157_spill] sm:$0xff]  ;;  %v18601_v40 = vld [vmem:[#allocation78_spill] sm:$0xff] }
 0xc5d   :  { %12801 = vmatprep.subr.bf16.mxu0 %v18554_v35  ;;  %v18599_v35 = vld [vmem:[#allocation75_spill] sm:$0xff] }
 0xc5f   :  { %7884 = vmatmul.mubr.f32.vlgmr.msra.gmra.mrb[40].mxu0 %v17088_v49  ;;  %12731 = vmatpush3.bf16.msra.mxu1 %v18555_v10  ;;  %v18600_v10 = vld [vmem:[#allocation76_spill] sm:$0xff] }
 0xc60   :  { %12803 = vmatpush3.bf16.msra.mxu0 %v18556_v20  ;;  %12733 = vmatprep.subr.bf16.mxu1 %v18557_v31  ;;  %v18602_v20 = vld [vmem:[#allocation79_spill] sm:$0xff]  ;;  %v18603_v31 = vld [vmem:[#allocation114_spill] sm:$0xff] }
 0xc61   :  { %12805 = vmatprep.subr.bf16.mxu0 %v18558_v17  ;;  %8226 = vmatprep.mubr.f32.mxu0 %v17148_v36  ;;  %v18604_v17 = vld [vmem:[#allocation107_spill] sm:$0xff] }
 0xc63   :  { %12735 = vmatpush3.bf16.msra.mxu1 %v18559_v62  ;;  %v18605_v62 = vld [vmem:[#allocation108_spill] sm:$0xff] }
 0xc64   :  { %12807 = vmatpush3.bf16.msra.mxu0 %v18560_v58  ;;  %12769 = vmatprep.subr.bf16.mxu1 %v18561_v22  ;;  %v18607_v58 = vld [vmem:[#allocation112_spill] sm:$0xff] }
 0xc65   :  { %12809 = vmatprep.subr.bf16.mxu0 %v18562_v28  ;;  %v18609_v28 = vld [vmem:[#allocation119_spill] sm:$0xff] }
 0xc66   :  { %7780 = vmatmul.mubr.f32.vlgmr.msra.gmra.mrb[50].mxu1 %v17088_v49  ;;  %v18572_v49 = vld [vmem:[#allocation160_spill] sm:$0xff] }
 0xc67   :  { %12771 = vmatpush3.bf16.msra.mxu1 %v18563_v14  ;;  %7990 = vmatprep.mubr.f32.mxu1 %v7989_v44  ;;  %v18606_v44 = vld [vmem:[#allocation110_spill] sm:$0xff] }
 0xc68   :  { %12811 = vmatpush3.bf16.msra.mxu0 %v18564_v18  ;;  %12773 = vmatprep.subr.bf16.mxu1 %v18565_v51  ;;  %v18611_v18 = vld [vmem:[#allocation126_spill] sm:$0xff] }
 0xc69   :  { %12813 = vmatprep.subr.bf16.mxu0 %v18566_v43  ;;  %v18614_v43 = vld [vmem:[#allocation136_spill] sm:$0xff] }
 0xc6b   :  { %12775 = vmatpush3.bf16.msra.mxu1 %v18567_v47 }
 0xc6c   :  { %12815 = vmatpush3.bf16.msra.mxu0 %v18568_v24  ;;  %12777 = vmatprep.subr.bf16.mxu1 %v18569_v38  ;;  %v18616_v24 = vld [vmem:[#allocation138_spill] sm:$0xff] }
 0xc6d   :  { %12817 = vmatprep.subr.bf16.mxu0 %v18570_v6  ;;  %v18618_v6 = vld [vmem:[#allocation140_spill] sm:$0xff] }
 0xc6f   :  { %12779 = vmatpush3.bf16.msra.mxu1 %v18571_v53 }
 0xc70   :  { %12819 = vmatpush3.bf16.msra.mxu0 %v18572_v49  ;;  %12781 = vmatprep.subr.bf16.mxu1 %v18573_v59  ;;  %v18620_v49 = vld [vmem:[#allocation142_spill] sm:$0xff] }
 0xc71   :  { %12821 = vmatprep.subr.bf16.mxu0 %v18574_v55  ;;  %v18622_v55 = vld [vmem:[#allocation143_spill] sm:$0xff] }
 0xc73   :  { %12783 = vmatpush3.bf16.msra.mxu1 %v18575_v11 }
 0xc74   :  { %12823 = vmatpush3.bf16.msra.mxu0 %v18576_v61  ;;  %12785 = vmatprep.subr.bf16.mxu1 %v18577_v50 }
 0xc75   :  { %12825 = vmatprep.subr.bf16.mxu0 %v18578_v16 }
 0xc77   :  { %12787 = vmatpush3.bf16.msra.mxu1 %v18579_v5 }
 0xc78   :  { %12827 = vmatpush3.bf16.msra.mxu0 %v18580_v9  ;;  %12789 = vmatprep.subr.bf16.mxu1 %v18581_v15 }
 0xc79   :  { %12829 = vmatprep.subr.bf16.mxu0 %v18582_v7 }
 0xc7b   :  { %12791 = vmatpush3.bf16.msra.mxu1 %v18583_v52 }
 0xc7c   :  { %12831 = vmatpush3.bf16.msra.mxu0 %v18584_v1  ;;  %12793 = vmatprep.subr.bf16.mxu1 %v18585_v34 }
 0xc7d   :  { %12865 = vmatprep.subr.bf16.mxu0 %v18561_v22 }
 0xc7f   :  { %8228 = vmatmul.mubr.f32.vlgmr.msra.gmra.mrb[42].mxu0 %v17194_v33  ;;  %12795 = vmatpush3.bf16.msra.mxu1 %v18586_v8 }
 0xc80   :  { %12867 = vmatpush3.bf16.msra.mxu0 %v18563_v14  ;;  %8470 = vmatprep.mubr.f32.mxu0 %v7987_v39  ;;  %v18597_v39 = vld [vmem:[#allocation73_spill] sm:$0xff] }
 0xc81   :  { %12797 = vmatprep.subr.bf16.mxu1 %v18587_v32  ;;  %12869 = vmatprep.subr.bf16.mxu0 %v18565_v51 }
 0xc83   :  { %12799 = vmatpush3.bf16.msra.mxu1 %v18588_v57 }
 0xc84   :  { %12871 = vmatpush3.bf16.msra.mxu0 %v18567_v47  ;;  %12833 = vmatprep.subr.bf16.mxu1 %v18589_v46 }
 0xc85   :  { %12873 = vmatprep.subr.bf16.mxu0 %v18569_v38 }
 0xc86   :  { %7996 = vmatmul.mubr.f32.vlgmr.msra.gmra.mrb[52].mxu1 %v7995_v54 }
 0xc87   :  { %12835 = vmatpush3.bf16.msra.mxu1 %v18590_v41  ;;  %8363 = vmatprep.mubr.f32.mxu1 %v17156_v4  ;;  %v18596_v4 = vld [vmem:[#allocation71_spill] sm:$0xff] }
 0xc88   :  { %12875 = vmatpush3.bf16.msra.mxu0 %v18571_v53  ;;  %12837 = vmatprep.subr.bf16.mxu1 %v18591_v25 }
 0xc89   :  { %12877 = vmatprep.subr.bf16.mxu0 %v18573_v59 }
 0xc8b   :  { %12839 = vmatpush3.bf16.msra.mxu1 %v18592_v60 }
 0xc8c   :  { %12879 = vmatpush3.bf16.msra.mxu0 %v18575_v11  ;;  %12841 = vmatprep.subr.bf16.mxu1 %v18593_v27 }
 0xc8d   :  { %12881 = vmatprep.subr.bf16.mxu0 %v18577_v50 }
 0xc8f   :  { %12843 = vmatpush3.bf16.msra.mxu1 %v18594_v42 }
 0xc90   :  { %12883 = vmatpush3.bf16.msra.mxu0 %v18579_v5  ;;  %12845 = vmatprep.subr.bf16.mxu1 %v18595_v3 }
 0xc91   :  { %12885 = vmatprep.subr.bf16.mxu0 %v18581_v15 }
 0xc93   :  { %12847 = vmatpush3.bf16.msra.mxu1 %v18596_v4 }
 0xc94   :  { %12887 = vmatpush3.bf16.msra.mxu0 %v18583_v52  ;;  %12849 = vmatprep.subr.bf16.mxu1 %v18597_v39 }
 0xc95   :  { %12889 = vmatprep.subr.bf16.mxu0 %v18585_v34 }
 0xc97   :  { %12851 = vmatpush3.bf16.msra.mxu1 %v18598_v13 }
 0xc98   :  { %12891 = vmatpush3.bf16.msra.mxu0 %v18586_v8  ;;  %12853 = vmatprep.subr.bf16.mxu1 %v18599_v35 }
 0xc99   :  { %12893 = vmatprep.subr.bf16.mxu0 %v18587_v32 }
 0xc9b   :  { %12855 = vmatpush3.bf16.msra.mxu1 %v18600_v10 }
 0xc9c   :  { %12895 = vmatpush3.bf16.msra.mxu0 %v18588_v57  ;;  %12857 = vmatprep.subr.bf16.mxu1 %v18601_v40 }
 0xc9d   :  { %12929 = vmatprep.subr.bf16.mxu0 %v18561_v22  ;;  %v18608_v22 = vld [vmem:[#allocation116_spill] sm:$0xff] }
 0xc9f   :  { %8474 = vmatmul.mubr.f32.vlgmr.msra.gmra.mrb[44].mxu0 %v7993_v23  ;;  %12859 = vmatpush3.bf16.msra.mxu1 %v18602_v20 }
 0xca0   :  { %12931 = vmatpush3.bf16.msra.mxu0 %v18563_v14  ;;  %8744 = vmatprep.mubr.f32.mxu0 %v17148_v36  ;;  %v18610_v14 = vld [vmem:[#allocation122_spill] sm:$0xff] }
 0xca1   :  { %12861 = vmatprep.subr.bf16.mxu1 %v18603_v31  ;;  %12933 = vmatprep.subr.bf16.mxu0 %v18565_v51  ;;  %v18613_v51 = vld [vmem:[#allocation135_spill] sm:$0xff] }
 0xca3   :  { %12863 = vmatpush3.bf16.msra.mxu1 %v18604_v17 }
 0xca4   :  { %12935 = vmatpush3.bf16.msra.mxu0 %v18567_v47  ;;  %12897 = vmatprep.subr.bf16.mxu1 %v18605_v62  ;;  %v18615_v47 = vld [vmem:[#allocation137_spill] sm:$0xff] }
 0xca5   :  { %12937 = vmatprep.subr.bf16.mxu0 %v18569_v38  ;;  %v18617_v38 = vld [vmem:[#allocation139_spill] sm:$0xff] }
 0xca6   :  { %8366 = vmatmul.mubr.f32.vlgmr.msra.gmra.mrb[54].mxu1 %v7992_v12 }
 0xca7   :  { %12899 = vmatpush3.bf16.msra.mxu1 %v18606_v44  ;;  %8640 = vmatprep.mubr.f32.mxu1 %v17148_v36  ;;  %v18612_v36 = vld [vmem:[#allocation129_spill] sm:$0xff] }
 0xca8   :  { %12939 = vmatpush3.bf16.msra.mxu0 %v18571_v53  ;;  %12901 = vmatprep.subr.bf16.mxu1 %v18607_v58  ;;  %v18619_v53 = vld [vmem:[#allocation141_spill] sm:$0xff] }
 0xca9   :  { %12941 = vmatprep.subr.bf16.mxu0 %v18573_v59  ;;  %v18621_v59 = vld [vmem:[#allocation150_spill] sm:$0xff] }
 0xcab   :  { %12903 = vmatpush3.bf16.msra.mxu1 %v18608_v22 }
 0xcac   :  { %12943 = vmatpush3.bf16.msra.mxu0 %v18575_v11  ;;  %12905 = vmatprep.subr.bf16.mxu1 %v18609_v28 }
 0xcad   :  { %12945 = vmatprep.subr.bf16.mxu0 %v18577_v50 }
 0xcaf   :  { %12907 = vmatpush3.bf16.msra.mxu1 %v18610_v14 }
 0xcb0   :  { %12947 = vmatpush3.bf16.msra.mxu0 %v18579_v5  ;;  %12909 = vmatprep.subr.bf16.mxu1 %v18611_v18 }
 0xcb1   :  { %12949 = vmatprep.subr.bf16.mxu0 %v18581_v15 }
 0xcb3   :  { %12911 = vmatpush3.bf16.msra.mxu1 %v18612_v36 }
 0xcb4   :  { %12951 = vmatpush3.bf16.msra.mxu0 %v18583_v52  ;;  %12913 = vmatprep.subr.bf16.mxu1 %v18613_v51 }
 0xcb5   :  { %12953 = vmatprep.subr.bf16.mxu0 %v18585_v34 }
 0xcb7   :  { %12915 = vmatpush3.bf16.msra.mxu1 %v18614_v43 }
 0xcb8   :  { %12955 = vmatpush3.bf16.msra.mxu0 %v18586_v8  ;;  %12917 = vmatprep.subr.bf16.mxu1 %v18615_v47 }
 0xcb9   :  { %12957 = vmatprep.subr.bf16.mxu0 %v18587_v32 }
 0xcbb   :  { %12919 = vmatpush3.bf16.msra.mxu1 %v18616_v24 }
 0xcbc   :  { %12959 = vmatpush3.bf16.msra.mxu0 %v18588_v57  ;;  %12921 = vmatprep.subr.bf16.mxu1 %v18617_v38 }
 0xcbd   :  { %13009 = vmatprep.subr.bf16.mxu0 %v16467_v2 }
 0xcbf   :  { %8746 = vmatmul.mubr.f32.vlgmr.msra.gmra.mrb[46].mxu0 %v17194_v33  ;;  %12923 = vmatpush3.bf16.msra.mxu1 %v18618_v6 }
 0xcc0   :  { %12925 = vmatprep.subr.bf16.mxu1 %v18619_v53  ;;  %13011 = vmatpush1.bf16.msra.mxu0 %v16469_v63 }
 0xcc1   :  { %13013 = vmatprep.subr.bf16.mxu0 %v16496_v21  ;;  %9404 = vmatprep.mubr.f32.mxu0 %v18328_v48 }
 0xcc3   :  { %12927 = vmatpush3.bf16.msra.mxu1 %v18620_v49 }
 0xcc4   :  { %12961 = vmatprep.subr.bf16.mxu1 %v16453_v30  ;;  %13015 = vmatpush1.bf16.msra.mxu0 %v16502_v37 }
 0xcc5   :  { %13017 = vmatprep.subr.bf16.mxu0 %v18621_v59 }
 0xcc6   :  { %8642 = vmatmul.mubr.f32.vlgmr.msra.gmra.mrb[56].mxu1 %v17194_v33 }
 0xcc7   :  { %12963 = vmatpush1.bf16.msra.mxu1 %v16457_v29  ;;  %8861 = vmatprep.mubr.f32.mxu1 %v18328_v48 }
 0xcc8   :  { %12965 = vmatprep.subr.bf16.mxu1 %v16478_v56 }
 0xccb   :  { %12967 = vmatpush1.bf16.msra.mxu1 %v16486_v0 }
 0xccc   :  { %12969 = vmatprep.subr.bf16.mxu1 %v18622_v55 }
 0xcf1   :  { %v10915_v11 = vpop.f32.mrb[36].mxu0 }
 0xcf2   :  { %v10916_v61 = vpop.f32.mrb[37].mxu0 }
 0xcf3   :  { %v10917_v50 = vadd.f32 %v10916_v61, %v10915_v11 }
 0xcf9   :  { %v10880_v16 = vpop.f32.mrb[38].mxu1 }
 0xcfa   :  { %v10881_v5 = vpop.f32.mrb[39].mxu1 }
 0xcfb   :  { %v10882_v9 = vadd.f32 %v10881_v5, %v10880_v16 }
 0xcfd   :  { %v7368_v15 = vadd.f32 %v10917_v50, %v10882_v9  ;;  %v6933_v50 = vld [vmem:[%s18623_s1] sm:$0x1] }
 0xcfe   :  { %v6934_v9 = vld [vmem:[%s18624_s29] sm:$0x1] }
 0xd11   :  { %v10985_v12 = vpop.f32.mrb[38].mxu0 }
 0xd12   :  { %v10986_v7 = vpop.f32.mrb[39].mxu0 }
 0xd13   :  { %v10987_v33 = vadd.f32 %v10986_v7, %v10985_v12 }
 0xd19   :  { %v10950_v52 = vpop.f32.mrb[48].mxu1 }
 0xd1a   :  { %v10951_v1 = vpop.f32.mrb[49].mxu1 }
 0xd1b   :  { %v10952_v34 = vadd.f32 %v10951_v1, %v10950_v52 }
 0xd1d   :  { %v7506_v23 = vadd.f32 %v10952_v34, %v7368_v15 }
 0xd1f   :  { %v7614_v8 = vadd.f32 %v10987_v33, %v7506_v23 }
 0xd32   :  { %v11055_v19 = vpop.f32.mrb[40].mxu0 }
 0xd33   :  { %v11056_v32 = vpop.f32.mrb[41].mxu0 }
 0xd34   :  { %v11057_v57 = vadd.f32 %v11056_v32, %v11055_v19  ;;  %v18625_v19 = vld [vmem:[#allocation149_spill] sm:$0xff] }
 0xd35   :  { %v18626_v32 = vld [vmem:[#allocation153_spill] sm:$0xff] }
 0xd39   :  { %v11020_v54 = vpop.f32.mrb[50].mxu1 }
 0xd3a   :  { %v11021_v46 = vpop.f32.mrb[51].mxu1 }
 0xd3b   :  { %v11022_v41 = vadd.f32 %v11021_v46, %v11020_v54  ;;  %v18628_v54 = vld [vmem:[#allocation172_spill] sm:$0xff]  ;;  %v18629_v46 = vld [vmem:[#allocation171_spill] sm:$0xff] }
 0xd3d   :  { %v7782_v25 = vadd.f32 %v11022_v41, %v7614_v8  ;;  %v18630_v41 = vld [vmem:[#allocation178_spill] sm:$0xff] }
 0xd3f   :  { %v7886_v60 = vadd.f32 %v11057_v57, %v7782_v25  ;;  %v18627_v57 = vld [vmem:[#allocation154_spill] sm:$0xff]  ;;  %v18631_v25 = vld [vmem:[#allocation168_spill] sm:$0xff] }
 0xd52   :  { %v11125_v27 = vpop.f32.mrb[42].mxu0 }
 0xd53   :  { %v11126_v42 = vpop.f32.mrb[43].mxu0 }
 0xd54   :  { %v11127_v3 = vadd.f32 %v11126_v42, %v11125_v27  ;;  %v18633_v27 = vld [vmem:[#allocation169_spill] sm:$0xff] }
 0xd55   :  { %v18634_v42 = vld [vmem:[#allocation173_spill] sm:$0xff] }
 0xd59   :  { %v11090_v4 = vpop.f32.mrb[52].mxu1 }
 0xd5a   :  { %v11091_v39 = vpop.f32.mrb[53].mxu1 }
 0xd5b   :  { %v11092_v13 = vadd.f32 %v11091_v39, %v11090_v4  ;;  %v18636_v4 = vld [vmem:[#allocation176_spill] sm:$0xff]  ;;  %v18637_v39 = vld [vmem:[#allocation175_spill] sm:$0xff] }
 0xd5d   :  { %v7998_v35 = vadd.f32 %v11092_v13, %v7886_v60  ;;  %v18632_v60 = vld [vmem:[#allocation170_spill] sm:$0xff]  ;;  %v18638_v13 = vld [vmem:[#allocation177_spill] sm:$0xff] }
 0xd5f   :  { %v8230_v10 = vadd.f32 %v11127_v3, %v7998_v35  ;;  %v18635_v3 = vld [vmem:[#allocation174_spill] sm:$0xff]  ;;  %v18639_v35 = vld [vmem:[#allocation179_spill] sm:$0xff] }
 0xd72   :  { %v11195_v40 = vpop.f32.mrb[44].mxu0 }
 0xd73   :  { %v11196_v20 = vpop.f32.mrb[45].mxu0 }
 0xd74   :  { %v11197_v31 = vadd.f32 %v11196_v20, %v11195_v40  ;;  %v18641_v40 = vld [vmem:[#allocation180_spill] sm:$0xff]  ;;  %v18642_v20 = vld [vmem:[#allocation182_spill] sm:$0xff] }
 0xd79   :  { %v11160_v17 = vpop.f32.mrb[54].mxu1 }
 0xd7a   :  { %v11161_v62 = vpop.f32.mrb[55].mxu1 }
 0xd7b   :  { %v11162_v44 = vadd.f32 %v11161_v62, %v11160_v17  ;;  %v18644_v17 = vld [vmem:[#allocation185_spill] sm:$0xff]  ;;  %v18645_v62 = vld [vmem:[#allocation184_spill] sm:$0xff] }
 0xd7d   :  { %v8368_v58 = vadd.f32 %v11162_v44, %v8230_v10  ;;  %v18640_v10 = vld [vmem:[#allocation181_spill] sm:$0xff]  ;;  %v18646_v44 = vld [vmem:[#allocation186_spill] sm:$0xff] }
 0xd7f   :  { %v8476_v22 = vadd.f32 %v11197_v31, %v8368_v58  ;;  %v18643_v31 = vld [vmem:[#allocation183_spill] sm:$0xff] }
 0xd92   :  { %v11265_v28 = vpop.f32.mrb[46].mxu0 }
 0xd93   :  { %v11266_v14 = vpop.f32.mrb[47].mxu0 }
 0xd94   :  { %v11267_v18 = vadd.f32 %v11266_v14, %v11265_v28 }
 0xd99   :  { %v11230_v36 = vpop.f32.mrb[56].mxu1 }
 0xd9a   :  { %v11231_v51 = vpop.f32.mrb[57].mxu1 }
 0xd9b   :  { %v11232_v43 = vadd.f32 %v11231_v51, %v11230_v36  ;;  %v18649_v51 = vld [vmem:[#allocation29_spill] sm:$0xff] }
 0xd9d   :  { %v8644_v47 = vadd.f32 %v11232_v43, %v8476_v22 }
 0xd9f   :  { %v8748_v24 = vadd.f32 %v11267_v18, %v8644_v47  ;;  %v18648_v18 = vld [vmem:[#allocation62_spill] sm:$0xff] }
 0xda0   :  { %v18650_v47 = vld [vmem:[#allocation74_spill] sm:$0xff] }
 0xda1   :  { %v8751_v38 = vmul.f32 0.001953125, %v8748_v24 }
 0xda3   :  { %v8752_v6 = vmul.f32 %v8751_v38, %v8751_v38 }
 0xda5   :  { %v8754_v53 = vrot.slane %v8752_v6, 7 }
 0xda7   :  { %v8756_v49 = vsub.f32 %v8751_v38, %v8754_v53  ;;  %v18652_v53 = vld [vmem:[#allocation28_spill] sm:$0xff] }
 0xda9   :  { %v8757_v59 = vadd.f32 1e-05, %v8756_v49 }
 0xdab   :  { %13349 = vrsqrt.f32 %v8757_v59  ;;  %v18653_v59 = vld [vmem:[#allocation30_spill] sm:$0xff] }
 0xdb5   :  { %v13350_v55 = vpop.eup %13349 }
 0xdb6   :  { %v8766_v11 = vrot.slane %v13350_v55, %v18442_v45 }
 0xdb8   :  { %v8767_v61 = vcombine.high %v8766_v11, %v8766_v11  ;;  %v18654_v11 = vld [vmem:[#allocation32_spill] sm:$0xff] }
 0xdba   :  { %v8774_v16 = vrot.slane %v8767_v61, %v18442_v45 }
 0xdbc   :  { %v8776_v5 = vmul.f32 %v8774_v16, %v6933_v50  ;;  %v18655_v50 = vld [vmem:[#allocation34_spill] sm:$0xff] }
 0xdbe   :  { %v8777_v15 = vmul.f32 %v8776_v5, %v8751_v38  ;;  %v18651_v38 = vld [vmem:[#allocation33_spill] sm:$0xff] }
 0xdc0   :  { %v8778_v12 = vsub.f32 %v6934_v9, %v8777_v15 }
 0xdc2   :  { %v8783_v7 = vrot.slane %v8778_v12, %v18443_v26 }
 0xdc4   :  { %v8785_v33 = vsel %vm349_vm1, %v8776_v5, %v8783_v7 }
 0xdc5   :  { %v8787_v52 = vsel %vm5289_vm3, %v8785_v33, 0 }
 0xdc6   :  { %v17302_v1 = vand.u32 4294901760, %v8787_v52 }
 0xdc8   :  { %v8863_v34 = vsub.f32 %v8787_v52, %v17302_v1 }
 0xdca   :  { %v8864_v23 = vand.u32 4294901760, %v8863_v34 }
 0xdcc   :  { %v8865_v8 = vsub.f32 %v8863_v34, %v8864_v23 }
 0xdce   :  { %v8866_v45 = vand.u32 4294901760, %v8865_v8 }
 0xdd0   :  { %8867 = vmatmul.mubr.f32.vlgmr.msra.gmra.mrb[58].mxu1 %v8866_v45  ;;  %9410 = vmatmul.mubr.f32.vlgmr.msra.gmra.mrb[48].mxu0 %v8866_v45  ;;  %v18658_v45 = vld [vmem:[#allocation16_spill] sm:$0xff] }
 0xdd1   :  { %12971 = vmatpush1.bf16.msra.mxu1 %v18625_v19  ;;  %13019 = vmatpush1.bf16.msra.mxu0 %v18626_v32  ;;  %v18659_v32 = vld [vmem:[#allocation23_spill] sm:$0xff] }
 0xdd2   :  { %12973 = vmatprep.subr.bf16.mxu1 %v18627_v57  ;;  %13021 = vmatprep.subr.bf16.mxu0 %v18628_v54  ;;  %v18660_v54 = vld [vmem:[#allocation47_spill] sm:$0xff] }
 0xdd3   :  { %8977 = vmatprep.mubr.f32.mxu1 %v18328_v48  ;;  %9520 = vmatprep.mubr.f32.mxu0 %v18328_v48 }
 0xdd5   :  { %12975 = vmatpush1.bf16.msra.mxu1 %v18629_v46  ;;  %13023 = vmatpush1.bf16.msra.mxu0 %v18630_v41  ;;  %v18661_v41 = vld [vmem:[#allocation17_spill] sm:$0xff] }
 0xdd6   :  { %12977 = vmatprep.subr.bf16.mxu1 %v18631_v25  ;;  %13025 = vmatprep.subr.bf16.mxu0 %v18632_v60  ;;  %v18662_v60 = vld [vmem:[#allocation18_spill] sm:$0xff] }
 0xdd8   :  { %8979 = vmatmul.mubr.f32.vlgmr.msra.gmra.mrb[58].mxu1 %v17302_v1  ;;  %9522 = vmatmul.mubr.f32.vlgmr.msra.gmra.mrb[48].mxu0 %v17302_v1 }
 0xdd9   :  { %12979 = vmatpush1.bf16.msra.mxu1 %v18633_v27  ;;  %13027 = vmatpush1.bf16.msra.mxu0 %v18634_v42  ;;  %v18663_v42 = vld [vmem:[#allocation49_spill] sm:$0xff] }
 0xdda   :  { %12981 = vmatprep.subr.bf16.mxu1 %v18635_v3  ;;  %13029 = vmatprep.subr.bf16.mxu0 %v18636_v4 }
 0xddb   :  { %9065 = vmatprep.mubr.f32.mxu1 %v18328_v48  ;;  %9608 = vmatprep.mubr.f32.mxu0 %v18328_v48 }
 0xddd   :  { %12983 = vmatpush1.bf16.msra.mxu1 %v18637_v39  ;;  %13031 = vmatpush1.bf16.msra.mxu0 %v18638_v13 }
 0xdde   :  { %12985 = vmatprep.subr.bf16.mxu1 %v16453_v30  ;;  %13033 = vmatprep.subr.bf16.mxu0 %v16467_v2 }
 0xde0   :  { %9068 = vmatmul.mubr.f32.vlgmr.msra.gmra.mrb[58].mxu1 %v8863_v34  ;;  %9611 = vmatmul.mubr.f32.vlgmr.msra.gmra.mrb[48].mxu0 %v8863_v34 }
 0xde1   :  { %12987 = vmatpush1.bf16.msra.mxu1 %v16457_v29  ;;  %13035 = vmatpush1.bf16.msra.mxu0 %v16469_v63 }
 0xde2   :  { %12989 = vmatprep.subr.bf16.mxu1 %v16478_v56  ;;  %13037 = vmatprep.subr.bf16.mxu0 %v16496_v21 }
 0xde3   :  { %9146 = vmatprep.mubr.f32.mxu1 %v18328_v48  ;;  %9689 = vmatprep.mubr.f32.mxu0 %v18328_v48 }
 0xde5   :  { %12991 = vmatpush1.bf16.msra.mxu1 %v16486_v0  ;;  %13039 = vmatpush1.bf16.msra.mxu0 %v16502_v37 }
 0xde6   :  { %12993 = vmatprep.subr.bf16.mxu1 %v18639_v35  ;;  %13041 = vmatprep.subr.bf16.mxu0 %v18640_v10 }
 0xde8   :  { %9150 = vmatmul.mubr.f32.vlgmr.msra.gmra.mrb[58].mxu1 %v8864_v23  ;;  %9693 = vmatmul.mubr.f32.vlgmr.msra.gmra.mrb[48].mxu0 %v8864_v23  ;;  %v18657_v23 = vld [vmem:[#allocation21_spill] sm:$0xff] }
 0xde9   :  { %12995 = vmatpush1.bf16.msra.mxu1 %v18641_v40  ;;  %13043 = vmatpush1.bf16.msra.mxu0 %v18642_v20 }
 0xdea   :  { %12997 = vmatprep.subr.bf16.mxu1 %v18643_v31  ;;  %13045 = vmatprep.subr.bf16.mxu0 %v18644_v17  ;;  %v18664_v17 = vld [vmem:[#allocation65_spill] sm:$0xff] }
 0xdeb   :  { %9244 = vmatprep.mubr.f32.mxu1 %v18328_v48  ;;  %9787 = vmatprep.mubr.f32.mxu0 %v18328_v48 }
 0xded   :  { %12999 = vmatpush1.bf16.msra.mxu1 %v18645_v62  ;;  %13047 = vmatpush1.bf16.msra.mxu0 %v18646_v44  ;;  %v18665_v44 = vld [vmem:[#allocation72_spill] sm:$0xff] }
 0xdee   :  { %13001 = vmatprep.subr.bf16.mxu1 %v16453_v30  ;;  %13049 = vmatprep.subr.bf16.mxu0 %v16467_v2 }
 0xdf0   :  { %9246 = vmatmul.mubr.f32.vlgmr.msra.gmra.mrb[58].mxu1 %v17302_v1  ;;  %9789 = vmatmul.mubr.f32.vlgmr.msra.gmra.mrb[48].mxu0 %v17302_v1 }
 0xdf1   :  { %13003 = vmatpush1.bf16.msra.mxu1 %v16457_v29  ;;  %13051 = vmatpush1.bf16.msra.mxu0 %v16469_v63  ;;  %v18647_v29 = vld [vmem:[#allocation22_spill] sm:$0xff] }
 0xdf2   :  { %13005 = vmatprep.subr.bf16.mxu1 %v16478_v56  ;;  %13053 = vmatprep.subr.bf16.mxu0 %v16496_v21 }
 0xdf3   :  { %9324 = vmatprep.mubr.f32.mxu1 %v18328_v48  ;;  %9867 = vmatprep.mubr.f32.mxu0 %v18328_v48 }
 0xdf5   :  { %13007 = vmatpush1.bf16.msra.mxu1 %v16486_v0  ;;  %13055 = vmatpush1.bf16.msra.mxu0 %v16502_v37 }
 0xdf8   :  { %9326 = vmatmul.mubr.f32.vlgmr.msra.gmra.mrb[58].mxu1 %v17302_v1  ;;  %9869 = vmatmul.mubr.f32.vlgmr.msra.gmra.mrb[48].mxu0 %v17302_v1  ;;  %v18656_v1 = vld [vmem:[#allocation20_spill] sm:$0xff] }
 0xecb   :  { %v9327_v2 = vpop.f32.mrb[58].mxu1  ;;  %v9870_v30 = vpop.f32.mrb[48].mxu0 }
 0xecc   :  { %v9878_v63 = vrot.slane %v9327_v2, %v18443_v26  ;;  %v9910_v56 = vrot.slane %v9327_v2, %v18647_v29  ;;  %v9886_v21 = vrot.slane %v9870_v30, %v18443_v26  ;;  %v9918_v58 = vrot.slane %v9870_v30, %v18647_v29  ;;  %v9329_v22 = vpop.f32.mrb[59].mxu1  ;;  %v9872_v48 = vpop.f32.mrb[49].mxu0  ;;  %v18666_v30 = vld [vmem:[#allocation77_spill] sm:$0xff] }
 0xecd   :  { %v9882_v0 = vrot.slane %v9329_v22, %v18443_v26  ;;  %v9914_v37 = vrot.slane %v9329_v22, %v18647_v29  ;;  %v9890_v28 = vrot.slane %v9872_v48, %v18443_v26  ;;  %v9922_v14 = vrot.slane %v9872_v48, %v18647_v29  ;;  %v18667_v29 = vld [vmem:[#allocation81_spill] sm:$0xff]  ;;  %v18669_v22 = vld [vmem:[#allocation31_spill] sm:$0xff] }
 0xece   :  { %v9891_v36 = vmul.f32 %v9878_v63, %v18648_v18  ;;  %v9895_v43 = vmul.f32 %v9878_v63, %v18649_v51  ;;  %v9899_v24 = vmul.f32 %v9878_v63, %v18650_v47  ;;  %v9903_v6 = vmul.f32 %v9878_v63, %v18651_v38  ;;  %v18670_v18 = vld [vmem:[#allocation80_spill] sm:$0xff]  ;;  %v18671_v51 = vld [vmem:[#allocation35_spill] sm:$0xff] }
 0xecf   :  { %v9893_v49 = vmul.f32 %v9886_v21, %v18652_v53  ;;  %v9897_v55 = vmul.f32 %v9886_v21, %v18653_v59  ;;  %v9901_v61 = vmul.f32 %v9886_v21, %v18654_v11  ;;  %v9905_v16 = vmul.f32 %v9886_v21, %v18655_v50  ;;  %v18668_v21 = vld [vmem:[#allocation68_spill] sm:$0xff] }
 0xed0   :  { %v9923_v5 = vadd.f32 %v9910_v56, %v9891_v36  ;;  %v9927_v26 = vadd.f32 %v9910_v56, %v9895_v43  ;;  %v9931_v9 = vadd.f32 %v9910_v56, %v9899_v24  ;;  %v9935_v15 = vadd.f32 %v9910_v56, %v9903_v6 }
 0xed1   :  { %v9925_v12 = vadd.f32 %v9918_v58, %v9893_v49  ;;  %v9929_v7 = vadd.f32 %v9918_v58, %v9897_v55  ;;  %v9933_v33 = vadd.f32 %v9918_v58, %v9901_v61  ;;  %v9937_v52 = vadd.f32 %v9918_v58, %v9905_v16  ;;  %v18672_v55 = vld [vmem:[#allocation53_spill] sm:$0xff]  ;;  %v18673_v61 = vld [vmem:[#allocation24_spill] sm:$0xff] }
 0xed2   :  { %v9939_v34 = vadd.f32 %v9923_v5, %v18656_v1  ;;  %v9943_v8 = vadd.f32 %v9927_v26, %v18657_v23  ;;  %v9947_v19 = vadd.f32 %v9931_v9, %v18658_v45  ;;  %v9951_v57 = vadd.f32 %v9935_v15, %v18659_v32  ;;  %v18674_v16 = vld [vmem:[#allocation25_spill] sm:$0xff]  ;;  %v18675_v26 = vld [vmem:[#allocation55_spill] sm:$0xff]  ;;  %v18676_v15 = vld [vmem:[#allocation60_spill] sm:$0xff] }
 0xed3   :  { %v9941_v46 = vadd.f32 %v9925_v12, %v18660_v54  ;;  %v9945_v25 = vadd.f32 %v9929_v7, %v18661_v41  ;;  %v9949_v27 = vadd.f32 %v9933_v33, %v18662_v60  ;;  %v9953_v3 = vadd.f32 %v9937_v52, %v18663_v42  ;;  %v18677_v12 = vld [vmem:[#allocation26_spill] sm:$0xff]  ;;  %v18678_v33 = vld [vmem:[#allocation19_spill] sm:$0xff] }
 0xed4   :  { %v9955_v4 = vmax.f32 %v9939_v34, 0.0  ;;  %v9959_v39 = vmax.f32 %v9943_v8, 0.0  ;;  %v9963_v13 = vmax.f32 %v9947_v19, 0.0  ;;  %v9967_v35 = vmax.f32 %v9951_v57, 0.0  ;;  %v18679_v52 = vld [vmem:[#allocation27_spill] sm:$0xff] }
 0xed5   :  { %v9957_v10 = vmax.f32 %v9941_v46, 0.0  ;;  %v9961_v40 = vmax.f32 %v9945_v25, 0.0  ;;  %v9965_v20 = vmax.f32 %v9949_v27, 0.0  ;;  %v9969_v31 = vmax.f32 %v9953_v3, 0.0 }
 0xed6   :  { %9971 = vst [vmem:[#allocation11] sm:$0xff] %v9955_v4  ;;  %9975 = vst [vmem:[#allocation11 + $0x20] sm:$0xff] %v9959_v39  ;;  %v9892_v62 = vmul.f32 %v9882_v0, %v18664_v17  ;;  %v9896_v2 = vmul.f32 %v9882_v0, %v18665_v44  ;;  %v9900_v63 = vmul.f32 %v9882_v0, %v18666_v30 }
 0xed7   :  { %9979 = vst [vmem:[#allocation11 + $0x40] sm:$0xff] %v9963_v13  ;;  %9983 = vst [vmem:[#allocation11 + $0x60] sm:$0xff] %v9967_v35  ;;  %v9904_v56 = vmul.f32 %v9882_v0, %v18667_v29  ;;  %v9894_v58 = vmul.f32 %v9890_v28, %v18668_v21  ;;  %v9898_v48 = vmul.f32 %v9890_v28, %v18669_v22 }
 0xed8   :  { %9973 = vst [vmem:[#allocation11 + $0x10] sm:$0xff] %v9957_v10  ;;  %9977 = vst [vmem:[#allocation11 + $0x30] sm:$0xff] %v9961_v40  ;;  %v9902_v36 = vmul.f32 %v9890_v28, %v18670_v18  ;;  %v9906_v43 = vmul.f32 %v9890_v28, %v18671_v51  ;;  %v9924_v47 = vadd.f32 %v9914_v37, %v9892_v62 }
 0xed9   :  { %9981 = vst [vmem:[#allocation11 + $0x50] sm:$0xff] %v9965_v20  ;;  %9985 = vst [vmem:[#allocation11 + $0x70] sm:$0xff] %v9969_v31  ;;  %v9928_v24 = vadd.f32 %v9914_v37, %v9896_v2  ;;  %v9932_v38 = vadd.f32 %v9914_v37, %v9900_v63  ;;  %v9936_v6 = vadd.f32 %v9914_v37, %v9904_v56 }
 0xeda   :  { %v9926_v53 = vadd.f32 %v9922_v14, %v9894_v58  ;;  %v9930_v49 = vadd.f32 %v9922_v14, %v9898_v48  ;;  %v9934_v59 = vadd.f32 %v9922_v14, %v9902_v36  ;;  %v9938_v0 = vadd.f32 %v9922_v14, %v9906_v43 }
 0xedb   :  { %v9940_v11 = vadd.f32 %v9924_v47, %v18672_v55  ;;  %v9944_v50 = vadd.f32 %v9928_v24, %v18673_v61  ;;  %v9948_v5 = vadd.f32 %v9932_v38, %v18674_v16  ;;  %v9952_v9 = vadd.f32 %v9936_v6, %v18675_v26 }
 0xedc   :  { %v9942_v28 = vadd.f32 %v9926_v53, %v18676_v15  ;;  %v9946_v7 = vadd.f32 %v9930_v49, %v18677_v12  ;;  %v9950_v37 = vadd.f32 %v9934_v59, %v18678_v33  ;;  %v9954_v1 = vadd.f32 %v9938_v0, %v18679_v52 }
 0xedd   :  { %v9956_v34 = vmax.f32 %v9940_v11, 0.0  ;;  %v9960_v14 = vmax.f32 %v9944_v50, 0.0  ;;  %v9964_v23 = vmax.f32 %v9948_v5, 0.0  ;;  %v9968_v8 = vmax.f32 %v9952_v9, 0.0 }
 0xede   :  { %v9958_v45 = vmax.f32 %v9942_v28, 0.0  ;;  %v9962_v19 = vmax.f32 %v9946_v7, 0.0  ;;  %v9966_v32 = vmax.f32 %v9950_v37, 0.0  ;;  %v9970_v57 = vmax.f32 %v9954_v1, 0.0 }
 0xedf   :  { %9972 = vst [vmem:[#allocation11 + $0x8] sm:$0xff] %v9956_v34  ;;  %9976 = vst [vmem:[#allocation11 + $0x28] sm:$0xff] %v9960_v14 }
 0xee0   :  { %9980 = vst [vmem:[#allocation11 + $0x48] sm:$0xff] %v9964_v23  ;;  %9984 = vst [vmem:[#allocation11 + $0x68] sm:$0xff] %v9968_v8 }
 0xee1   :  { %9974 = vst [vmem:[#allocation11 + $0x18] sm:$0xff] %v9958_v45  ;;  %9978 = vst [vmem:[#allocation11 + $0x38] sm:$0xff] %v9962_v19 }
 0xee2   :  { %9982 = vst [vmem:[#allocation11 + $0x58] sm:$0xff] %v9966_v32  ;;  %9986 = vst [vmem:[#allocation11 + $0x78] sm:$0xff] %v9970_v57 }
 0xee3   :  { %13450 = shalt.err (!%p13447_p8)
}
 0xee4   :  { %s18680_s13 = sld [smem:[#allocation193_spill]] }
 0xeea   :  { %s13451_s22 = scalar_lea.hbm %s18680_s13, 2048 }
 0xeeb   :  { %p13452_p9 = scmp.ne.s32.totalorder %s18680_s13, %s13451_s22  ;;  %p13455_p10 = scmp.lt.u32.totalorder %s13451_s22, %s18680_s13 }
 0xeed   :  { %p13457_p11 = pnand %p13455_p10, %p13452_p9 }
 0xeef   :  { %13460 = shalt.err (!%p13457_p11)
}
 0xef0   :  { %9998 = dma.vmem_to_hbm [thread:$0]  %s9993_s27, 2048, %s18680_s13, [#allocation5], %s13477_s21, %s13477_s21, %s13478_s25  }
 0xef1   :  { %13467 = dma.done.wait [#allocation5], 2048  }
 0xef2   :  { %13468 = vsyncadd [#allocation5], 4294965248 }
 0xef3   :  { %10002 = vsyncpa [#allocation4], 1 }
 0xef4   :  { %10003 = vsyncpa [#allocation7], 1 }
 0xef5   :  { %10004 = vsyncpa [#allocation10], 1 }
 0xef6   :  { %10005 = vsyncpa [#allocation5], 1 }

</bundles_post_ra>
